<compile_context>
chip_gen: v6e
topology: v6e:2x2x1
jax: 0.10.0
libtpu: 0.0.40
codegen_flags: <defaults>
</compile_context>

<pallas_src>
import numpy as np
import jax
import jax.numpy as jnp
from jax import lax
from jax.experimental import pallas as pl
from jax.experimental.pallas import tpu as pltpu


# ----------------------------------------------------------------------------
# Fused Pallas kernel: conv1 + conv2 + conv3 + LSTM recurrence
# ----------------------------------------------------------------------------
def _fused_kernel(p1_ref, w1_ref, b1_ref, w2_ref, b2_ref, w3_ref, b3_ref,
                  wih_ref, whh_ref, bg_ref, h0_ref, c0_ref,
                  h_out_ref, c_out_ref):
    f32 = jnp.float32
    NPAD = p1_ref.shape[0] // 9          # padded image count = T * 8
    BPAD = h0_ref.shape[0]               # 8 (full sublane group)
    H = whh_ref.shape[0]                 # hidden size
    T = NPAD // BPAD                     # time steps

    # ---- conv1 (block-diag matmul) -> output is directly the conv2 im2col matrix
    # p1: (9*NPAD, 81), w1_bd: (81, 117), rows ordered (oh2, ow2, n)
    y1 = jnp.maximum(
        jnp.dot(p1_ref[...], w1_ref[...], preferred_element_type=f32) + b1_ref[...],
        0.0)                                                   # (9*NPAD, 117)

    # ---- conv2: single matmul over the 117-wide patch dim
    y2 = jnp.maximum(
        jnp.dot(y1, w2_ref[...], preferred_element_type=f32) + b2_ref[...],
        0.0)                                                   # (9*NPAD, 26)

    # ---- conv3: 1x1 spatial output -> accumulate 9 aligned row-slices
    acc3 = jnp.zeros((NPAD, w3_ref.shape[2]), f32)
    for kk in range(9):                                        # static unroll
        acc3 = acc3 + jnp.dot(y2[kk * NPAD:(kk + 1) * NPAD, :], w3_ref[kk],
                              preferred_element_type=f32)
    y3 = jnp.maximum(acc3 + b3_ref[...], 0.0)                  # (NPAD, 52), rows t*8+b

    # ---- LSTM: hoisted input projection for all timesteps (one matmul, bias once)
    xproj = jnp.dot(y3, wih_ref[...], preferred_element_type=f32) + bg_ref[...]  # (NPAD, 4H)

    h = h0_ref[...]                                            # (BPAD, H)
    c = c0_ref[...]
    whh = whh_ref[...]                                         # (H, 4H)
    for t in range(T):                                         # static unroll, T small
        g = xproj[t * BPAD:(t + 1) * BPAD, :] + jnp.dot(h, whh,
                                                        preferred_element_type=f32)
        i_g = jax.nn.sigmoid(g[:, 0 * H:1 * H])
        f_g = jax.nn.sigmoid(g[:, 1 * H:2 * H])
        g_g = jnp.tanh(g[:, 2 * H:3 * H])
        o_g = jax.nn.sigmoid(g[:, 3 * H:4 * H])
        c = f_g * c + i_g * g_g
        h = o_g * jnp.tanh(c)

    h_out_ref[...] = h
    c_out_ref[...] = c


def _fused_forward(p1, w1_bd, b1_t, w2m, b2r, w3m, b3r, wih, whh, bg, h0, c0):
    BPAD, H = h0.shape

    def full_spec(a):
        nd = a.ndim
        return pl.BlockSpec(a.shape, lambda i, _nd=nd: (0,) * _nd)

    args = (p1, w1_bd, b1_t, w2m, b2r, w3m, b3r, wih, whh, bg, h0, c0)
    return pl.pallas_call(
        _fused_kernel,
        out_shape=(jax.ShapeDtypeStruct((BPAD, H), jnp.float32),
                   jax.ShapeDtypeStruct((BPAD, H), jnp.float32)),
        grid=(1,),
        in_specs=[full_spec(a) for a in args],
        out_specs=(pl.BlockSpec((BPAD, H), lambda i: (0, 0)),
                   pl.BlockSpec((BPAD, H), lambda i: (0, 0))),
        compiler_params=pltpu.CompilerParams(dimension_semantics=("arbitrary",)),
    )(*args)


# ----------------------------------------------------------------------------
# Full CNNLSTM forward: JAX glue (raw-input patch extraction + weight prep) + kernel
# ----------------------------------------------------------------------------
def cnn_lstm_forward(params, x, batch_size, time_step, hidden_state, cell_state,
                     input_size):
    B, T = batch_size, time_step
    BPAD = 8
    NPAD = T * BPAD
    f32 = jnp.float32
    H = params["w_hh"].shape[-1]

    # images in padded, time-major order: n_pad = t*BPAD + b  (b >= B rows are zero)
    ximg = jnp.transpose(x.astype(f32), (1, 0, 2, 3))            # (T, B, S, S)
    ximg = jnp.pad(ximg, ((0, 0), (0, BPAD - B), (0, 0), (0, 0)))  # (T, BPAD, S, S)
    ximg = ximg.reshape(NPAD, input_size, input_size)

    # P1[(oh2*3+ow2)*NPAD + n, (ki*3+kj)*9 + (di*3+dj)] = x[n, 2*oh2+ki+di, 2*ow2+kj+dj]
    cols = []
    for ki in range(3):
        for kj in range(3):
            for di in range(3):
                for dj in range(3):
                    r0, c0 = ki + di, kj + dj
                    cols.append(ximg[:, r0:r0 + 5:2, c0:c0 + 5:2])  # (NPAD, 3, 3)
    p1 = jnp.stack(cols, axis=-1)                                # (NPAD, 3, 3, 81)
    p1 = jnp.transpose(p1, (1, 2, 0, 3)).reshape(9 * NPAD, 81)

    # conv weights: conv1 as block-diagonal (so its output is conv2's im2col matrix)
    w1m = params["w1"].reshape(9, 13)
    w1_bd = jax.scipy.linalg.block_diag(*([w1m] * 9))            # (81, 117)
    b1_t = jnp.tile(params["b1"], 9).reshape(1, 117)
    w2m = params["w2"].reshape(9 * 13, 26)
    b2r = params["b2"].reshape(1, 26)
    w3m = params["w3"].reshape(9, 26, 52)
    b3r = params["b3"].reshape(1, 52)

    # LSTM weights concatenated along the output dim (gate order i, f, g, o)
    wih_cat = jnp.transpose(params["w_ih"], (1, 0, 2)).reshape(52, 4 * H)
    whh_cat = jnp.transpose(params["w_hh"], (1, 0, 2)).reshape(H, 4 * H)
    bg = (params["b_ih"] + params["b_hh"]).reshape(1, 4 * H)

    h0 = jnp.pad(hidden_state[0], ((0, BPAD - B), (0, 0)))
    c0 = jnp.pad(cell_state[0], ((0, BPAD - B), (0, 0)))

    h_pad, c_pad = _fused_forward(p1, w1_bd, b1_t, w2m, b2r, w3m, b3r,
                                  wih_cat, whh_cat, bg, h0, c0)
    h_n = h_pad[:B]
    c_n = c_pad[:B]
    out = h_n                    # lstm_out[:, T-1, :] == final h for a 1-layer LSTM
    return out, (h_n[None], c_n[None])


# ----------------------------------------------------------------------------
# Pure-JAX reference (correctness check)
# ----------------------------------------------------------------------------
def reference_forward(params, x, batch_size, time_step, hidden_state, cell_state,
                      input_size):
    N = batch_size * time_step
    xr = x.reshape(N, input_size, input_size, 1).astype(jnp.float32)
    dn = ("NHWC", "HWIO", "NHWC")

    def conv(v, w, b, s):
        y = lax.conv_general_dilated(v, w, (s, s), "VALID", dimension_numbers=dn)
        return jnp.maximum(y + b[None, None, None, :], 0.0)

    y = conv(xr, params["w1"], params["b1"], 1)
    y = conv(y, params["w2"], params["b2"], 2)
    y = conv(y, params["w3"], params["b3"], 2)
    feats = y.reshape(batch_size, time_step, 52)

    h = hidden_state[0]
    c = cell_state[0]
    b = params["b_ih"] + params["b_hh"]
    for t in range(time_step):
        xt = feats[:, t, :]
        i_g = jax.nn.sigmoid(xt @ params["w_ih"][0] + h @ params["w_hh"][0] + b[0])
        f_g = jax.nn.sigmoid(xt @ params["w_ih"][1] + h @ params["w_hh"][1] + b[1])
        g_g = jnp.tanh(xt @ params["w_ih"][2] + h @ params["w_hh"][2] + b[2])
        o_g = jax.nn.sigmoid(xt @ params["w_ih"][3] + h @ params["w_hh"][3] + b[3])
        c = f_g * c + i_g * g_g
        h = o_g * jnp.tanh(c)
    return h, (h[None], c[None])


# ----------------------------------------------------------------------------
if __name__ == "__main__":
    input_size = 9          # 9 -> conv1 -> 7 -> conv2(s2) -> 3 -> conv3(s2) -> 1
    batch_size = 2
    time_step = 8
    hidden_size = 32
    num_layers = 1

    key = jax.random.PRNGKey(0)
    ks = jax.random.split(key, 12)

    def uni(k, shape, fan_in):
        bound = 1.0 / np.sqrt(fan_in)
        return jax.random.uniform(k, shape, jnp.float32, -bound, bound)

    params = {
        # conv weights stored HWIO
        "w1": uni(ks[0], (3, 3, 1, 13), 1 * 9),
        "b1": uni(ks[1], (13,), 1 * 9),
        "w2": uni(ks[2], (3, 3, 13, 26), 13 * 9),
        "b2": uni(ks[3], (26,), 13 * 9),
        "w3": uni(ks[4], (3, 3, 26, 52), 26 * 9),
        "b3": uni(ks[5], (52,), 26 * 9),
        # LSTM weights, gate order (i, f, g, o), stored pre-transposed: (4, in, H)
        "w_ih": uni(ks[6], (4, 52, hidden_size), hidden_size),
        "w_hh": uni(ks[7], (4, hidden_size, hidden_size), hidden_size),
        "b_ih": uni(ks[8], (4, hidden_size), hidden_size),
        "b_hh": uni(ks[9], (4, hidden_size), hidden_size),
    }

    x = jax.random.normal(ks[10], (batch_size, time_step, input_size, input_size),
                          jnp.float32)
    h0 = jnp.zeros((num_layers, batch_size, hidden_size), jnp.float32)
    c0 = jnp.zeros((num_layers, batch_size, hidden_size), jnp.float32)

    fwd = jax.jit(cnn_lstm_forward, static_argnums=(2, 3, 6))
    out, (h_n, c_n) = fwd(params, x, batch_size, time_step, h0, c0, input_size)
    jax.block_until_ready((out, h_n, c_n))

    out_ref, (h_ref, c_ref) = reference_forward(params, x, batch_size, time_step,
                                                h0, c0, input_size)

    assert np.allclose(np.asarray(out), np.asarray(out_ref), atol=1e-4, rtol=1e-4)
    assert np.allclose(np.asarray(h_n), np.asarray(h_ref), atol=1e-4, rtol=1e-4)
    assert np.allclose(np.asarray(c_n), np.asarray(c_ref), atol=1e-4, rtol=1e-4)

    print("KERNEL_OK")
</pallas_src>

<mosaic_0001>
module attributes {stable_mosaic.version = 11 : i64} {
  func.func @_fused_kernel(%arg0: i32, %arg1: memref<576x81xf32, #tpu.memory_space<vmem>>, %arg2: memref<81x117xf32, #tpu.memory_space<vmem>>, %arg3: memref<1x117xf32, #tpu.memory_space<vmem>>, %arg4: memref<117x26xf32, #tpu.memory_space<vmem>>, %arg5: memref<1x26xf32, #tpu.memory_space<vmem>>, %arg6: memref<9x26x52xf32, #tpu.memory_space<vmem>>, %arg7: memref<1x52xf32, #tpu.memory_space<vmem>>, %arg8: memref<52x128xf32, #tpu.memory_space<vmem>>, %arg9: memref<32x128xf32, #tpu.memory_space<vmem>>, %arg10: memref<1x128xf32, #tpu.memory_space<vmem>>, %arg11: memref<8x32xf32, #tpu.memory_space<vmem>>, %arg12: memref<8x32xf32, #tpu.memory_space<vmem>>, %arg13: memref<8x32xf32, #tpu.memory_space<vmem>>, %arg14: memref<8x32xf32, #tpu.memory_space<vmem>>) attributes {dimension_semantics = [#tpu.dimension_semantics<arbitrary>], iteration_bounds = array<i64: 1>, scalar_prefetch = 0 : i64, scratch_operands = 0 : i64, tpu.core_type = #tpu.core_type<tc>, window_params = [{pipeline_mode = #tpu.pipeline_mode<synchronous>, transform_indices = @transform_0, window_bounds = array<i64: 576, 81>}, {pipeline_mode = #tpu.pipeline_mode<synchronous>, transform_indices = @transform_1, window_bounds = array<i64: 81, 117>}, {pipeline_mode = #tpu.pipeline_mode<synchronous>, transform_indices = @transform_2, window_bounds = array<i64: 1, 117>}, {pipeline_mode = #tpu.pipeline_mode<synchronous>, transform_indices = @transform_3, window_bounds = array<i64: 117, 26>}, {pipeline_mode = #tpu.pipeline_mode<synchronous>, transform_indices = @transform_4, window_bounds = array<i64: 1, 26>}, {pipeline_mode = #tpu.pipeline_mode<synchronous>, transform_indices = @transform_5, window_bounds = array<i64: 9, 26, 52>}, {pipeline_mode = #tpu.pipeline_mode<synchronous>, transform_indices = @transform_6, window_bounds = array<i64: 1, 52>}, {pipeline_mode = #tpu.pipeline_mode<synchronous>, transform_indices = @transform_7, window_bounds = array<i64: 52, 128>}, {pipeline_mode = #tpu.pipeline_mode<synchronous>, transform_indices = @transform_8, window_bounds = array<i64: 32, 128>}, {pipeline_mode = #tpu.pipeline_mode<synchronous>, transform_indices = @transform_9, window_bounds = array<i64: 1, 128>}, {pipeline_mode = #tpu.pipeline_mode<synchronous>, transform_indices = @transform_10, window_bounds = array<i64: 8, 32>}, {pipeline_mode = #tpu.pipeline_mode<synchronous>, transform_indices = @transform_11, window_bounds = array<i64: 8, 32>}, {pipeline_mode = #tpu.pipeline_mode<synchronous>, transform_indices = @transform_12, window_bounds = array<i64: 8, 32>}, {pipeline_mode = #tpu.pipeline_mode<synchronous>, transform_indices = @transform_13, window_bounds = array<i64: 8, 32>}]} {
    %c0 = arith.constant 0 : index
    %c0_0 = arith.constant 0 : index
    %0 = vector.load %arg1[%c0, %c0_0] : memref<576x81xf32, #tpu.memory_space<vmem>>, vector<576x81xf32>
    %c0_1 = arith.constant 0 : index
    %c0_2 = arith.constant 0 : index
    %1 = vector.load %arg2[%c0_1, %c0_2] : memref<81x117xf32, #tpu.memory_space<vmem>>, vector<81x117xf32>
    %cst = arith.constant dense<0.000000e+00> : vector<576x117xf32>
    %2 = tpu.matmul %0, %1, %cst {dimension_numbers = #tpu.dot_dimension_numbers<[1], [0], [0], [1], [0, 0, 1, 1], [], []>} : vector<576x81xf32>, vector<81x117xf32>, vector<576x117xf32> -> vector<576x117xf32>
    %c0_3 = arith.constant 0 : index
    %c0_4 = arith.constant 0 : index
    %3 = vector.load %arg3[%c0_3, %c0_4] : memref<1x117xf32, #tpu.memory_space<vmem>>, vector<1x117xf32>
    %4 = vector.broadcast %3 : vector<1x117xf32> to vector<576x117xf32>
    %5 = arith.addf %2, %4 : vector<576x117xf32>
    %cst_5 = arith.constant 0.000000e+00 : f32
    %6 = vector.broadcast %cst_5 : f32 to vector<576x117xf32>
    %7 = arith.maximumf %5, %6 : vector<576x117xf32>
    %c0_6 = arith.constant 0 : index
    %c0_7 = arith.constant 0 : index
    %8 = vector.load %arg4[%c0_6, %c0_7] : memref<117x26xf32, #tpu.memory_space<vmem>>, vector<117x26xf32>
    %cst_8 = arith.constant dense<0.000000e+00> : vector<576x26xf32>
    %9 = tpu.matmul %7, %8, %cst_8 {dimension_numbers = #tpu.dot_dimension_numbers<[1], [0], [0], [1], [0, 0, 1, 1], [], []>} : vector<576x117xf32>, vector<117x26xf32>, vector<576x26xf32> -> vector<576x26xf32>
    %c0_9 = arith.constant 0 : index
    %c0_10 = arith.constant 0 : index
    %10 = vector.load %arg5[%c0_9, %c0_10] : memref<1x26xf32, #tpu.memory_space<vmem>>, vector<1x26xf32>
    %11 = vector.broadcast %10 : vector<1x26xf32> to vector<576x26xf32>
    %12 = arith.addf %9, %11 : vector<576x26xf32>
    %cst_11 = arith.constant 0.000000e+00 : f32
    %13 = vector.broadcast %cst_11 : f32 to vector<576x26xf32>
    %14 = arith.maximumf %12, %13 : vector<576x26xf32>
    %cst_12 = arith.constant 0.000000e+00 : f32
    %15 = vector.broadcast %cst_12 : f32 to vector<64x52xf32>
    %16 = vector.extract_strided_slice %14 {offsets = [0, 0], sizes = [64, 26], strides = [1, 1]} : vector<576x26xf32> to vector<64x26xf32>
    %c0_13 = arith.constant 0 : index
    %c0_14 = arith.constant 0 : index
    %c0_15 = arith.constant 0 : index
    %17 = vector.load %arg6[%c0_13, %c0_14, %c0_15] : memref<9x26x52xf32, #tpu.memory_space<vmem>>, vector<1x26x52xf32>
    %18 = vector.shape_cast %17 : vector<1x26x52xf32> to vector<26x52xf32>
    %cst_16 = arith.constant dense<0.000000e+00> : vector<64x52xf32>
    %19 = tpu.matmul %16, %18, %cst_16 {dimension_numbers = #tpu.dot_dimension_numbers<[1], [0], [0], [1], [0, 0, 1, 1], [], []>} : vector<64x26xf32>, vector<26x52xf32>, vector<64x52xf32> -> vector<64x52xf32>
    %20 = arith.addf %15, %19 : vector<64x52xf32>
    %21 = vector.extract_strided_slice %14 {offsets = [64, 0], sizes = [64, 26], strides = [1, 1]} : vector<576x26xf32> to vector<64x26xf32>
    %c1 = arith.constant 1 : index
    %c0_17 = arith.constant 0 : index
    %c0_18 = arith.constant 0 : index
    %22 = vector.load %arg6[%c1, %c0_17, %c0_18] : memref<9x26x52xf32, #tpu.memory_space<vmem>>, vector<1x26x52xf32>
    %23 = vector.shape_cast %22 : vector<1x26x52xf32> to vector<26x52xf32>
    %cst_19 = arith.constant dense<0.000000e+00> : vector<64x52xf32>
    %24 = tpu.matmul %21, %23, %cst_19 {dimension_numbers = #tpu.dot_dimension_numbers<[1], [0], [0], [1], [0, 0, 1, 1], [], []>} : vector<64x26xf32>, vector<26x52xf32>, vector<64x52xf32> -> vector<64x52xf32>
    %25 = arith.addf %20, %24 : vector<64x52xf32>
    %26 = vector.extract_strided_slice %14 {offsets = [128, 0], sizes = [64, 26], strides = [1, 1]} : vector<576x26xf32> to vector<64x26xf32>
    %c2 = arith.constant 2 : index
    %c0_20 = arith.constant 0 : index
    %c0_21 = arith.constant 0 : index
    %27 = vector.load %arg6[%c2, %c0_20, %c0_21] : memref<9x26x52xf32, #tpu.memory_space<vmem>>, vector<1x26x52xf32>
    %28 = vector.shape_cast %27 : vector<1x26x52xf32> to vector<26x52xf32>
    %cst_22 = arith.constant dense<0.000000e+00> : vector<64x52xf32>
    %29 = tpu.matmul %26, %28, %cst_22 {dimension_numbers = #tpu.dot_dimension_numbers<[1], [0], [0], [1], [0, 0, 1, 1], [], []>} : vector<64x26xf32>, vector<26x52xf32>, vector<64x52xf32> -> vector<64x52xf32>
    %30 = arith.addf %25, %29 : vector<64x52xf32>
    %31 = vector.extract_strided_slice %14 {offsets = [192, 0], sizes = [64, 26], strides = [1, 1]} : vector<576x26xf32> to vector<64x26xf32>
    %c3 = arith.constant 3 : index
    %c0_23 = arith.constant 0 : index
    %c0_24 = arith.constant 0 : index
    %32 = vector.load %arg6[%c3, %c0_23, %c0_24] : memref<9x26x52xf32, #tpu.memory_space<vmem>>, vector<1x26x52xf32>
    %33 = vector.shape_cast %32 : vector<1x26x52xf32> to vector<26x52xf32>
    %cst_25 = arith.constant dense<0.000000e+00> : vector<64x52xf32>
    %34 = tpu.matmul %31, %33, %cst_25 {dimension_numbers = #tpu.dot_dimension_numbers<[1], [0], [0], [1], [0, 0, 1, 1], [], []>} : vector<64x26xf32>, vector<26x52xf32>, vector<64x52xf32> -> vector<64x52xf32>
    %35 = arith.addf %30, %34 : vector<64x52xf32>
    %36 = vector.extract_strided_slice %14 {offsets = [256, 0], sizes = [64, 26], strides = [1, 1]} : vector<576x26xf32> to vector<64x26xf32>
    %c4 = arith.constant 4 : index
    %c0_26 = arith.constant 0 : index
    %c0_27 = arith.constant 0 : index
    %37 = vector.load %arg6[%c4, %c0_26, %c0_27] : memref<9x26x52xf32, #tpu.memory_space<vmem>>, vector<1x26x52xf32>
    %38 = vector.shape_cast %37 : vector<1x26x52xf32> to vector<26x52xf32>
    %cst_28 = arith.constant dense<0.000000e+00> : vector<64x52xf32>
    %39 = tpu.matmul %36, %38, %cst_28 {dimension_numbers = #tpu.dot_dimension_numbers<[1], [0], [0], [1], [0, 0, 1, 1], [], []>} : vector<64x26xf32>, vector<26x52xf32>, vector<64x52xf32> -> vector<64x52xf32>
    %40 = arith.addf %35, %39 : vector<64x52xf32>
    %41 = vector.extract_strided_slice %14 {offsets = [320, 0], sizes = [64, 26], strides = [1, 1]} : vector<576x26xf32> to vector<64x26xf32>
    %c5 = arith.constant 5 : index
    %c0_29 = arith.constant 0 : index
    %c0_30 = arith.constant 0 : index
    %42 = vector.load %arg6[%c5, %c0_29, %c0_30] : memref<9x26x52xf32, #tpu.memory_space<vmem>>, vector<1x26x52xf32>
    %43 = vector.shape_cast %42 : vector<1x26x52xf32> to vector<26x52xf32>
    %cst_31 = arith.constant dense<0.000000e+00> : vector<64x52xf32>
    %44 = tpu.matmul %41, %43, %cst_31 {dimension_numbers = #tpu.dot_dimension_numbers<[1], [0], [0], [1], [0, 0, 1, 1], [], []>} : vector<64x26xf32>, vector<26x52xf32>, vector<64x52xf32> -> vector<64x52xf32>
    %45 = arith.addf %40, %44 : vector<64x52xf32>
    %46 = vector.extract_strided_slice %14 {offsets = [384, 0], sizes = [64, 26], strides = [1, 1]} : vector<576x26xf32> to vector<64x26xf32>
    %c6 = arith.constant 6 : index
    %c0_32 = arith.constant 0 : index
    %c0_33 = arith.constant 0 : index
    %47 = vector.load %arg6[%c6, %c0_32, %c0_33] : memref<9x26x52xf32, #tpu.memory_space<vmem>>, vector<1x26x52xf32>
    %48 = vector.shape_cast %47 : vector<1x26x52xf32> to vector<26x52xf32>
    %cst_34 = arith.constant dense<0.000000e+00> : vector<64x52xf32>
    %49 = tpu.matmul %46, %48, %cst_34 {dimension_numbers = #tpu.dot_dimension_numbers<[1], [0], [0], [1], [0, 0, 1, 1], [], []>} : vector<64x26xf32>, vector<26x52xf32>, vector<64x52xf32> -> vector<64x52xf32>
    %50 = arith.addf %45, %49 : vector<64x52xf32>
    %51 = vector.extract_strided_slice %14 {offsets = [448, 0], sizes = [64, 26], strides = [1, 1]} : vector<576x26xf32> to vector<64x26xf32>
    %c7 = arith.constant 7 : index
    %c0_35 = arith.constant 0 : index
    %c0_36 = arith.constant 0 : index
    %52 = vector.load %arg6[%c7, %c0_35, %c0_36] : memref<9x26x52xf32, #tpu.memory_space<vmem>>, vector<1x26x52xf32>
    %53 = vector.shape_cast %52 : vector<1x26x52xf32> to vector<26x52xf32>
    %cst_37 = arith.constant dense<0.000000e+00> : vector<64x52xf32>
    %54 = tpu.matmul %51, %53, %cst_37 {dimension_numbers = #tpu.dot_dimension_numbers<[1], [0], [0], [1], [0, 0, 1, 1], [], []>} : vector<64x26xf32>, vector<26x52xf32>, vector<64x52xf32> -> vector<64x52xf32>
    %55 = arith.addf %50, %54 : vector<64x52xf32>
    %56 = vector.extract_strided_slice %14 {offsets = [512, 0], sizes = [64, 26], strides = [1, 1]} : vector<576x26xf32> to vector<64x26xf32>
    %c8 = arith.constant 8 : index
    %c0_38 = arith.constant 0 : index
    %c0_39 = arith.constant 0 : index
    %57 = vector.load %arg6[%c8, %c0_38, %c0_39] : memref<9x26x52xf32, #tpu.memory_space<vmem>>, vector<1x26x52xf32>
    %58 = vector.shape_cast %57 : vector<1x26x52xf32> to vector<26x52xf32>
    %cst_40 = arith.constant dense<0.000000e+00> : vector<64x52xf32>
    %59 = tpu.matmul %56, %58, %cst_40 {dimension_numbers = #tpu.dot_dimension_numbers<[1], [0], [0], [1], [0, 0, 1, 1], [], []>} : vector<64x26xf32>, vector<26x52xf32>, vector<64x52xf32> -> vector<64x52xf32>
    %60 = arith.addf %55, %59 : vector<64x52xf32>
    %c0_41 = arith.constant 0 : index
    %c0_42 = arith.constant 0 : index
    %61 = vector.load %arg7[%c0_41, %c0_42] : memref<1x52xf32, #tpu.memory_space<vmem>>, vector<1x52xf32>
    %62 = vector.broadcast %61 : vector<1x52xf32> to vector<64x52xf32>
    %63 = arith.addf %60, %62 : vector<64x52xf32>
    %cst_43 = arith.constant 0.000000e+00 : f32
    %64 = vector.broadcast %cst_43 : f32 to vector<64x52xf32>
    %65 = arith.maximumf %63, %64 : vector<64x52xf32>
    %c0_44 = arith.constant 0 : index
    %c0_45 = arith.constant 0 : index
    %66 = vector.load %arg8[%c0_44, %c0_45] : memref<52x128xf32, #tpu.memory_space<vmem>>, vector<52x128xf32>
    %cst_46 = arith.constant dense<0.000000e+00> : vector<64x128xf32>
    %67 = tpu.matmul %65, %66, %cst_46 {dimension_numbers = #tpu.dot_dimension_numbers<[1], [0], [0], [1], [0, 0, 1, 1], [], []>} : vector<64x52xf32>, vector<52x128xf32>, vector<64x128xf32> -> vector<64x128xf32>
    %c0_47 = arith.constant 0 : index
    %c0_48 = arith.constant 0 : index
    %68 = vector.load %arg10[%c0_47, %c0_48] : memref<1x128xf32, #tpu.memory_space<vmem>>, vector<1x128xf32>
    %69 = vector.broadcast %68 : vector<1x128xf32> to vector<64x128xf32>
    %70 = arith.addf %67, %69 : vector<64x128xf32>
    %c0_49 = arith.constant 0 : index
    %c0_50 = arith.constant 0 : index
    %71 = vector.load %arg11[%c0_49, %c0_50] : memref<8x32xf32, #tpu.memory_space<vmem>>, vector<8x32xf32>
    %c0_51 = arith.constant 0 : index
    %c0_52 = arith.constant 0 : index
    %72 = vector.load %arg12[%c0_51, %c0_52] : memref<8x32xf32, #tpu.memory_space<vmem>>, vector<8x32xf32>
    %c0_53 = arith.constant 0 : index
    %c0_54 = arith.constant 0 : index
    %73 = vector.load %arg9[%c0_53, %c0_54] : memref<32x128xf32, #tpu.memory_space<vmem>>, vector<32x128xf32>
    %74 = vector.extract_strided_slice %70 {offsets = [0, 0], sizes = [8, 128], strides = [1, 1]} : vector<64x128xf32> to vector<8x128xf32>
    %cst_55 = arith.constant dense<0.000000e+00> : vector<8x128xf32>
    %75 = tpu.matmul %71, %73, %cst_55 {dimension_numbers = #tpu.dot_dimension_numbers<[1], [0], [0], [1], [0, 0, 1, 1], [], []>} : vector<8x32xf32>, vector<32x128xf32>, vector<8x128xf32> -> vector<8x128xf32>
    %76 = arith.addf %74, %75 : vector<8x128xf32>
    %77 = vector.extract_strided_slice %76 {offsets = [0, 0], sizes = [8, 32], strides = [1, 1]} : vector<8x128xf32> to vector<8x32xf32>
    %78 = arith.negf %77 : vector<8x32xf32>
    %79 = math.exp %78 : vector<8x32xf32>
    %cst_56 = arith.constant 1.000000e+00 : f32
    %80 = vector.broadcast %cst_56 : f32 to vector<8x32xf32>
    %81 = arith.addf %80, %79 : vector<8x32xf32>
    %82 = arith.divf %80, %81 : vector<8x32xf32>
    %83 = vector.extract_strided_slice %76 {offsets = [0, 32], sizes = [8, 32], strides = [1, 1]} : vector<8x128xf32> to vector<8x32xf32>
    %84 = arith.negf %83 : vector<8x32xf32>
    %85 = math.exp %84 : vector<8x32xf32>
    %cst_57 = arith.constant 1.000000e+00 : f32
    %86 = vector.broadcast %cst_57 : f32 to vector<8x32xf32>
    %87 = arith.addf %86, %85 : vector<8x32xf32>
    %88 = arith.divf %86, %87 : vector<8x32xf32>
    %89 = vector.extract_strided_slice %76 {offsets = [0, 64], sizes = [8, 32], strides = [1, 1]} : vector<8x128xf32> to vector<8x32xf32>
    %90 = math.tanh %89 : vector<8x32xf32>
    %91 = vector.extract_strided_slice %76 {offsets = [0, 96], sizes = [8, 32], strides = [1, 1]} : vector<8x128xf32> to vector<8x32xf32>
    %92 = arith.negf %91 : vector<8x32xf32>
    %93 = math.exp %92 : vector<8x32xf32>
    %cst_58 = arith.constant 1.000000e+00 : f32
    %94 = vector.broadcast %cst_58 : f32 to vector<8x32xf32>
    %95 = arith.addf %94, %93 : vector<8x32xf32>
    %96 = arith.divf %94, %95 : vector<8x32xf32>
    %97 = arith.mulf %88, %72 : vector<8x32xf32>
    %98 = arith.mulf %82, %90 : vector<8x32xf32>
    %99 = arith.addf %97, %98 : vector<8x32xf32>
    %100 = math.tanh %99 : vector<8x32xf32>
    %101 = arith.mulf %96, %100 : vector<8x32xf32>
    %102 = vector.extract_strided_slice %70 {offsets = [8, 0], sizes = [8, 128], strides = [1, 1]} : vector<64x128xf32> to vector<8x128xf32>
    %cst_59 = arith.constant dense<0.000000e+00> : vector<8x128xf32>
    %103 = tpu.matmul %101, %73, %cst_59 {dimension_numbers = #tpu.dot_dimension_numbers<[1], [0], [0], [1], [0, 0, 1, 1], [], []>} : vector<8x32xf32>, vector<32x128xf32>, vector<8x128xf32> -> vector<8x128xf32>
    %104 = arith.addf %102, %103 : vector<8x128xf32>
    %105 = vector.extract_strided_slice %104 {offsets = [0, 0], sizes = [8, 32], strides = [1, 1]} : vector<8x128xf32> to vector<8x32xf32>
    %106 = arith.negf %105 : vector<8x32xf32>
    %107 = math.exp %106 : vector<8x32xf32>
    %cst_60 = arith.constant 1.000000e+00 : f32
    %108 = vector.broadcast %cst_60 : f32 to vector<8x32xf32>
    %109 = arith.addf %108, %107 : vector<8x32xf32>
    %110 = arith.divf %108, %109 : vector<8x32xf32>
    %111 = vector.extract_strided_slice %104 {offsets = [0, 32], sizes = [8, 32], strides = [1, 1]} : vector<8x128xf32> to vector<8x32xf32>
    %112 = arith.negf %111 : vector<8x32xf32>
    %113 = math.exp %112 : vector<8x32xf32>
    %cst_61 = arith.constant 1.000000e+00 : f32
    %114 = vector.broadcast %cst_61 : f32 to vector<8x32xf32>
    %115 = arith.addf %114, %113 : vector<8x32xf32>
    %116 = arith.divf %114, %115 : vector<8x32xf32>
    %117 = vector.extract_strided_slice %104 {offsets = [0, 64], sizes = [8, 32], strides = [1, 1]} : vector<8x128xf32> to vector<8x32xf32>
    %118 = math.tanh %117 : vector<8x32xf32>
    %119 = vector.extract_strided_slice %104 {offsets = [0, 96], sizes = [8, 32], strides = [1, 1]} : vector<8x128xf32> to vector<8x32xf32>
    %120 = arith.negf %119 : vector<8x32xf32>
    %121 = math.exp %120 : vector<8x32xf32>
    %cst_62 = arith.constant 1.000000e+00 : f32
    %122 = vector.broadcast %cst_62 : f32 to vector<8x32xf32>
    %123 = arith.addf %122, %121 : vector<8x32xf32>
    %124 = arith.divf %122, %123 : vector<8x32xf32>
    %125 = arith.mulf %116, %99 : vector<8x32xf32>
    %126 = arith.mulf %110, %118 : vector<8x32xf32>
    %127 = arith.addf %125, %126 : vector<8x32xf32>
    %128 = math.tanh %127 : vector<8x32xf32>
    %129 = arith.mulf %124, %128 : vector<8x32xf32>
    %130 = vector.extract_strided_slice %70 {offsets = [16, 0], sizes = [8, 128], strides = [1, 1]} : vector<64x128xf32> to vector<8x128xf32>
    %cst_63 = arith.constant dense<0.000000e+00> : vector<8x128xf32>
    %131 = tpu.matmul %129, %73, %cst_63 {dimension_numbers = #tpu.dot_dimension_numbers<[1], [0], [0], [1], [0, 0, 1, 1], [], []>} : vector<8x32xf32>, vector<32x128xf32>, vector<8x128xf32> -> vector<8x128xf32>
    %132 = arith.addf %130, %131 : vector<8x128xf32>
    %133 = vector.extract_strided_slice %132 {offsets = [0, 0], sizes = [8, 32], strides = [1, 1]} : vector<8x128xf32> to vector<8x32xf32>
    %134 = arith.negf %133 : vector<8x32xf32>
    %135 = math.exp %134 : vector<8x32xf32>
    %cst_64 = arith.constant 1.000000e+00 : f32
    %136 = vector.broadcast %cst_64 : f32 to vector<8x32xf32>
    %137 = arith.addf %136, %135 : vector<8x32xf32>
    %138 = arith.divf %136, %137 : vector<8x32xf32>
    %139 = vector.extract_strided_slice %132 {offsets = [0, 32], sizes = [8, 32], strides = [1, 1]} : vector<8x128xf32> to vector<8x32xf32>
    %140 = arith.negf %139 : vector<8x32xf32>
    %141 = math.exp %140 : vector<8x32xf32>
    %cst_65 = arith.constant 1.000000e+00 : f32
    %142 = vector.broadcast %cst_65 : f32 to vector<8x32xf32>
    %143 = arith.addf %142, %141 : vector<8x32xf32>
    %144 = arith.divf %142, %143 : vector<8x32xf32>
    %145 = vector.extract_strided_slice %132 {offsets = [0, 64], sizes = [8, 32], strides = [1, 1]} : vector<8x128xf32> to vector<8x32xf32>
    %146 = math.tanh %145 : vector<8x32xf32>
    %147 = vector.extract_strided_slice %132 {offsets = [0, 96], sizes = [8, 32], strides = [1, 1]} : vector<8x128xf32> to vector<8x32xf32>
    %148 = arith.negf %147 : vector<8x32xf32>
    %149 = math.exp %148 : vector<8x32xf32>
    %cst_66 = arith.constant 1.000000e+00 : f32
    %150 = vector.broadcast %cst_66 : f32 to vector<8x32xf32>
    %151 = arith.addf %150, %149 : vector<8x32xf32>
    %152 = arith.divf %150, %151 : vector<8x32xf32>
    %153 = arith.mulf %144, %127 : vector<8x32xf32>
    %154 = arith.mulf %138, %146 : vector<8x32xf32>
    %155 = arith.addf %153, %154 : vector<8x32xf32>
    %156 = math.tanh %155 : vector<8x32xf32>
    %157 = arith.mulf %152, %156 : vector<8x32xf32>
    %158 = vector.extract_strided_slice %70 {offsets = [24, 0], sizes = [8, 128], strides = [1, 1]} : vector<64x128xf32> to vector<8x128xf32>
    %cst_67 = arith.constant dense<0.000000e+00> : vector<8x128xf32>
    %159 = tpu.matmul %157, %73, %cst_67 {dimension_numbers = #tpu.dot_dimension_numbers<[1], [0], [0], [1], [0, 0, 1, 1], [], []>} : vector<8x32xf32>, vector<32x128xf32>, vector<8x128xf32> -> vector<8x128xf32>
    %160 = arith.addf %158, %159 : vector<8x128xf32>
    %161 = vector.extract_strided_slice %160 {offsets = [0, 0], sizes = [8, 32], strides = [1, 1]} : vector<8x128xf32> to vector<8x32xf32>
    %162 = arith.negf %161 : vector<8x32xf32>
    %163 = math.exp %162 : vector<8x32xf32>
    %cst_68 = arith.constant 1.000000e+00 : f32
    %164 = vector.broadcast %cst_68 : f32 to vector<8x32xf32>
    %165 = arith.addf %164, %163 : vector<8x32xf32>
    %166 = arith.divf %164, %165 : vector<8x32xf32>
    %167 = vector.extract_strided_slice %160 {offsets = [0, 32], sizes = [8, 32], strides = [1, 1]} : vector<8x128xf32> to vector<8x32xf32>
    %168 = arith.negf %167 : vector<8x32xf32>
    %169 = math.exp %168 : vector<8x32xf32>
    %cst_69 = arith.constant 1.000000e+00 : f32
    %170 = vector.broadcast %cst_69 : f32 to vector<8x32xf32>
    %171 = arith.addf %170, %169 : vector<8x32xf32>
    %172 = arith.divf %170, %171 : vector<8x32xf32>
    %173 = vector.extract_strided_slice %160 {offsets = [0, 64], sizes = [8, 32], strides = [1, 1]} : vector<8x128xf32> to vector<8x32xf32>
    %174 = math.tanh %173 : vector<8x32xf32>
    %175 = vector.extract_strided_slice %160 {offsets = [0, 96], sizes = [8, 32], strides = [1, 1]} : vector<8x128xf32> to vector<8x32xf32>
    %176 = arith.negf %175 : vector<8x32xf32>
    %177 = math.exp %176 : vector<8x32xf32>
    %cst_70 = arith.constant 1.000000e+00 : f32
    %178 = vector.broadcast %cst_70 : f32 to vector<8x32xf32>
    %179 = arith.addf %178, %177 : vector<8x32xf32>
    %180 = arith.divf %178, %179 : vector<8x32xf32>
    %181 = arith.mulf %172, %155 : vector<8x32xf32>
    %182 = arith.mulf %166, %174 : vector<8x32xf32>
    %183 = arith.addf %181, %182 : vector<8x32xf32>
    %184 = math.tanh %183 : vector<8x32xf32>
    %185 = arith.mulf %180, %184 : vector<8x32xf32>
    %186 = vector.extract_strided_slice %70 {offsets = [32, 0], sizes = [8, 128], strides = [1, 1]} : vector<64x128xf32> to vector<8x128xf32>
    %cst_71 = arith.constant dense<0.000000e+00> : vector<8x128xf32>
    %187 = tpu.matmul %185, %73, %cst_71 {dimension_numbers = #tpu.dot_dimension_numbers<[1], [0], [0], [1], [0, 0, 1, 1], [], []>} : vector<8x32xf32>, vector<32x128xf32>, vector<8x128xf32> -> vector<8x128xf32>
    %188 = arith.addf %186, %187 : vector<8x128xf32>
    %189 = vector.extract_strided_slice %188 {offsets = [0, 0], sizes = [8, 32], strides = [1, 1]} : vector<8x128xf32> to vector<8x32xf32>
    %190 = arith.negf %189 : vector<8x32xf32>
    %191 = math.exp %190 : vector<8x32xf32>
    %cst_72 = arith.constant 1.000000e+00 : f32
    %192 = vector.broadcast %cst_72 : f32 to vector<8x32xf32>
    %193 = arith.addf %192, %191 : vector<8x32xf32>
    %194 = arith.divf %192, %193 : vector<8x32xf32>
    %195 = vector.extract_strided_slice %188 {offsets = [0, 32], sizes = [8, 32], strides = [1, 1]} : vector<8x128xf32> to vector<8x32xf32>
    %196 = arith.negf %195 : vector<8x32xf32>
    %197 = math.exp %196 : vector<8x32xf32>
    %cst_73 = arith.constant 1.000000e+00 : f32
    %198 = vector.broadcast %cst_73 : f32 to vector<8x32xf32>
    %199 = arith.addf %198, %197 : vector<8x32xf32>
    %200 = arith.divf %198, %199 : vector<8x32xf32>
    %201 = vector.extract_strided_slice %188 {offsets = [0, 64], sizes = [8, 32], strides = [1, 1]} : vector<8x128xf32> to vector<8x32xf32>
    %202 = math.tanh %201 : vector<8x32xf32>
    %203 = vector.extract_strided_slice %188 {offsets = [0, 96], sizes = [8, 32], strides = [1, 1]} : vector<8x128xf32> to vector<8x32xf32>
    %204 = arith.negf %203 : vector<8x32xf32>
    %205 = math.exp %204 : vector<8x32xf32>
    %cst_74 = arith.constant 1.000000e+00 : f32
    %206 = vector.broadcast %cst_74 : f32 to vector<8x32xf32>
    %207 = arith.addf %206, %205 : vector<8x32xf32>
    %208 = arith.divf %206, %207 : vector<8x32xf32>
    %209 = arith.mulf %200, %183 : vector<8x32xf32>
    %210 = arith.mulf %194, %202 : vector<8x32xf32>
    %211 = arith.addf %209, %210 : vector<8x32xf32>
    %212 = math.tanh %211 : vector<8x32xf32>
    %213 = arith.mulf %208, %212 : vector<8x32xf32>
    %214 = vector.extract_strided_slice %70 {offsets = [40, 0], sizes = [8, 128], strides = [1, 1]} : vector<64x128xf32> to vector<8x128xf32>
    %cst_75 = arith.constant dense<0.000000e+00> : vector<8x128xf32>
    %215 = tpu.matmul %213, %73, %cst_75 {dimension_numbers = #tpu.dot_dimension_numbers<[1], [0], [0], [1], [0, 0, 1, 1], [], []>} : vector<8x32xf32>, vector<32x128xf32>, vector<8x128xf32> -> vector<8x128xf32>
    %216 = arith.addf %214, %215 : vector<8x128xf32>
    %217 = vector.extract_strided_slice %216 {offsets = [0, 0], sizes = [8, 32], strides = [1, 1]} : vector<8x128xf32> to vector<8x32xf32>
    %218 = arith.negf %217 : vector<8x32xf32>
    %219 = math.exp %218 : vector<8x32xf32>
    %cst_76 = arith.constant 1.000000e+00 : f32
    %220 = vector.broadcast %cst_76 : f32 to vector<8x32xf32>
    %221 = arith.addf %220, %219 : vector<8x32xf32>
    %222 = arith.divf %220, %221 : vector<8x32xf32>
    %223 = vector.extract_strided_slice %216 {offsets = [0, 32], sizes = [8, 32], strides = [1, 1]} : vector<8x128xf32> to vector<8x32xf32>
    %224 = arith.negf %223 : vector<8x32xf32>
    %225 = math.exp %224 : vector<8x32xf32>
    %cst_77 = arith.constant 1.000000e+00 : f32
    %226 = vector.broadcast %cst_77 : f32 to vector<8x32xf32>
    %227 = arith.addf %226, %225 : vector<8x32xf32>
    %228 = arith.divf %226, %227 : vector<8x32xf32>
    %229 = vector.extract_strided_slice %216 {offsets = [0, 64], sizes = [8, 32], strides = [1, 1]} : vector<8x128xf32> to vector<8x32xf32>
    %230 = math.tanh %229 : vector<8x32xf32>
    %231 = vector.extract_strided_slice %216 {offsets = [0, 96], sizes = [8, 32], strides = [1, 1]} : vector<8x128xf32> to vector<8x32xf32>
    %232 = arith.negf %231 : vector<8x32xf32>
    %233 = math.exp %232 : vector<8x32xf32>
    %cst_78 = arith.constant 1.000000e+00 : f32
    %234 = vector.broadcast %cst_78 : f32 to vector<8x32xf32>
    %235 = arith.addf %234, %233 : vector<8x32xf32>
    %236 = arith.divf %234, %235 : vector<8x32xf32>
    %237 = arith.mulf %228, %211 : vector<8x32xf32>
    %238 = arith.mulf %222, %230 : vector<8x32xf32>
    %239 = arith.addf %237, %238 : vector<8x32xf32>
    %240 = math.tanh %239 : vector<8x32xf32>
    %241 = arith.mulf %236, %240 : vector<8x32xf32>
    %242 = vector.extract_strided_slice %70 {offsets = [48, 0], sizes = [8, 128], strides = [1, 1]} : vector<64x128xf32> to vector<8x128xf32>
    %cst_79 = arith.constant dense<0.000000e+00> : vector<8x128xf32>
    %243 = tpu.matmul %241, %73, %cst_79 {dimension_numbers = #tpu.dot_dimension_numbers<[1], [0], [0], [1], [0, 0, 1, 1], [], []>} : vector<8x32xf32>, vector<32x128xf32>, vector<8x128xf32> -> vector<8x128xf32>
    %244 = arith.addf %242, %243 : vector<8x128xf32>
    %245 = vector.extract_strided_slice %244 {offsets = [0, 0], sizes = [8, 32], strides = [1, 1]} : vector<8x128xf32> to vector<8x32xf32>
    %246 = arith.negf %245 : vector<8x32xf32>
    %247 = math.exp %246 : vector<8x32xf32>
    %cst_80 = arith.constant 1.000000e+00 : f32
    %248 = vector.broadcast %cst_80 : f32 to vector<8x32xf32>
    %249 = arith.addf %248, %247 : vector<8x32xf32>
    %250 = arith.divf %248, %249 : vector<8x32xf32>
    %251 = vector.extract_strided_slice %244 {offsets = [0, 32], sizes = [8, 32], strides = [1, 1]} : vector<8x128xf32> to vector<8x32xf32>
    %252 = arith.negf %251 : vector<8x32xf32>
    %253 = math.exp %252 : vector<8x32xf32>
    %cst_81 = arith.constant 1.000000e+00 : f32
    %254 = vector.broadcast %cst_81 : f32 to vector<8x32xf32>
    %255 = arith.addf %254, %253 : vector<8x32xf32>
    %256 = arith.divf %254, %255 : vector<8x32xf32>
    %257 = vector.extract_strided_slice %244 {offsets = [0, 64], sizes = [8, 32], strides = [1, 1]} : vector<8x128xf32> to vector<8x32xf32>
    %258 = math.tanh %257 : vector<8x32xf32>
    %259 = vector.extract_strided_slice %244 {offsets = [0, 96], sizes = [8, 32], strides = [1, 1]} : vector<8x128xf32> to vector<8x32xf32>
    %260 = arith.negf %259 : vector<8x32xf32>
    %261 = math.exp %260 : vector<8x32xf32>
    %cst_82 = arith.constant 1.000000e+00 : f32
    %262 = vector.broadcast %cst_82 : f32 to vector<8x32xf32>
    %263 = arith.addf %262, %261 : vector<8x32xf32>
    %264 = arith.divf %262, %263 : vector<8x32xf32>
    %265 = arith.mulf %256, %239 : vector<8x32xf32>
    %266 = arith.mulf %250, %258 : vector<8x32xf32>
    %267 = arith.addf %265, %266 : vector<8x32xf32>
    %268 = math.tanh %267 : vector<8x32xf32>
    %269 = arith.mulf %264, %268 : vector<8x32xf32>
    %270 = vector.extract_strided_slice %70 {offsets = [56, 0], sizes = [8, 128], strides = [1, 1]} : vector<64x128xf32> to vector<8x128xf32>
    %cst_83 = arith.constant dense<0.000000e+00> : vector<8x128xf32>
    %271 = tpu.matmul %269, %73, %cst_83 {dimension_numbers = #tpu.dot_dimension_numbers<[1], [0], [0], [1], [0, 0, 1, 1], [], []>} : vector<8x32xf32>, vector<32x128xf32>, vector<8x128xf32> -> vector<8x128xf32>
    %272 = arith.addf %270, %271 : vector<8x128xf32>
    %273 = vector.extract_strided_slice %272 {offsets = [0, 0], sizes = [8, 32], strides = [1, 1]} : vector<8x128xf32> to vector<8x32xf32>
    %274 = arith.negf %273 : vector<8x32xf32>
    %275 = math.exp %274 : vector<8x32xf32>
    %cst_84 = arith.constant 1.000000e+00 : f32
    %276 = vector.broadcast %cst_84 : f32 to vector<8x32xf32>
    %277 = arith.addf %276, %275 : vector<8x32xf32>
    %278 = arith.divf %276, %277 : vector<8x32xf32>
    %279 = vector.extract_strided_slice %272 {offsets = [0, 32], sizes = [8, 32], strides = [1, 1]} : vector<8x128xf32> to vector<8x32xf32>
    %280 = arith.negf %279 : vector<8x32xf32>
    %281 = math.exp %280 : vector<8x32xf32>
    %cst_85 = arith.constant 1.000000e+00 : f32
    %282 = vector.broadcast %cst_85 : f32 to vector<8x32xf32>
    %283 = arith.addf %282, %281 : vector<8x32xf32>
    %284 = arith.divf %282, %283 : vector<8x32xf32>
    %285 = vector.extract_strided_slice %272 {offsets = [0, 64], sizes = [8, 32], strides = [1, 1]} : vector<8x128xf32> to vector<8x32xf32>
    %286 = math.tanh %285 : vector<8x32xf32>
    %287 = vector.extract_strided_slice %272 {offsets = [0, 96], sizes = [8, 32], strides = [1, 1]} : vector<8x128xf32> to vector<8x32xf32>
    %288 = arith.negf %287 : vector<8x32xf32>
    %289 = math.exp %288 : vector<8x32xf32>
    %cst_86 = arith.constant 1.000000e+00 : f32
    %290 = vector.broadcast %cst_86 : f32 to vector<8x32xf32>
    %291 = arith.addf %290, %289 : vector<8x32xf32>
    %292 = arith.divf %290, %291 : vector<8x32xf32>
    %293 = arith.mulf %284, %267 : vector<8x32xf32>
    %294 = arith.mulf %278, %286 : vector<8x32xf32>
    %295 = arith.addf %293, %294 : vector<8x32xf32>
    %296 = math.tanh %295 : vector<8x32xf32>
    %297 = arith.mulf %292, %296 : vector<8x32xf32>
    %c0_87 = arith.constant 0 : index
    %c0_88 = arith.constant 0 : index
    %298 = vector.load %arg13[%c0_87, %c0_88] : memref<8x32xf32, #tpu.memory_space<vmem>>, vector<8x32xf32>
    tpu.vector_store %arg13[%c0_87, %c0_88], %297 {strides = array<i32>} : memref<8x32xf32, #tpu.memory_space<vmem>>, vector<8x32xf32>,
    %c0_89 = arith.constant 0 : index
    %c0_90 = arith.constant 0 : index
    %299 = vector.load %arg14[%c0_89, %c0_90] : memref<8x32xf32, #tpu.memory_space<vmem>>, vector<8x32xf32>
    tpu.vector_store %arg14[%c0_89, %c0_90], %295 {strides = array<i32>} : memref<8x32xf32, #tpu.memory_space<vmem>>, vector<8x32xf32>,
    return
  }
  func.func @transform_0(%arg0: i32) -> (i32, i32) {
    %c0_i32 = arith.constant 0 : i32
    %c0_i32_0 = arith.constant 0 : i32
    %c0_i32_1 = arith.constant 0 : i32
    return %c0_i32, %c0_i32_0 : i32, i32
  }
  func.func @transform_1(%arg0: i32) -> (i32, i32) {
    %c0_i32 = arith.constant 0 : i32
    %c0_i32_0 = arith.constant 0 : i32
    %c0_i32_1 = arith.constant 0 : i32
    return %c0_i32, %c0_i32_0 : i32, i32
  }
  func.func @transform_2(%arg0: i32) -> (i32, i32) {
    %c0_i32 = arith.constant 0 : i32
    %c0_i32_0 = arith.constant 0 : i32
    %c0_i32_1 = arith.constant 0 : i32
    return %c0_i32, %c0_i32_0 : i32, i32
  }
  func.func @transform_3(%arg0: i32) -> (i32, i32) {
    %c0_i32 = arith.constant 0 : i32
    %c0_i32_0 = arith.constant 0 : i32
    %c0_i32_1 = arith.constant 0 : i32
    return %c0_i32, %c0_i32_0 : i32, i32
  }
  func.func @transform_4(%arg0: i32) -> (i32, i32) {
    %c0_i32 = arith.constant 0 : i32
    %c0_i32_0 = arith.constant 0 : i32
    %c0_i32_1 = arith.constant 0 : i32
    return %c0_i32, %c0_i32_0 : i32, i32
  }
  func.func @transform_5(%arg0: i32) -> (i32, i32, i32) {
    %c0_i32 = arith.constant 0 : i32
    %c0_i32_0 = arith.constant 0 : i32
    %c0_i32_1 = arith.constant 0 : i32
    %c0_i32_2 = arith.constant 0 : i32
    return %c0_i32, %c0_i32_0, %c0_i32_1 : i32, i32, i32
  }
  func.func @transform_6(%arg0: i32) -> (i32, i32) {
    %c0_i32 = arith.constant 0 : i32
    %c0_i32_0 = arith.constant 0 : i32
    %c0_i32_1 = arith.constant 0 : i32
    return %c0_i32, %c0_i32_0 : i32, i32
  }
  func.func @transform_7(%arg0: i32) -> (i32, i32) {
    %c0_i32 = arith.constant 0 : i32
    %c0_i32_0 = arith.constant 0 : i32
    %c0_i32_1 = arith.constant 0 : i32
    return %c0_i32, %c0_i32_0 : i32, i32
  }
  func.func @transform_8(%arg0: i32) -> (i32, i32) {
    %c0_i32 = arith.constant 0 : i32
    %c0_i32_0 = arith.constant 0 : i32
    %c0_i32_1 = arith.constant 0 : i32
    return %c0_i32, %c0_i32_0 : i32, i32
  }
  func.func @transform_9(%arg0: i32) -> (i32, i32) {
    %c0_i32 = arith.constant 0 : i32
    %c0_i32_0 = arith.constant 0 : i32
    %c0_i32_1 = arith.constant 0 : i32
    return %c0_i32, %c0_i32_0 : i32, i32
  }
  func.func @transform_10(%arg0: i32) -> (i32, i32) {
    %c0_i32 = arith.constant 0 : i32
    %c0_i32_0 = arith.constant 0 : i32
    %c0_i32_1 = arith.constant 0 : i32
    return %c0_i32, %c0_i32_0 : i32, i32
  }
  func.func @transform_11(%arg0: i32) -> (i32, i32) {
    %c0_i32 = arith.constant 0 : i32
    %c0_i32_0 = arith.constant 0 : i32
    %c0_i32_1 = arith.constant 0 : i32
    return %c0_i32, %c0_i32_0 : i32, i32
  }
  func.func @transform_12(%arg0: i32) -> (i32, i32) {
    %c0_i32 = arith.constant 0 : i32
    %c0_i32_0 = arith.constant 0 : i32
    %c0_i32_1 = arith.constant 0 : i32
    return %c0_i32, %c0_i32_0 : i32, i32
  }
  func.func @transform_13(%arg0: i32) -> (i32, i32) {
    %c0_i32 = arith.constant 0 : i32
    %c0_i32_0 = arith.constant 0 : i32
    %c0_i32_1 = arith.constant 0 : i32
    return %c0_i32, %c0_i32_0 : i32, i32
  }
}

</mosaic_0001>

<bundles_post_ra>
// kernel: tile.9
= control target key start
LH: loop header
LB: loop body
LE: loop exit
PB: predicated region body
PF: predicated region fallthrough
CT: control target
= control target key end

     0   :  { %s77_s10 = smov 104   ;;  %s78_s11 = smov 78   ;;  %vm3_vm0 = vcmask 105472   ;;  %vm9_vm1 = vcmask 958272   ;;  %vm15_vm2 = vcmask 851672   ;;  %vm21_vm3 = vcmask 745072   ;;  %s125_s0 = inlined_call_operand.vmem [shape: f32[9,13], index: 0, kind: input, shape index: {}]   ;;  %s126_s1 = inlined_call_operand.vmem [shape: f32[1,117], index: 1, kind: output, shape index: {}]  }
   0x1   :  { %v61_v0 = vld [vmem:[%s125_s0 + $0x8] sm:$0x1]   ;;  %v63_v1 = vld [vmem:[%s125_s0 + $0x6] sm:$0x1]   ;;  %v62_v2 = vld [vmem:[%s125_s0 + $0x7] sm:$0x1]  }
   0x2   :  { %7 = vrot.lane.b32.xlu0 %v61_v0, %s77_s10  ;;  %19 = vrot.lane.b32.xlu1 %v63_v1, %s78_s11  ;;  %v64_v3 = vld [vmem:[%s125_s0 + $0x5] sm:$0x1]   ;;  %v2_v4 = vld [vmem:[%s125_s0] sm:$0x1]   ;;  %s79_s18 = smov 91   ;;  %s80_s19 = smov 65  }
   0x3   :  { %4 = vst.msk [vmem:[#allocation0] sm:$0x1] %vm3_vm0, %v2_v4   ;;  %v65_v5 = vld [vmem:[%s125_s0 + $0x4] sm:$0x1]   ;;  %v66_v6 = vld [vmem:[%s125_s0 + $0x3] sm:$0x1]  }
   0x4   :  { %s81_s24 = smov 52   ;;  %s82_s25 = smov 39   ;;  %v67_v7 = vld [vmem:[%s125_s0 + $0x2] sm:$0x1]   ;;  %v68_v8 = vld [vmem:[%s125_s0 + $0x1] sm:$0x1]  }
   0x5   :  { %s83_s0 = smov 26   ;;  %s84_s30 = smov 13   ;;  %vm27_vm4 = vcmask 638472   ;;  %vm33_vm5 = vcmask 531872   ;;  %vm39_vm6 = vcmask 425272   ;;  %vm45_vm7 = vcmask 318672  }
   0x6   :  { %13 = vrot.lane.b32.xlu0 %v62_v2, %s79_s18  ;;  %25 = vrot.lane.b32.xlu1 %v64_v3, %s80_s19  ;;  %vm51_vm8 = vcmask 212072  }
   0xa   :  { %31 = vrot.lane.b32.xlu0 %v65_v5, %s81_s24  ;;  %37 = vrot.lane.b32.xlu1 %v66_v6, %s82_s25 }
   0xe   :  { %43 = vrot.lane.b32.xlu0 %v67_v7, %s83_s0  ;;  %49 = vrot.lane.b32.xlu1 %v68_v8, %s84_s30 }
  0x74   :  { %v8_v9 = vpop.permute.xlu0 %7   ;;  %v20_v10 = vpop.permute.xlu1 %19  }
  0x75   :  { %10 = vst.msk [vmem:[#allocation0] sm:$0x1] %vm9_vm1, %v8_v9  }
  0x78   :  { %v14_v11 = vpop.permute.xlu0 %13   ;;  %v26_v12 = vpop.permute.xlu1 %25  }
  0x79   :  { %16 = vst.msk [vmem:[#allocation0] sm:$0x1] %vm15_vm2, %v14_v11  }
  0x7a   :  { %22 = vst.msk [vmem:[#allocation0] sm:$0x1] %vm21_vm3, %v20_v10  }
  0x7b   :  { %28 = vst.msk [vmem:[#allocation0] sm:$0x1] %vm27_vm4, %v26_v12  }
  0x7c   :  { %v32_v13 = vpop.permute.xlu0 %31   ;;  %v38_v14 = vpop.permute.xlu1 %37  }
  0x7d   :  { %34 = vst.msk [vmem:[#allocation0] sm:$0x1] %vm33_vm5, %v32_v13  }
  0x7e   :  { %40 = vst.msk [vmem:[#allocation0] sm:$0x1] %vm39_vm6, %v38_v14  }
  0x80   :  { %v44_v15 = vpop.permute.xlu0 %43   ;;  %v50_v16 = vpop.permute.xlu1 %49  }
  0x81   :  { %46 = vst.msk [vmem:[#allocation0] sm:$0x1] %vm45_vm7, %v44_v15  }
  0x82   :  { %52 = vst.msk [vmem:[#allocation0] sm:$0x1] %vm51_vm8, %v50_v16  }
  0x89   :  { %v57_v17 = vld [vmem:[#allocation0] sm:$0x1] }
  0x8a   :  { %60 = vst [vmem:[%s126_s1] sm:$0x1] %v57_v17 }

// kernel: tile.8
= control target key start
LH: loop header
LB: loop body
LE: loop exit
PB: predicated region body
PF: predicated region fallthrough
CT: control target
= control target key end

     0   :  { %s28_s0 = inlined_call_operand.vmem [shape: f32[13], index: 0, kind: input, shape index: {}]   ;;  %s29_s1 = inlined_call_operand.vmem [shape: f32[9,13], index: 1, kind: output, shape index: {}]  }
   0x1   :  { %v4_v0 = vld [vmem:[%s28_s0] ss:$0 sm:$0xff] }
   0x2   :  { %5 = vst [vmem:[%s29_s1] sm:$0xff] %v4_v0  ;;  %8 = vst [vmem:[%s29_s1 + $0x8] sm:$0xff] %v4_v0 }

// kernel: cnn_lstm_forward.1
= control target key start
LH: loop header
LB: loop body
LE: loop exit
PB: predicated region body
PF: predicated region fallthrough
CT: control target
= control target key end

     0   :  { %vm350_vm0 = vcmask 1040384   ;;  %vm133_vm1 = vcmask 662528   ;;  %vm1090_vm2 = vcmask 1044480   ;;  %vm1625_vm3 = vcmask 1041408   ;;  %s5134_s30 = smov 32   ;;  %s6299_s1 = inlined_call_operand.vmem [shape: f32[81,117], index: 1, kind: input, shape index: {}]   ;;  %s6300_s0 = inlined_call_operand.vmem [shape: f32[576,81], index: 0, kind: input, shape index: {}]   ;;  %s6301_s3 = inlined_call_operand.vmem [shape: f32[117,26], index: 3, kind: input, shape index: {}]   ;;  %s6302_s2 = inlined_call_operand.vmem [shape: f32[1,117], index: 2, kind: input, shape index: {}]   ;;  %s6303_s5 = inlined_call_operand.vmem [shape: f32[9,26,52], index: 5, kind: input, shape index: {}]   ;;  %s6304_s4 = inlined_call_operand.vmem [shape: f32[1,26], index: 4, kind: input, shape index: {}]   ;;  %s6305_s7 = inlined_call_operand.vmem [shape: f32[52,128], index: 7, kind: input, shape index: {}]   ;;  %s6306_s8 = inlined_call_operand.vmem [shape: f32[32,128], index: 8, kind: input, shape index: {}]   ;;  %s6307_s10 = inlined_call_operand.vmem [shape: f32[8,32], index: 10, kind: input, shape index: {}]   ;;  %s6308_s6 = inlined_call_operand.vmem [shape: f32[1,52], index: 6, kind: input, shape index: {}]   ;;  %s6309_s9 = inlined_call_operand.vmem [shape: f32[1,128], index: 9, kind: input, shape index: {}]   ;;  %s6310_s11 = inlined_call_operand.vmem [shape: f32[8,32], index: 11, kind: input, shape index: {}]   ;;  %s6311_s13 = inlined_call_operand.vmem [shape: f32[8,32], index: 13, kind: output, shape index: {1}]   ;;  %s6312_s12 = inlined_call_operand.vmem [shape: f32[8,32], index: 12, kind: output, shape index: {0}]  }
   0x1   :  { %v125_v0 = vld [vmem:[%s6299_s1 + $0x50] sm:$0x1]  ;;  %v124_v1 = vld [vmem:[%s6299_s1 + $0x48] sm:$0xff]  ;;  %v123_v2 = vld [vmem:[%s6299_s1 + $0x40] sm:$0xff]  ;;  %vm873_vm4 = vcmask 957440   ;;  %vm1600_vm5 = vcmask 211968  }
   0x2   :  { %4500 = vmatprep.subr.msk.mxu0 %vm350_vm0, %v125_v0  ;;  %v43_v3 = vld [vmem:[%s6300_s0] sm:$0xff]  ;;  %v122_v4 = vld [vmem:[%s6299_s1 + $0x38] sm:$0xff]  ;;  %v121_v5 = vld [vmem:[%s6299_s1 + $0x30] sm:$0xff]  ;;  %vm2943_vm6 = vcmask 1043456   ;;  %vm5132_vm7 = vmmov 0   ;;  %vm3058_vm8 = vcmask 261120  }
   0x3   :  { %4501 = vmatpush3.msk.msra.mxu0 %vm350_vm0, %v125_v0  ;;  %4522 = vmatprep.mubr.msk.f32.mxu0 %vm133_vm1, %v43_v3  ;;  %v120_v6 = vld [vmem:[%s6299_s1 + $0x28] sm:$0xff]  ;;  %v119_v7 = vld [vmem:[%s6299_s1 + $0x20] sm:$0xff]  ;;  %v118_v8 = vld [vmem:[%s6299_s1 + $0x18] sm:$0xff]  ;;  %vm2918_vm9 = vcmask 424960  }
   0x4   :  { %4502 = vmatprep.subr.mxu0 %v124_v1  ;;  %v117_v9 = vld [vmem:[%s6299_s1 + $0x10] sm:$0xff]  ;;  %v116_v10 = vld [vmem:[%s6299_s1 + $0x8] sm:$0xff]  ;;  %v115_v11 = vld [vmem:[%s6299_s1] sm:$0xff] }
   0x5   :  { %4503 = vmatpush3.msra.mxu0 %v124_v1  ;;  %v44_v12 = vld [vmem:[%s6300_s0 + $0x8] sm:$0xff]  ;;  %v45_v13 = vld [vmem:[%s6300_s0 + $0x10] sm:$0xff]  ;;  %v46_v14 = vld [vmem:[%s6300_s0 + $0x18] sm:$0xff] }
   0x6   :  { %4504 = vmatprep.subr.mxu0 %v123_v2  ;;  %v47_v15 = vld [vmem:[%s6300_s0 + $0x20] sm:$0xff]  ;;  %v48_v16 = vld [vmem:[%s6300_s0 + $0x28] sm:$0xff]  ;;  %v49_v17 = vld [vmem:[%s6300_s0 + $0x30] sm:$0xff] }
   0x7   :  { %4505 = vmatpush3.msra.mxu0 %v123_v2  ;;  %v50_v18 = vld [vmem:[%s6300_s0 + $0x38] sm:$0xff]  ;;  %v51_v19 = vld [vmem:[%s6300_s0 + $0x40] sm:$0xff]  ;;  %v52_v20 = vld [vmem:[%s6300_s0 + $0x48] sm:$0xff] }
   0x8   :  { %4506 = vmatprep.subr.mxu0 %v122_v4  ;;  %v865_v21 = vld [vmem:[%s6301_s3 + $0x70] sm:$0x1f]  ;;  %v864_v22 = vld [vmem:[%s6301_s3 + $0x68] sm:$0xff]  ;;  %v863_v24 = vld [vmem:[%s6301_s3 + $0x60] sm:$0xff] }
   0x9   :  { %4507 = vmatpush3.msra.mxu0 %v122_v4  ;;  %v53_v23 = vld [vmem:[%s6300_s0 + $0x50] sm:$0xff]  ;;  %4630 = vmatprep.subr.msk.mxu1 %vm1090_vm2, %v865_v21  ;;  %v54_v25 = vld [vmem:[%s6300_s0 + $0x58] sm:$0xff]  ;;  %v55_v27 = vld [vmem:[%s6300_s0 + $0x60] sm:$0xff] }
   0xa   :  { %4508 = vmatprep.subr.mxu0 %v121_v5  ;;  %4631 = vmatpush3.msk.msra.mxu1 %vm1090_vm2, %v865_v21  ;;  %v862_v26 = vld [vmem:[%s6301_s3 + $0x58] sm:$0xff]  ;;  %v861_v28 = vld [vmem:[%s6301_s3 + $0x50] sm:$0xff]  ;;  %v56_v29 = vld [vmem:[%s6300_s0 + $0x68] sm:$0xff] }
   0xb   :  { %4509 = vmatpush3.msra.mxu0 %v121_v5  ;;  %4632 = vmatprep.subr.mxu1 %v864_v22  ;;  %v860_v30 = vld [vmem:[%s6301_s3 + $0x48] sm:$0xff]  ;;  %v57_v31 = vld [vmem:[%s6300_s0 + $0x70] sm:$0xff]  ;;  %v859_v32 = vld [vmem:[%s6301_s3 + $0x40] sm:$0xff] }
   0xc   :  { %4510 = vmatprep.subr.mxu0 %v120_v6  ;;  %4633 = vmatpush3.msra.mxu1 %v864_v22  ;;  %v58_v33 = vld [vmem:[%s6300_s0 + $0x78] sm:$0xff]  ;;  %v59_v35 = vld [vmem:[%s6300_s0 + $0x80] sm:$0xff]  ;;  %v857_v36 = vld [vmem:[%s6301_s3 + $0x30] sm:$0xff] }
   0xd   :  { %4511 = vmatpush3.msra.mxu0 %v120_v6  ;;  %4634 = vmatprep.subr.mxu1 %v863_v24  ;;  %v858_v34 = vld [vmem:[%s6301_s3 + $0x38] sm:$0xff]  ;;  %v60_v37 = vld [vmem:[%s6300_s0 + $0x88] sm:$0xff]  ;;  %v61_v39 = vld [vmem:[%s6300_s0 + $0x90] sm:$0xff] }
   0xe   :  { %4512 = vmatprep.subr.mxu0 %v119_v7  ;;  %4635 = vmatpush3.msra.mxu1 %v863_v24  ;;  %v856_v38 = vld [vmem:[%s6301_s3 + $0x28] sm:$0xff]  ;;  %v855_v40 = vld [vmem:[%s6301_s3 + $0x20] sm:$0xff]  ;;  %v62_v41 = vld [vmem:[%s6300_s0 + $0x98] sm:$0xff] }
   0xf   :  { %4513 = vmatpush3.msra.mxu0 %v119_v7  ;;  %4636 = vmatprep.subr.mxu1 %v862_v26  ;;  %v63_v42 = vld [vmem:[%s6300_s0 + $0xa0] sm:$0xff]  ;;  %v64_v43 = vld [vmem:[%s6300_s0 + $0xa8] sm:$0xff]  ;;  %v65_v44 = vld [vmem:[%s6300_s0 + $0xb0] sm:$0xff] }
  0x10   :  { %4514 = vmatprep.subr.mxu0 %v118_v8  ;;  %4637 = vmatpush3.msra.mxu1 %v862_v26  ;;  %v66_v45 = vld [vmem:[%s6300_s0 + $0xb8] sm:$0xff]  ;;  %v67_v46 = vld [vmem:[%s6300_s0 + $0xc0] sm:$0xff]  ;;  %v68_v47 = vld [vmem:[%s6300_s0 + $0xc8] sm:$0xff] }
  0x11   :  { %4515 = vmatpush3.msra.mxu0 %v118_v8  ;;  %4638 = vmatprep.subr.mxu1 %v861_v28  ;;  %v69_v48 = vld [vmem:[%s6300_s0 + $0xd0] sm:$0xff]  ;;  %v70_v49 = vld [vmem:[%s6300_s0 + $0xd8] sm:$0xff]  ;;  %v71_v50 = vld [vmem:[%s6300_s0 + $0xe0] sm:$0xff] }
  0x12   :  { %4516 = vmatprep.subr.mxu0 %v117_v9  ;;  %4639 = vmatpush3.msra.mxu1 %v861_v28  ;;  %v72_v51 = vld [vmem:[%s6300_s0 + $0xe8] sm:$0xff]  ;;  %v73_v52 = vld [vmem:[%s6300_s0 + $0xf0] sm:$0xff]  ;;  %v74_v53 = vld [vmem:[%s6300_s0 + $0xf8] sm:$0xff] }
  0x13   :  { %4517 = vmatpush3.msra.mxu0 %v117_v9  ;;  %4640 = vmatprep.subr.mxu1 %v860_v30  ;;  %v75_v54 = vld [vmem:[%s6300_s0 + $0x100] sm:$0xff]  ;;  %v76_v55 = vld [vmem:[%s6300_s0 + $0x108] sm:$0xff]  ;;  %v77_v56 = vld [vmem:[%s6300_s0 + $0x110] sm:$0xff] }
  0x14   :  { %4518 = vmatprep.subr.mxu0 %v116_v10  ;;  %4641 = vmatpush3.msra.mxu1 %v860_v30  ;;  %v854_v57 = vld [vmem:[%s6301_s3 + $0x18] sm:$0xff]  ;;  %v853_v59 = vld [vmem:[%s6301_s3 + $0x10] sm:$0xff]  ;;  %v79_v60 = vld [vmem:[%s6300_s0 + $0x120] sm:$0xff] }
  0x15   :  { %4519 = vmatpush3.msra.mxu0 %v116_v10  ;;  %4642 = vmatprep.subr.mxu1 %v859_v32  ;;  %v78_v58 = vld [vmem:[%s6300_s0 + $0x118] sm:$0xff]  ;;  %v852_v61 = vld [vmem:[%s6301_s3 + $0x8] sm:$0xff]  ;;  %v851_v63 = vld [vmem:[%s6301_s3] sm:$0xff] }
  0x16   :  { %4520 = vmatprep.subr.mxu0 %v115_v11  ;;  %4643 = vmatpush3.msra.mxu1 %v859_v32  ;;  %v80_v62 = vld [vmem:[%s6300_s0 + $0x128] sm:$0xff]  ;;  %v81_v0 = vld [vmem:[%s6300_s0 + $0x130] sm:$0xff]  ;;  %v82_v1 = vld [vmem:[%s6300_s0 + $0x138] sm:$0xff] }
  0x17   :  { %4521 = vmatpush3.msra.mxu0 %v115_v11  ;;  %4644 = vmatprep.subr.mxu1 %v858_v34  ;;  %v83_v2 = vld [vmem:[%s6300_s0 + $0x140] sm:$0xff]  ;;  %v84_v3 = vld [vmem:[%s6300_s0 + $0x148] sm:$0xff]  ;;  %v85_v4 = vld [vmem:[%s6300_s0 + $0x150] sm:$0xff] }
  0x18   :  { %4523 = vmatmul.mubr.msk.f32.vlgmr.msra.gmra.mxu0 %vm133_vm1, %v44_v12  ;;  %4645 = vmatpush3.msra.mxu1 %v858_v34  ;;  %v86_v5 = vld [vmem:[%s6300_s0 + $0x158] sm:$0xff]  ;;  %v87_v6 = vld [vmem:[%s6300_s0 + $0x160] sm:$0xff]  ;;  %v88_v7 = vld [vmem:[%s6300_s0 + $0x168] sm:$0xff] }
  0x19   :  { %4525 = vmatprep.mubr.msk.f32.mxu0 %vm133_vm1, %v45_v13  ;;  %4646 = vmatprep.subr.mxu1 %v857_v36  ;;  %v89_v8 = vld [vmem:[%s6300_s0 + $0x170] sm:$0xff]  ;;  %v90_v9 = vld [vmem:[%s6300_s0 + $0x178] sm:$0xff]  ;;  %v91_v10 = vld [vmem:[%s6300_s0 + $0x180] sm:$0xff] }
  0x1a   :  { %4647 = vmatpush3.msra.mxu1 %v857_v36  ;;  %v92_v11 = vld [vmem:[%s6300_s0 + $0x188] sm:$0xff]  ;;  %v93_v12 = vld [vmem:[%s6300_s0 + $0x190] sm:$0xff]  ;;  %v94_v13 = vld [vmem:[%s6300_s0 + $0x198] sm:$0xff] }
  0x1b   :  { %4648 = vmatprep.subr.mxu1 %v856_v38  ;;  %v102_v21 = vld [vmem:[%s6300_s0 + $0x1d8] sm:$0xff]  ;;  %v103_v22 = vld [vmem:[%s6300_s0 + $0x1e0] sm:$0xff]  ;;  %v105_v24 = vld [vmem:[%s6300_s0 + $0x1f0] sm:$0xff] }
  0x1c   :  { %4526 = vmatmul.mubr.msk.f32.gmra.mxu0 %vm133_vm1, %v46_v14  ;;  %4649 = vmatpush3.msra.mxu1 %v856_v38  ;;  %v95_v14 = vld [vmem:[%s6300_s0 + $0x1a0] sm:$0xff]  ;;  %v109_v28 = vld [vmem:[%s6300_s0 + $0x210] sm:$0xff]  ;;  %v4030_v38 = vld [vmem:[%s6303_s5 + $0x38] sm:$0x3] }
  0x1d   :  { %4528 = vmatprep.mubr.msk.f32.mxu0 %vm133_vm1, %v47_v15  ;;  %4650 = vmatprep.subr.mxu1 %v855_v40  ;;  %v96_v15 = vld [vmem:[%s6300_s0 + $0x1a8] sm:$0xff]  ;;  %v107_v26 = vld [vmem:[%s6300_s0 + $0x200] sm:$0xff]  ;;  %v113_v32 = vld [vmem:[%s6300_s0 + $0x230] sm:$0xff] }
  0x1e   :  { %4651 = vmatpush3.msra.mxu1 %v855_v40  ;;  %v111_v30 = vld [vmem:[%s6300_s0 + $0x220] sm:$0xff]  ;;  %4768 = vmatprep.subr.msk.mxu0 %vm1625_vm3, %v4030_v38 }
  0x1f   :  { %4652 = vmatprep.subr.mxu1 %v854_v57  ;;  %v5575_v34 = vld [vmem:[%s6302_s2] ss:$0 sm:$0xff]  ;;  %4769 = vmatpush3.msk.msra.mxu0 %vm1625_vm3, %v4030_v38 }
  0x20   :  { %4529 = vmatmul.mubr.msk.f32.gmra.mxu0 %vm133_vm1, %v48_v16  ;;  %4653 = vmatpush3.msra.mxu1 %v854_v57  ;;  %v97_v16 = vld [vmem:[%s6300_s0 + $0x1b0] sm:$0xff] }
  0x21   :  { %4531 = vmatprep.mubr.msk.f32.mxu0 %vm133_vm1, %v49_v17  ;;  %4654 = vmatprep.subr.mxu1 %v853_v59  ;;  %v98_v17 = vld [vmem:[%s6300_s0 + $0x1b8] sm:$0xff] }
  0x22   :  { %4655 = vmatpush3.msra.mxu1 %v853_v59 }
  0x23   :  { %4656 = vmatprep.subr.mxu1 %v852_v61 }
  0x24   :  { %4532 = vmatmul.mubr.msk.f32.gmra.mxu0 %vm133_vm1, %v50_v18  ;;  %4657 = vmatpush3.msra.mxu1 %v852_v61  ;;  %v99_v18 = vld [vmem:[%s6300_s0 + $0x1c0] sm:$0xff] }
  0x25   :  { %4534 = vmatprep.mubr.msk.f32.mxu0 %vm133_vm1, %v51_v19  ;;  %4658 = vmatprep.subr.mxu1 %v851_v63  ;;  %v100_v19 = vld [vmem:[%s6300_s0 + $0x1c8] sm:$0xff] }
  0x26   :  { %4659 = vmatpush3.msra.mxu1 %v851_v63 }
  0x28   :  { %4535 = vmatmul.mubr.msk.f32.gmra.mxu0 %vm133_vm1, %v52_v20  ;;  %v101_v20 = vld [vmem:[%s6300_s0 + $0x1d0] sm:$0xff] }
  0x29   :  { %4537 = vmatprep.mubr.msk.f32.mxu0 %vm133_vm1, %v53_v23  ;;  %v104_v23 = vld [vmem:[%s6300_s0 + $0x1e8] sm:$0xff] }
  0x2c   :  { %4538 = vmatmul.mubr.msk.f32.gmra.mxu0 %vm133_vm1, %v54_v25  ;;  %v106_v25 = vld [vmem:[%s6300_s0 + $0x1f8] sm:$0xff] }
  0x2d   :  { %4540 = vmatprep.mubr.msk.f32.mxu0 %vm133_vm1, %v55_v27  ;;  %v108_v27 = vld [vmem:[%s6300_s0 + $0x208] sm:$0xff] }
  0x30   :  { %4541 = vmatmul.mubr.msk.f32.gmra.mxu0 %vm133_vm1, %v56_v29  ;;  %v110_v29 = vld [vmem:[%s6300_s0 + $0x218] sm:$0xff] }
  0x31   :  { %4543 = vmatprep.mubr.msk.f32.mxu0 %vm133_vm1, %v57_v31  ;;  %v112_v31 = vld [vmem:[%s6300_s0 + $0x228] sm:$0xff] }
  0x34   :  { %4544 = vmatmul.mubr.msk.f32.gmra.mxu0 %vm133_vm1, %v58_v33  ;;  %v114_v33 = vld [vmem:[%s6300_s0 + $0x238] sm:$0xff] }
  0x35   :  { %4546 = vmatprep.mubr.msk.f32.mxu0 %vm133_vm1, %v59_v35 }
  0x38   :  { %4547 = vmatmul.mubr.msk.f32.gmra.mxu0 %vm133_vm1, %v60_v37 }
  0x39   :  { %4549 = vmatprep.mubr.msk.f32.mxu0 %vm133_vm1, %v61_v39 }
  0x3c   :  { %4550 = vmatmul.mubr.msk.f32.gmra.mxu0 %vm133_vm1, %v62_v41 }
  0x3d   :  { %4552 = vmatprep.mubr.msk.f32.mxu0 %vm133_vm1, %v63_v42 }
  0x40   :  { %4553 = vmatmul.mubr.msk.f32.gmra.mxu0 %vm133_vm1, %v64_v43 }
  0x41   :  { %4555 = vmatprep.mubr.msk.f32.mxu0 %vm133_vm1, %v65_v44 }
  0x44   :  { %4556 = vmatmul.mubr.msk.f32.gmra.mxu0 %vm133_vm1, %v66_v45 }
  0x45   :  { %4558 = vmatprep.mubr.msk.f32.mxu0 %vm133_vm1, %v67_v46 }
  0x48   :  { %4559 = vmatmul.mubr.msk.f32.gmra.mxu0 %vm133_vm1, %v68_v47 }
  0x49   :  { %4561 = vmatprep.mubr.msk.f32.mxu0 %vm133_vm1, %v69_v48 }
  0x4c   :  { %4562 = vmatmul.mubr.msk.f32.gmra.mxu0 %vm133_vm1, %v70_v49 }
  0x4d   :  { %4564 = vmatprep.mubr.msk.f32.mxu0 %vm133_vm1, %v71_v50 }
  0x50   :  { %4565 = vmatmul.mubr.msk.f32.gmra.mxu0 %vm133_vm1, %v72_v51 }
  0x51   :  { %4567 = vmatprep.mubr.msk.f32.mxu0 %vm133_vm1, %v73_v52 }
  0x54   :  { %4568 = vmatmul.mubr.msk.f32.gmra.mxu0 %vm133_vm1, %v74_v53 }
  0x55   :  { %4570 = vmatprep.mubr.msk.f32.mxu0 %vm133_vm1, %v75_v54 }
  0x58   :  { %4571 = vmatmul.mubr.msk.f32.gmra.mxu0 %vm133_vm1, %v76_v55 }
  0x59   :  { %4573 = vmatprep.mubr.msk.f32.mxu0 %vm133_vm1, %v77_v56 }
  0x5c   :  { %4574 = vmatmul.mubr.msk.f32.gmra.mxu0 %vm133_vm1, %v78_v58  ;;  %v1594_v58 = vld [vmem:[%s6303_s5 + $0x18] sm:$0x3] }
  0x5d   :  { %4576 = vmatprep.mubr.msk.f32.mxu0 %vm133_vm1, %v79_v60  ;;  %4788 = vmatprep.subr.msk.mxu1 %vm1625_vm3, %v1594_v58 }
  0x60   :  { %4577 = vmatmul.mubr.msk.f32.gmra.mxu0 %vm133_vm1, %v80_v62 }
  0x61   :  { %4579 = vmatprep.mubr.msk.f32.mxu0 %vm133_vm1, %v81_v0 }
  0x64   :  { %4580 = vmatmul.mubr.msk.f32.gmra.mxu0 %vm133_vm1, %v82_v1 }
  0x65   :  { %4582 = vmatprep.mubr.msk.f32.mxu0 %vm133_vm1, %v83_v2  ;;  %v4029_v2 = vld [vmem:[%s6303_s5 + $0x30] sm:$0xff] }
  0x66   :  { %4770 = vmatprep.subr.mxu0 %v4029_v2 }
  0x67   :  { %4771 = vmatpush3.msra.mxu0 %v4029_v2 }
  0x68   :  { %4583 = vmatmul.mubr.msk.f32.gmra.mxu0 %vm133_vm1, %v84_v3  ;;  %v1593_v3 = vld [vmem:[%s6303_s5 + $0x10] sm:$0xff] }
  0x69   :  { %4585 = vmatprep.mubr.msk.f32.mxu0 %vm133_vm1, %v85_v4  ;;  %v4028_v4 = vld [vmem:[%s6303_s5 + $0x28] sm:$0xff] }
  0x6a   :  { %4772 = vmatprep.subr.mxu0 %v4028_v4 }
  0x6b   :  { %4773 = vmatpush3.msra.mxu0 %v4028_v4 }
  0x6c   :  { %4586 = vmatmul.mubr.msk.f32.gmra.mxu0 %vm133_vm1, %v86_v5 }
  0x6d   :  { %4588 = vmatprep.mubr.msk.f32.mxu0 %vm133_vm1, %v87_v6 }
  0x70   :  { %4589 = vmatmul.mubr.msk.f32.gmra.mxu0 %vm133_vm1, %v88_v7 }
  0x71   :  { %4591 = vmatprep.mubr.msk.f32.mxu0 %vm133_vm1, %v89_v8 }
  0x74   :  { %4592 = vmatmul.mubr.msk.f32.gmra.mxu0 %vm133_vm1, %v90_v9 }
  0x75   :  { %4594 = vmatprep.mubr.msk.f32.mxu0 %vm133_vm1, %v91_v10 }
  0x78   :  { %4595 = vmatmul.mubr.msk.f32.gmra.mxu0 %vm133_vm1, %v92_v11 }
  0x79   :  { %4597 = vmatprep.mubr.msk.f32.mxu0 %vm133_vm1, %v93_v12 }
  0x7c   :  { %4598 = vmatmul.mubr.msk.f32.gmra.mxu0 %vm133_vm1, %v94_v13 }
  0x7d   :  { %4600 = vmatprep.mubr.msk.f32.mxu0 %vm133_vm1, %v95_v14 }
  0x80   :  { %4601 = vmatmul.mubr.msk.f32.gmra.mxu0 %vm133_vm1, %v96_v15 }
  0x81   :  { %4603 = vmatprep.mubr.msk.f32.mxu0 %vm133_vm1, %v97_v16 }
  0x84   :  { %4604 = vmatmul.mubr.msk.f32.gmra.mxu0 %vm133_vm1, %v98_v17 }
  0x85   :  { %4606 = vmatprep.mubr.msk.f32.mxu0 %vm133_vm1, %v99_v18 }
  0x88   :  { %4607 = vmatmul.mubr.msk.f32.gmra.mxu0 %vm133_vm1, %v100_v19 }
  0x89   :  { %4609 = vmatprep.mubr.msk.f32.mxu0 %vm133_vm1, %v101_v20 }
  0x8c   :  { %4610 = vmatmul.mubr.msk.f32.gmra.mxu0 %vm133_vm1, %v102_v21 }
  0x8d   :  { %4612 = vmatprep.mubr.msk.f32.mxu0 %vm133_vm1, %v103_v22 }
  0x90   :  { %4613 = vmatmul.mubr.msk.f32.gmra.mxu0 %vm133_vm1, %v104_v23 }
  0x91   :  { %4615 = vmatprep.mubr.msk.f32.mxu0 %vm133_vm1, %v105_v24 }
  0x94   :  { %4616 = vmatmul.mubr.msk.f32.gmra.mxu0 %vm133_vm1, %v106_v25 }
  0x95   :  { %4618 = vmatprep.mubr.msk.f32.mxu0 %vm133_vm1, %v107_v26 }
  0x98   :  { %4619 = vmatmul.mubr.msk.f32.gmra.mxu0 %vm133_vm1, %v108_v27 }
  0x99   :  { %4621 = vmatprep.mubr.msk.f32.mxu0 %vm133_vm1, %v109_v28 }
  0x9c   :  { %4622 = vmatmul.mubr.msk.f32.gmra.mxu0 %vm133_vm1, %v110_v29 }
  0x9d   :  { %4624 = vmatprep.mubr.msk.f32.mxu0 %vm133_vm1, %v111_v30 }
  0xa0   :  { %4625 = vmatmul.mubr.msk.f32.gmra.mxu0 %vm133_vm1, %v112_v31 }
  0xa1   :  { %4627 = vmatprep.mubr.msk.f32.mxu0 %vm133_vm1, %v113_v32 }
  0xa4   :  { %4628 = vmatmul.mubr.msk.f32.gmra.mxu0 %vm133_vm1, %v114_v33 }
  0xd8   :  { %v4524_v35 = vpop.f32.mrf.mxu0 }
  0xd9   :  { %v426_v36 = vadd.f32 %v4524_v35, %v5575_v34 }
  0xda   :  { %v420_v37 = vpop.f32.mrf.mxu0 }
  0xdb   :  { %v421_v39 = vadd.f32 %v5575_v34, %v420_v37  ;;  %v780_v42 = vmax.f32 %v426_v36, 0.0 }
  0xdc   :  { %v4527_v40 = vpop.f32.mrf.mxu0 }
  0xdd   :  { %v779_v41 = vmax.f32 %v421_v39, 0.0  ;;  %v436_v43 = vadd.f32 %v4527_v40, %v5575_v34 }
  0xde   :  { %v430_v44 = vpop.f32.mrf.mxu0 }
  0xdf   :  { %v431_v45 = vadd.f32 %v5575_v34, %v430_v44  ;;  %4660 = vmatprep.mubr.msk.f32.mxu1 %vm873_vm4, %v779_v41  ;;  %v782_v48 = vmax.f32 %v436_v43, 0.0 }
  0xe0   :  { %v4530_v46 = vpop.f32.mrf.mxu0  ;;  %4661 = vmatmul.mubr.msk.f32.vlgmr.msra.gmra.mxu1 %vm873_vm4, %v780_v42 }
  0xe1   :  { %v781_v47 = vmax.f32 %v431_v45, 0.0  ;;  %v446_v49 = vadd.f32 %v4530_v46, %v5575_v34  ;;  %4789 = vmatpush3.msk.msra.mxu1 %vm1625_vm3, %v1594_v58 }
  0xe2   :  { %v440_v50 = vpop.f32.mrf.mxu0  ;;  %4790 = vmatprep.subr.mxu1 %v1593_v3 }
  0xe3   :  { %v441_v51 = vadd.f32 %v5575_v34, %v440_v50  ;;  %4663 = vmatprep.mubr.msk.f32.mxu1 %vm873_vm4, %v781_v47  ;;  %v784_v54 = vmax.f32 %v446_v49, 0.0  ;;  %4791 = vmatpush3.msra.mxu1 %v1593_v3 }
  0xe4   :  { %v4533_v52 = vpop.f32.mrf.mxu0  ;;  %4664 = vmatmul.mubr.msk.f32.gmra.mxu1 %vm873_vm4, %v782_v48 }
  0xe5   :  { %v783_v53 = vmax.f32 %v441_v51, 0.0  ;;  %v456_v55 = vadd.f32 %v4533_v52, %v5575_v34 }
  0xe6   :  { %v450_v56 = vpop.f32.mrf.mxu0 }
  0xe7   :  { %v451_v57 = vadd.f32 %v5575_v34, %v450_v56  ;;  %4666 = vmatprep.mubr.msk.f32.mxu1 %vm873_vm4, %v783_v53  ;;  %v786_v61 = vmax.f32 %v456_v55, 0.0 }
  0xe8   :  { %v4536_v59 = vpop.f32.mrf.mxu0  ;;  %4667 = vmatmul.mubr.msk.f32.gmra.mxu1 %vm873_vm4, %v784_v54 }
  0xe9   :  { %v785_v60 = vmax.f32 %v451_v57, 0.0  ;;  %v466_v62 = vadd.f32 %v4536_v59, %v5575_v34 }
  0xea   :  { %v460_v63 = vpop.f32.mrf.mxu0 }
  0xeb   :  { %v461_v0 = vadd.f32 %v5575_v34, %v460_v63  ;;  %4669 = vmatprep.mubr.msk.f32.mxu1 %vm873_vm4, %v785_v60  ;;  %v788_v6 = vmax.f32 %v466_v62, 0.0 }
  0xec   :  { %v4539_v1 = vpop.f32.mrf.mxu0  ;;  %4670 = vmatmul.mubr.msk.f32.gmra.mxu1 %vm873_vm4, %v786_v61 }
  0xed   :  { %v787_v5 = vmax.f32 %v461_v0, 0.0  ;;  %v476_v7 = vadd.f32 %v4539_v1, %v5575_v34 }
  0xee   :  { %v470_v8 = vpop.f32.mrf.mxu0 }
  0xef   :  { %v471_v9 = vadd.f32 %v5575_v34, %v470_v8  ;;  %4672 = vmatprep.mubr.msk.f32.mxu1 %vm873_vm4, %v787_v5  ;;  %v790_v12 = vmax.f32 %v476_v7, 0.0 }
  0xf0   :  { %v4542_v10 = vpop.f32.mrf.mxu0  ;;  %4673 = vmatmul.mubr.msk.f32.gmra.mxu1 %vm873_vm4, %v788_v6 }
  0xf1   :  { %v789_v11 = vmax.f32 %v471_v9, 0.0  ;;  %v486_v13 = vadd.f32 %v4542_v10, %v5575_v34 }
  0xf2   :  { %v480_v14 = vpop.f32.mrf.mxu0 }
  0xf3   :  { %v481_v15 = vadd.f32 %v5575_v34, %v480_v14  ;;  %4675 = vmatprep.mubr.msk.f32.mxu1 %vm873_vm4, %v789_v11  ;;  %v792_v18 = vmax.f32 %v486_v13, 0.0 }
  0xf4   :  { %v4545_v16 = vpop.f32.mrf.mxu0  ;;  %4676 = vmatmul.mubr.msk.f32.gmra.mxu1 %vm873_vm4, %v790_v12 }
  0xf5   :  { %v791_v17 = vmax.f32 %v481_v15, 0.0  ;;  %v496_v19 = vadd.f32 %v4545_v16, %v5575_v34 }
  0xf6   :  { %v490_v20 = vpop.f32.mrf.mxu0 }
  0xf7   :  { %v491_v21 = vadd.f32 %v5575_v34, %v490_v20  ;;  %4678 = vmatprep.mubr.msk.f32.mxu1 %vm873_vm4, %v791_v17  ;;  %v794_v24 = vmax.f32 %v496_v19, 0.0 }
  0xf8   :  { %v4548_v22 = vpop.f32.mrf.mxu0  ;;  %4679 = vmatmul.mubr.msk.f32.gmra.mxu1 %vm873_vm4, %v792_v18 }
  0xf9   :  { %v793_v23 = vmax.f32 %v491_v21, 0.0  ;;  %v506_v25 = vadd.f32 %v4548_v22, %v5575_v34 }
  0xfa   :  { %v500_v26 = vpop.f32.mrf.mxu0 }
  0xfb   :  { %v501_v27 = vadd.f32 %v5575_v34, %v500_v26  ;;  %4681 = vmatprep.mubr.msk.f32.mxu1 %vm873_vm4, %v793_v23  ;;  %v796_v30 = vmax.f32 %v506_v25, 0.0  ;;  %v1592_v25 = vld [vmem:[%s6303_s5 + $0x8] sm:$0xff] }
  0xfc   :  { %v4551_v28 = vpop.f32.mrf.mxu0  ;;  %4682 = vmatmul.mubr.msk.f32.gmra.mxu1 %vm873_vm4, %v794_v24  ;;  %4792 = vmatprep.subr.mxu1 %v1592_v25 }
  0xfd   :  { %v795_v29 = vmax.f32 %v501_v27, 0.0  ;;  %v516_v31 = vadd.f32 %v4551_v28, %v5575_v34  ;;  %4793 = vmatpush3.msra.mxu1 %v1592_v25  ;;  %v1591_v28 = vld [vmem:[%s6303_s5] sm:$0xff] }
  0xfe   :  { %v510_v32 = vpop.f32.mrf.mxu0  ;;  %4794 = vmatprep.subr.mxu1 %v1591_v28 }
  0xff   :  { %v511_v33 = vadd.f32 %v5575_v34, %v510_v32  ;;  %4684 = vmatprep.mubr.msk.f32.mxu1 %vm873_vm4, %v795_v29  ;;  %v798_v37 = vmax.f32 %v516_v31, 0.0  ;;  %4795 = vmatpush3.msra.mxu1 %v1591_v28 }
 0x100   :  { %v4554_v35 = vpop.f32.mrf.mxu0  ;;  %4685 = vmatmul.mubr.msk.f32.gmra.mxu1 %vm873_vm4, %v796_v30 }
 0x101   :  { %v797_v36 = vmax.f32 %v511_v33, 0.0  ;;  %v526_v38 = vadd.f32 %v4554_v35, %v5575_v34 }
 0x102   :  { %v520_v39 = vpop.f32.mrf.mxu0 }
 0x103   :  { %v521_v40 = vadd.f32 %v5575_v34, %v520_v39  ;;  %4687 = vmatprep.mubr.msk.f32.mxu1 %vm873_vm4, %v797_v36  ;;  %v800_v43 = vmax.f32 %v526_v38, 0.0 }
 0x104   :  { %v4557_v41 = vpop.f32.mrf.mxu0  ;;  %4688 = vmatmul.mubr.msk.f32.gmra.mxu1 %vm873_vm4, %v798_v37 }
 0x105   :  { %v799_v42 = vmax.f32 %v521_v40, 0.0  ;;  %v536_v44 = vadd.f32 %v4557_v41, %v5575_v34 }
 0x106   :  { %v530_v45 = vpop.f32.mrf.mxu0 }
 0x107   :  { %v531_v46 = vadd.f32 %v5575_v34, %v530_v45  ;;  %4690 = vmatprep.mubr.msk.f32.mxu1 %vm873_vm4, %v799_v42  ;;  %v802_v49 = vmax.f32 %v536_v44, 0.0 }
 0x108   :  { %v4560_v47 = vpop.f32.mrf.mxu0  ;;  %4691 = vmatmul.mubr.msk.f32.gmra.mxu1 %vm873_vm4, %v800_v43 }
 0x109   :  { %v801_v48 = vmax.f32 %v531_v46, 0.0  ;;  %v546_v50 = vadd.f32 %v4560_v47, %v5575_v34 }
 0x10a   :  { %v540_v51 = vpop.f32.mrf.mxu0 }
 0x10b   :  { %v541_v52 = vadd.f32 %v5575_v34, %v540_v51  ;;  %4693 = vmatprep.mubr.msk.f32.mxu1 %vm873_vm4, %v801_v48  ;;  %v804_v55 = vmax.f32 %v546_v50, 0.0 }
 0x10c   :  { %v4563_v53 = vpop.f32.mrf.mxu0  ;;  %4694 = vmatmul.mubr.msk.f32.gmra.mxu1 %vm873_vm4, %v802_v49 }
 0x10d   :  { %v803_v54 = vmax.f32 %v541_v52, 0.0  ;;  %v556_v56 = vadd.f32 %v4563_v53, %v5575_v34 }
 0x10e   :  { %v550_v57 = vpop.f32.mrf.mxu0 }
 0x10f   :  { %v551_v58 = vadd.f32 %v5575_v34, %v550_v57  ;;  %4696 = vmatprep.mubr.msk.f32.mxu1 %vm873_vm4, %v803_v54  ;;  %v806_v61 = vmax.f32 %v556_v56, 0.0  ;;  %v4027_v54 = vld [vmem:[%s6303_s5 + $0x20] sm:$0xff] }
 0x110   :  { %v4566_v59 = vpop.f32.mrf.mxu0  ;;  %4697 = vmatmul.mubr.msk.f32.gmra.mxu1 %vm873_vm4, %v804_v55  ;;  %4774 = vmatprep.subr.mxu0 %v4027_v54 }
 0x111   :  { %v805_v60 = vmax.f32 %v551_v58, 0.0  ;;  %v566_v62 = vadd.f32 %v4566_v59, %v5575_v34  ;;  %4775 = vmatpush3.msra.mxu0 %v4027_v54 }
 0x112   :  { %v560_v63 = vpop.f32.mrf.mxu0 }
 0x113   :  { %v561_v0 = vadd.f32 %v5575_v34, %v560_v63  ;;  %4699 = vmatprep.mubr.msk.f32.mxu1 %vm873_vm4, %v805_v60  ;;  %v808_v3 = vmax.f32 %v566_v62, 0.0 }
 0x114   :  { %v4569_v1 = vpop.f32.mrf.mxu0  ;;  %4700 = vmatmul.mubr.msk.f32.gmra.mxu1 %vm873_vm4, %v806_v61 }
 0x115   :  { %v807_v2 = vmax.f32 %v561_v0, 0.0  ;;  %v576_v4 = vadd.f32 %v4569_v1, %v5575_v34 }
 0x116   :  { %v570_v5 = vpop.f32.mrf.mxu0 }
 0x117   :  { %v571_v6 = vadd.f32 %v5575_v34, %v570_v5  ;;  %4702 = vmatprep.mubr.msk.f32.mxu1 %vm873_vm4, %v807_v2  ;;  %v810_v9 = vmax.f32 %v576_v4, 0.0 }
 0x118   :  { %v4572_v7 = vpop.f32.mrf.mxu0  ;;  %4703 = vmatmul.mubr.msk.f32.gmra.mxu1 %vm873_vm4, %v808_v3 }
 0x119   :  { %v809_v8 = vmax.f32 %v571_v6, 0.0  ;;  %v586_v10 = vadd.f32 %v4572_v7, %v5575_v34  ;;  %v5709_v7 = vld [vmem:[%s6303_s5 + $0x58] sm:$0x3] }
 0x11a   :  { %v580_v11 = vpop.f32.mrf.mxu0  ;;  %4808 = vmatprep.subr.msk.mxu0 %vm1625_vm3, %v5709_v7 }
 0x11b   :  { %v581_v12 = vadd.f32 %v5575_v34, %v580_v11  ;;  %4705 = vmatprep.mubr.msk.f32.mxu1 %vm873_vm4, %v809_v8  ;;  %v812_v15 = vmax.f32 %v586_v10, 0.0 }
 0x11c   :  { %v4575_v13 = vpop.f32.mrf.mxu0  ;;  %4706 = vmatmul.mubr.msk.f32.gmra.mxu1 %vm873_vm4, %v810_v9 }
 0x11d   :  { %v811_v14 = vmax.f32 %v581_v12, 0.0  ;;  %v596_v16 = vadd.f32 %v4575_v13, %v5575_v34 }
 0x11e   :  { %v590_v17 = vpop.f32.mrf.mxu0 }
 0x11f   :  { %v591_v18 = vadd.f32 %v5575_v34, %v590_v17  ;;  %4708 = vmatprep.mubr.msk.f32.mxu1 %vm873_vm4, %v811_v14  ;;  %v814_v21 = vmax.f32 %v596_v16, 0.0 }
 0x120   :  { %v4578_v19 = vpop.f32.mrf.mxu0  ;;  %4709 = vmatmul.mubr.msk.f32.gmra.mxu1 %vm873_vm4, %v812_v15 }
 0x121   :  { %v813_v20 = vmax.f32 %v591_v18, 0.0  ;;  %v606_v22 = vadd.f32 %v4578_v19, %v5575_v34 }
 0x122   :  { %v600_v23 = vpop.f32.mrf.mxu0 }
 0x123   :  { %v601_v24 = vadd.f32 %v5575_v34, %v600_v23  ;;  %4711 = vmatprep.mubr.msk.f32.mxu1 %vm873_vm4, %v813_v20  ;;  %v816_v29 = vmax.f32 %v606_v22, 0.0 }
 0x124   :  { %v4581_v26 = vpop.f32.mrf.mxu0  ;;  %4712 = vmatmul.mubr.msk.f32.gmra.mxu1 %vm873_vm4, %v814_v21 }
 0x125   :  { %v815_v27 = vmax.f32 %v601_v24, 0.0  ;;  %v616_v30 = vadd.f32 %v4581_v26, %v5575_v34 }
 0x126   :  { %v610_v31 = vpop.f32.mrf.mxu0 }
 0x127   :  { %v611_v32 = vadd.f32 %v5575_v34, %v610_v31  ;;  %4714 = vmatprep.mubr.msk.f32.mxu1 %vm873_vm4, %v815_v27  ;;  %v818_v36 = vmax.f32 %v616_v30, 0.0 }
 0x128   :  { %v4584_v33 = vpop.f32.mrf.mxu0  ;;  %4715 = vmatmul.mubr.msk.f32.gmra.mxu1 %vm873_vm4, %v816_v29 }
 0x129   :  { %v817_v35 = vmax.f32 %v611_v32, 0.0  ;;  %v626_v37 = vadd.f32 %v4584_v33, %v5575_v34  ;;  %v5732_v32 = vld [vmem:[%s6303_s5 + $0x78] sm:$0x3] }
 0x12a   :  { %v620_v38 = vpop.f32.mrf.mxu0  ;;  %4828 = vmatprep.subr.msk.mxu1 %vm1625_vm3, %v5732_v32 }
 0x12b   :  { %v621_v39 = vadd.f32 %v5575_v34, %v620_v38  ;;  %4717 = vmatprep.mubr.msk.f32.mxu1 %vm873_vm4, %v817_v35  ;;  %v820_v42 = vmax.f32 %v626_v37, 0.0 }
 0x12c   :  { %v4587_v40 = vpop.f32.mrf.mxu0  ;;  %4718 = vmatmul.mubr.msk.f32.gmra.mxu1 %vm873_vm4, %v818_v36 }
 0x12d   :  { %v819_v41 = vmax.f32 %v621_v39, 0.0  ;;  %v636_v43 = vadd.f32 %v4587_v40, %v5575_v34 }
 0x12e   :  { %v630_v44 = vpop.f32.mrf.mxu0 }
 0x12f   :  { %v631_v45 = vadd.f32 %v5575_v34, %v630_v44  ;;  %4720 = vmatprep.mubr.msk.f32.mxu1 %vm873_vm4, %v819_v41  ;;  %v822_v48 = vmax.f32 %v636_v43, 0.0 }
 0x130   :  { %v4590_v46 = vpop.f32.mrf.mxu0  ;;  %4721 = vmatmul.mubr.msk.f32.gmra.mxu1 %vm873_vm4, %v820_v42 }
 0x131   :  { %v821_v47 = vmax.f32 %v631_v45, 0.0  ;;  %v646_v49 = vadd.f32 %v4590_v46, %v5575_v34 }
 0x132   :  { %v640_v50 = vpop.f32.mrf.mxu0 }
 0x133   :  { %v641_v51 = vadd.f32 %v5575_v34, %v640_v50  ;;  %4723 = vmatprep.mubr.msk.f32.mxu1 %vm873_vm4, %v821_v47  ;;  %v824_v55 = vmax.f32 %v646_v49, 0.0 }
 0x134   :  { %v4593_v52 = vpop.f32.mrf.mxu0  ;;  %4724 = vmatmul.mubr.msk.f32.gmra.mxu1 %vm873_vm4, %v822_v48 }
 0x135   :  { %v823_v53 = vmax.f32 %v641_v51, 0.0  ;;  %v656_v56 = vadd.f32 %v4593_v52, %v5575_v34 }
 0x136   :  { %v650_v57 = vpop.f32.mrf.mxu0 }
 0x137   :  { %v651_v58 = vadd.f32 %v5575_v34, %v650_v57  ;;  %4726 = vmatprep.mubr.msk.f32.mxu1 %vm873_vm4, %v823_v53  ;;  %v826_v61 = vmax.f32 %v656_v56, 0.0 }
 0x138   :  { %v4596_v59 = vpop.f32.mrf.mxu0  ;;  %4727 = vmatmul.mubr.msk.f32.gmra.mxu1 %vm873_vm4, %v824_v55 }
 0x139   :  { %v825_v60 = vmax.f32 %v651_v58, 0.0  ;;  %v666_v62 = vadd.f32 %v4596_v59, %v5575_v34 }
 0x13a   :  { %v660_v63 = vpop.f32.mrf.mxu0 }
 0x13b   :  { %v661_v0 = vadd.f32 %v5575_v34, %v660_v63  ;;  %4729 = vmatprep.mubr.msk.f32.mxu1 %vm873_vm4, %v825_v60  ;;  %v828_v3 = vmax.f32 %v666_v62, 0.0 }
 0x13c   :  { %v4599_v1 = vpop.f32.mrf.mxu0  ;;  %4730 = vmatmul.mubr.msk.f32.gmra.mxu1 %vm873_vm4, %v826_v61 }
 0x13d   :  { %v827_v2 = vmax.f32 %v661_v0, 0.0  ;;  %v676_v4 = vadd.f32 %v4599_v1, %v5575_v34 }
 0x13e   :  { %v670_v5 = vpop.f32.mrf.mxu0 }
 0x13f   :  { %v671_v6 = vadd.f32 %v5575_v34, %v670_v5  ;;  %4732 = vmatprep.mubr.msk.f32.mxu1 %vm873_vm4, %v827_v2  ;;  %v830_v10 = vmax.f32 %v676_v4, 0.0 }
 0x140   :  { %v4602_v8 = vpop.f32.mrf.mxu0  ;;  %4733 = vmatmul.mubr.msk.f32.gmra.mxu1 %vm873_vm4, %v828_v3 }
 0x141   :  { %v829_v9 = vmax.f32 %v671_v6, 0.0  ;;  %v686_v11 = vadd.f32 %v4602_v8, %v5575_v34 }
 0x142   :  { %v680_v12 = vpop.f32.mrf.mxu0 }
 0x143   :  { %v681_v13 = vadd.f32 %v5575_v34, %v680_v12  ;;  %4735 = vmatprep.mubr.msk.f32.mxu1 %vm873_vm4, %v829_v9  ;;  %v832_v16 = vmax.f32 %v686_v11, 0.0  ;;  %v5766_v9 = vld [vmem:[%s6304_s4] ss:$0 sm:$0xff] }
 0x144   :  { %v4605_v14 = vpop.f32.mrf.mxu0  ;;  %4736 = vmatmul.mubr.msk.f32.gmra.mxu1 %vm873_vm4, %v830_v10 }
 0x145   :  { %v831_v15 = vmax.f32 %v681_v13, 0.0  ;;  %v696_v17 = vadd.f32 %v4605_v14, %v5575_v34 }
 0x146   :  { %v690_v18 = vpop.f32.mrf.mxu0 }
 0x147   :  { %v691_v19 = vadd.f32 %v5575_v34, %v690_v18  ;;  %4738 = vmatprep.mubr.msk.f32.mxu1 %vm873_vm4, %v831_v15  ;;  %v834_v22 = vmax.f32 %v696_v17, 0.0 }
 0x148   :  { %v4608_v20 = vpop.f32.mrf.mxu0  ;;  %4739 = vmatmul.mubr.msk.f32.gmra.mxu1 %vm873_vm4, %v832_v16 }
 0x149   :  { %v833_v21 = vmax.f32 %v691_v19, 0.0  ;;  %v706_v23 = vadd.f32 %v4608_v20, %v5575_v34  ;;  %v4064_v19 = vld [vmem:[%s6303_s5 + $0x70] sm:$0xff] }
 0x14a   :  { %v700_v24 = vpop.f32.mrf.mxu0 }
 0x14b   :  { %v701_v25 = vadd.f32 %v5575_v34, %v700_v24  ;;  %4741 = vmatprep.mubr.msk.f32.mxu1 %vm873_vm4, %v833_v21  ;;  %v836_v28 = vmax.f32 %v706_v23, 0.0 }
 0x14c   :  { %v4611_v26 = vpop.f32.mrf.mxu0  ;;  %4742 = vmatmul.mubr.msk.f32.gmra.mxu1 %vm873_vm4, %v834_v22  ;;  %v4063_v22 = vld [vmem:[%s6303_s5 + $0x68] sm:$0xff] }
 0x14d   :  { %v835_v27 = vmax.f32 %v701_v25, 0.0  ;;  %v716_v29 = vadd.f32 %v4611_v26, %v5575_v34 }
 0x14e   :  { %v710_v30 = vpop.f32.mrf.mxu0 }
 0x14f   :  { %v711_v31 = vadd.f32 %v5575_v34, %v710_v30  ;;  %4744 = vmatprep.mubr.msk.f32.mxu1 %vm873_vm4, %v835_v27  ;;  %v838_v36 = vmax.f32 %v716_v29, 0.0  ;;  %v4062_v27 = vld [vmem:[%s6303_s5 + $0x60] sm:$0xff]  ;;  %v5792_v30 = vld [vmem:[%s6303_s5 + $0xb8] sm:$0x3] }
 0x150   :  { %v4614_v33 = vpop.f32.mrf.mxu0  ;;  %4745 = vmatmul.mubr.msk.f32.gmra.mxu1 %vm873_vm4, %v836_v28 }
 0x151   :  { %v837_v35 = vmax.f32 %v711_v31, 0.0  ;;  %v726_v37 = vadd.f32 %v4614_v33, %v5575_v34 }
 0x152   :  { %v720_v38 = vpop.f32.mrf.mxu0 }
 0x153   :  { %v721_v39 = vadd.f32 %v5575_v34, %v720_v38  ;;  %4747 = vmatprep.mubr.msk.f32.mxu1 %vm873_vm4, %v837_v35  ;;  %v840_v42 = vmax.f32 %v726_v37, 0.0 }
 0x154   :  { %v4617_v40 = vpop.f32.mrf.mxu0  ;;  %4748 = vmatmul.mubr.msk.f32.gmra.mxu1 %vm873_vm4, %v838_v36 }
 0x155   :  { %v839_v41 = vmax.f32 %v721_v39, 0.0  ;;  %v736_v43 = vadd.f32 %v4617_v40, %v5575_v34 }
 0x156   :  { %v730_v44 = vpop.f32.mrf.mxu0 }
 0x157   :  { %v731_v45 = vadd.f32 %v5575_v34, %v730_v44  ;;  %4750 = vmatprep.mubr.msk.f32.mxu1 %vm873_vm4, %v839_v41  ;;  %v842_v48 = vmax.f32 %v736_v43, 0.0 }
 0x158   :  { %v4620_v46 = vpop.f32.mrf.mxu0  ;;  %4751 = vmatmul.mubr.msk.f32.gmra.mxu1 %vm873_vm4, %v840_v42 }
 0x159   :  { %v841_v47 = vmax.f32 %v731_v45, 0.0  ;;  %v746_v49 = vadd.f32 %v4620_v46, %v5575_v34 }
 0x15a   :  { %v740_v50 = vpop.f32.mrf.mxu0 }
 0x15b   :  { %v741_v51 = vadd.f32 %v5575_v34, %v740_v50  ;;  %4753 = vmatprep.mubr.msk.f32.mxu1 %vm873_vm4, %v841_v47  ;;  %v844_v55 = vmax.f32 %v746_v49, 0.0 }
 0x15c   :  { %v4623_v52 = vpop.f32.mrf.mxu0  ;;  %4754 = vmatmul.mubr.msk.f32.gmra.mxu1 %vm873_vm4, %v842_v48  ;;  %v4051_v48 = vld [vmem:[%s6303_s5 + $0x50] sm:$0xff] }
 0x15d   :  { %v843_v53 = vmax.f32 %v741_v51, 0.0  ;;  %v756_v54 = vadd.f32 %v4623_v52, %v5575_v34  ;;  %v4050_v51 = vld [vmem:[%s6303_s5 + $0x48] sm:$0xff] }
 0x15e   :  { %v750_v56 = vpop.f32.mrf.mxu0 }
 0x15f   :  { %v751_v57 = vadd.f32 %v5575_v34, %v750_v56  ;;  %4756 = vmatprep.mubr.msk.f32.mxu1 %vm873_vm4, %v843_v53  ;;  %v846_v58 = vmax.f32 %v756_v54, 0.0  ;;  %v4049_v56 = vld [vmem:[%s6303_s5 + $0x40] sm:$0xff] }
 0x160   :  { %v4626_v59 = vpop.f32.mrf.mxu0  ;;  %4757 = vmatmul.mubr.msk.f32.gmra.mxu1 %vm873_vm4, %v844_v55 }
 0x161   :  { %v845_v60 = vmax.f32 %v751_v57, 0.0  ;;  %v766_v61 = vadd.f32 %v4626_v59, %v5575_v34 }
 0x162   :  { %v760_v62 = vpop.f32.mrf.mxu0 }
 0x163   :  { %v761_v63 = vadd.f32 %v5575_v34, %v760_v62  ;;  %4759 = vmatprep.mubr.msk.f32.mxu1 %vm873_vm4, %v845_v60  ;;  %v848_v0 = vmax.f32 %v766_v61, 0.0 }
 0x164   :  { %v4629_v1 = vpop.f32.mrf.mxu0  ;;  %4760 = vmatmul.mubr.msk.f32.gmra.mxu1 %vm873_vm4, %v846_v58  ;;  %v4078_v58 = vld [vmem:[%s6303_s5 + $0x98] sm:$0x3] }
 0x165   :  { %v847_v2 = vmax.f32 %v761_v63, 0.0  ;;  %v776_v3 = vadd.f32 %v4629_v1, %v5575_v34 }
 0x166   :  { %v770_v4 = vpop.f32.mrf.mxu0 }
 0x167   :  { %v771_v5 = vadd.f32 %v5575_v34, %v770_v4  ;;  %4762 = vmatprep.mubr.msk.f32.mxu1 %vm873_vm4, %v847_v2  ;;  %v850_v6 = vmax.f32 %v776_v3, 0.0 }
 0x168   :  { %4763 = vmatmul.mubr.msk.f32.gmra.mxu1 %vm873_vm4, %v848_v0 }
 0x169   :  { %v849_v8 = vmax.f32 %v771_v5, 0.0 }
 0x16b   :  { %4765 = vmatprep.mubr.msk.f32.mxu1 %vm873_vm4, %v849_v8 }
 0x16c   :  { %4766 = vmatmul.mubr.msk.f32.gmra.mxu1 %vm873_vm4, %v850_v6 }
 0x1a0   :  { %v4662_v10 = vpop.f32.mrf.mxu1 }
 0x1a1   :  { %v1166_v11 = vadd.f32 %v4662_v10, %v5766_v9 }
 0x1a2   :  { %v1160_v12 = vpop.f32.mrf.mxu1 }
 0x1a3   :  { %v1161_v34 = vadd.f32 %v5766_v9, %v1160_v12  ;;  %v1520_v15 = vmax.f32 %v1166_v11, 0.0 }
 0x1a4   :  { %v4665_v13 = vpop.f32.mrf.mxu1 }
 0x1a5   :  { %v1519_v14 = vmax.f32 %v1161_v34, 0.0  ;;  %v1176_v16 = vadd.f32 %v4665_v13, %v5766_v9  ;;  %v4077_v34 = vld [vmem:[%s6303_s5 + $0x90] sm:$0xff] }
 0x1a6   :  { %v1170_v17 = vpop.f32.mrf.mxu1 }
 0x1a7   :  { %v1171_v18 = vadd.f32 %v5766_v9, %v1170_v17  ;;  %4796 = vmatprep.mubr.msk.f32.mxu1 %vm1600_vm5, %v1519_v14  ;;  %v1522_v23 = vmax.f32 %v1176_v16, 0.0 }
 0x1a8   :  { %v4668_v20 = vpop.f32.mrf.mxu1  ;;  %4797 = vmatmul.mubr.msk.f32.vlgmr.msra.gmra.mxu1 %vm1600_vm5, %v1520_v15  ;;  %v4076_v15 = vld [vmem:[%s6303_s5 + $0x88] sm:$0xff] }
 0x1a9   :  { %v1521_v21 = vmax.f32 %v1171_v18, 0.0  ;;  %4829 = vmatpush3.msk.msra.mxu1 %vm1625_vm3, %v5732_v32  ;;  %v1186_v24 = vadd.f32 %v4668_v20, %v5766_v9  ;;  %v4075_v20 = vld [vmem:[%s6303_s5 + $0x80] sm:$0xff] }
 0x1aa   :  { %v1180_v25 = vpop.f32.mrf.mxu1  ;;  %4830 = vmatprep.subr.mxu1 %v4064_v19 }
 0x1ab   :  { %v1181_v26 = vadd.f32 %v5766_v9, %v1180_v25  ;;  %4799 = vmatprep.mubr.msk.f32.mxu1 %vm1600_vm5, %v1521_v21  ;;  %4831 = vmatpush3.msra.mxu1 %v4064_v19  ;;  %v1524_v31 = vmax.f32 %v1186_v24, 0.0 }
 0x1ac   :  { %v4671_v28 = vpop.f32.mrf.mxu1  ;;  %4800 = vmatmul.mubr.msk.f32.gmra.mxu1 %vm1600_vm5, %v1522_v23  ;;  %4832 = vmatprep.subr.mxu1 %v4063_v22  ;;  %v5856_v23 = vld [vmem:[%s6303_s5 + $0xd8] sm:$0x3] }
 0x1ad   :  { %v1523_v29 = vmax.f32 %v1181_v26, 0.0  ;;  %4833 = vmatpush3.msra.mxu1 %v4063_v22  ;;  %v1196_v32 = vadd.f32 %v4671_v28, %v5766_v9 }
 0x1ae   :  { %v1190_v33 = vpop.f32.mrf.mxu1  ;;  %4834 = vmatprep.subr.mxu1 %v4062_v27 }
 0x1af   :  { %v1191_v35 = vadd.f32 %v5766_v9, %v1190_v33  ;;  %4802 = vmatprep.mubr.msk.f32.mxu1 %vm1600_vm5, %v1523_v29  ;;  %4835 = vmatpush3.msra.mxu1 %v4062_v27  ;;  %v1526_v38 = vmax.f32 %v1196_v32, 0.0 }
 0x1b0   :  { %v4674_v36 = vpop.f32.mrf.mxu1  ;;  %4803 = vmatmul.mubr.msk.f32.gmra.mxu1 %vm1600_vm5, %v1524_v31  ;;  %4868 = vmatprep.subr.msk.mxu1 %vm1625_vm3, %v5792_v30 }
 0x1b1   :  { %v1525_v37 = vmax.f32 %v1191_v35, 0.0  ;;  %v1206_v39 = vadd.f32 %v4674_v36, %v5766_v9 }
 0x1b2   :  { %v1200_v40 = vpop.f32.mrf.mxu1 }
 0x1b3   :  { %v1201_v41 = vadd.f32 %v5766_v9, %v1200_v40  ;;  %4805 = vmatprep.mubr.msk.f32.mxu1 %vm1600_vm5, %v1525_v37  ;;  %v1528_v44 = vmax.f32 %v1206_v39, 0.0 }
 0x1b4   :  { %v4677_v42 = vpop.f32.mrf.mxu1  ;;  %4806 = vmatmul.mubr.msk.f32.gmra.mxu1 %vm1600_vm5, %v1526_v38 }
 0x1b5   :  { %v1527_v43 = vmax.f32 %v1201_v41, 0.0  ;;  %v1216_v45 = vadd.f32 %v4677_v42, %v5766_v9  ;;  %v4090_v42 = vld [vmem:[%s6303_s5 + $0xb0] sm:$0xff] }
 0x1b6   :  { %v1210_v46 = vpop.f32.mrf.mxu1 }
 0x1b7   :  { %v1211_v47 = vadd.f32 %v5766_v9, %v1210_v46  ;;  %4776 = vmatprep.mubr.msk.f32.mxu0 %vm1600_vm5, %v1527_v43  ;;  %v1530_v52 = vmax.f32 %v1216_v45, 0.0  ;;  %v4089_v45 = vld [vmem:[%s6303_s5 + $0xa8] sm:$0xff] }
 0x1b8   :  { %v4680_v49 = vpop.f32.mrf.mxu1  ;;  %4777 = vmatmul.mubr.msk.f32.vlgmr.msra.gmra.mxu0 %vm1600_vm5, %v1528_v44 }
 0x1b9   :  { %v1529_v50 = vmax.f32 %v1211_v47, 0.0  ;;  %4809 = vmatpush3.msk.msra.mxu0 %vm1625_vm3, %v5709_v7  ;;  %v1226_v53 = vadd.f32 %v4680_v49, %v5766_v9 }
 0x1ba   :  { %v1220_v54 = vpop.f32.mrf.mxu1  ;;  %4810 = vmatprep.subr.mxu0 %v4051_v48 }
 0x1bb   :  { %v1221_v55 = vadd.f32 %v5766_v9, %v1220_v54  ;;  %4779 = vmatprep.mubr.msk.f32.mxu0 %vm1600_vm5, %v1529_v50  ;;  %4811 = vmatpush3.msra.mxu0 %v4051_v48  ;;  %v1532_v59 = vmax.f32 %v1226_v53, 0.0  ;;  %v4088_v50 = vld [vmem:[%s6303_s5 + $0xa0] sm:$0xff] }
 0x1bc   :  { %v4683_v57 = vpop.f32.mrf.mxu1  ;;  %4780 = vmatmul.mubr.msk.f32.gmra.mxu0 %vm1600_vm5, %v1530_v52  ;;  %4812 = vmatprep.subr.mxu0 %v4050_v51  ;;  %v5890_v52 = vld [vmem:[%s6303_s5 + $0xf8] sm:$0x3] }
 0x1bd   :  { %v1531_v7 = vmax.f32 %v1221_v55, 0.0  ;;  %4813 = vmatpush3.msra.mxu0 %v4050_v51  ;;  %v1236_v60 = vadd.f32 %v4683_v57, %v5766_v9 }
 0x1be   :  { %v1230_v61 = vpop.f32.mrf.mxu1  ;;  %4814 = vmatprep.subr.mxu0 %v4049_v56 }
 0x1bf   :  { %v1231_v62 = vadd.f32 %v5766_v9, %v1230_v61  ;;  %4782 = vmatprep.mubr.msk.f32.mxu0 %vm1600_vm5, %v1531_v7  ;;  %4815 = vmatpush3.msra.mxu0 %v4049_v56  ;;  %v1534_v1 = vmax.f32 %v1236_v60, 0.0 }
 0x1c0   :  { %v4686_v63 = vpop.f32.mrf.mxu1  ;;  %4783 = vmatmul.mubr.msk.f32.gmra.mxu0 %vm1600_vm5, %v1532_v59  ;;  %4848 = vmatprep.subr.msk.mxu0 %vm1625_vm3, %v4078_v58 }
 0x1c1   :  { %v1533_v0 = vmax.f32 %v1231_v62, 0.0  ;;  %v1246_v2 = vadd.f32 %v4686_v63, %v5766_v9 }
 0x1c2   :  { %v1240_v3 = vpop.f32.mrf.mxu1 }
 0x1c3   :  { %v1241_v4 = vadd.f32 %v5766_v9, %v1240_v3  ;;  %4785 = vmatprep.mubr.msk.f32.mxu0 %vm1600_vm5, %v1533_v0  ;;  %v1536_v8 = vmax.f32 %v1246_v2, 0.0 }
 0x1c4   :  { %v4689_v5 = vpop.f32.mrf.mxu1  ;;  %4786 = vmatmul.mubr.msk.f32.gmra.mxu0 %vm1600_vm5, %v1534_v1 }
 0x1c5   :  { %v1535_v6 = vmax.f32 %v1241_v4, 0.0  ;;  %v1256_v10 = vadd.f32 %v4689_v5, %v5766_v9  ;;  %v4103_v4 = vld [vmem:[%s6303_s5 + $0xd0] sm:$0xff] }
 0x1c6   :  { %v1250_v11 = vpop.f32.mrf.mxu1 }
 0x1c7   :  { %v1251_v12 = vadd.f32 %v5766_v9, %v1250_v11  ;;  %4816 = vmatprep.mubr.msk.f32.mxu0 %vm1600_vm5, %v1535_v6  ;;  %v1538_v16 = vmax.f32 %v1256_v10, 0.0 }
 0x1c8   :  { %v4692_v13 = vpop.f32.mrf.mxu1  ;;  %4817 = vmatmul.mubr.msk.f32.vlgmr.msra.gmra.mxu0 %vm1600_vm5, %v1536_v8  ;;  %v4102_v8 = vld [vmem:[%s6303_s5 + $0xc8] sm:$0xff] }
 0x1c9   :  { %v1537_v14 = vmax.f32 %v1251_v12, 0.0  ;;  %4849 = vmatpush3.msk.msra.mxu0 %vm1625_vm3, %v4078_v58  ;;  %v1266_v17 = vadd.f32 %v4692_v13, %v5766_v9  ;;  %v4101_v13 = vld [vmem:[%s6303_s5 + $0xc0] sm:$0xff] }
 0x1ca   :  { %v1260_v18 = vpop.f32.mrf.mxu1  ;;  %4850 = vmatprep.subr.mxu0 %v4077_v34 }
 0x1cb   :  { %v1261_v19 = vadd.f32 %v5766_v9, %v1260_v18  ;;  %4819 = vmatprep.mubr.msk.f32.mxu0 %vm1600_vm5, %v1537_v14  ;;  %4851 = vmatpush3.msra.mxu0 %v4077_v34  ;;  %v1540_v24 = vmax.f32 %v1266_v17, 0.0 }
 0x1cc   :  { %v4695_v21 = vpop.f32.mrf.mxu1  ;;  %4820 = vmatmul.mubr.msk.f32.gmra.mxu0 %vm1600_vm5, %v1538_v16  ;;  %4852 = vmatprep.subr.mxu0 %v4076_v15  ;;  %v5924_v16 = vld [vmem:[%s6303_s5 + $0x118] sm:$0x3] }
 0x1cd   :  { %v1539_v22 = vmax.f32 %v1261_v19, 0.0  ;;  %4853 = vmatpush3.msra.mxu0 %v4076_v15  ;;  %v1276_v25 = vadd.f32 %v4695_v21, %v5766_v9 }
 0x1ce   :  { %v1270_v26 = vpop.f32.mrf.mxu1  ;;  %4854 = vmatprep.subr.mxu0 %v4075_v20 }
 0x1cf   :  { %v1271_v27 = vadd.f32 %v5766_v9, %v1270_v26  ;;  %4822 = vmatprep.mubr.msk.f32.mxu0 %vm1600_vm5, %v1539_v22  ;;  %4855 = vmatpush3.msra.mxu0 %v4075_v20  ;;  %v1542_v31 = vmax.f32 %v1276_v25, 0.0 }
 0x1d0   :  { %v4698_v28 = vpop.f32.mrf.mxu1  ;;  %4823 = vmatmul.mubr.msk.f32.gmra.mxu0 %vm1600_vm5, %v1540_v24  ;;  %4888 = vmatprep.subr.msk.mxu0 %vm1625_vm3, %v5856_v23 }
 0x1d1   :  { %v1541_v29 = vmax.f32 %v1271_v27, 0.0  ;;  %v1286_v32 = vadd.f32 %v4698_v28, %v5766_v9 }
 0x1d2   :  { %v1280_v33 = vpop.f32.mrf.mxu1 }
 0x1d3   :  { %v1281_v35 = vadd.f32 %v5766_v9, %v1280_v33  ;;  %4825 = vmatprep.mubr.msk.f32.mxu0 %vm1600_vm5, %v1541_v29  ;;  %v1544_v38 = vmax.f32 %v1286_v32, 0.0 }
 0x1d4   :  { %v4701_v36 = vpop.f32.mrf.mxu1  ;;  %4826 = vmatmul.mubr.msk.f32.gmra.mxu0 %vm1600_vm5, %v1542_v31 }
 0x1d5   :  { %v1543_v37 = vmax.f32 %v1281_v35, 0.0  ;;  %v1296_v39 = vadd.f32 %v4701_v36, %v5766_v9  ;;  %v4116_v35 = vld [vmem:[%s6303_s5 + $0xf0] sm:$0xff] }
 0x1d6   :  { %v1290_v40 = vpop.f32.mrf.mxu1 }
 0x1d7   :  { %v1291_v41 = vadd.f32 %v5766_v9, %v1290_v40  ;;  %4836 = vmatprep.mubr.msk.f32.mxu1 %vm1600_vm5, %v1543_v37  ;;  %v1546_v46 = vmax.f32 %v1296_v39, 0.0 }
 0x1d8   :  { %v4704_v43 = vpop.f32.mrf.mxu1  ;;  %4837 = vmatmul.mubr.msk.f32.vlgmr.msra.gmra.mxu1 %vm1600_vm5, %v1544_v38  ;;  %v4115_v38 = vld [vmem:[%s6303_s5 + $0xe8] sm:$0xff] }
 0x1d9   :  { %v1545_v44 = vmax.f32 %v1291_v41, 0.0  ;;  %4869 = vmatpush3.msk.msra.mxu1 %vm1625_vm3, %v5792_v30  ;;  %v1306_v47 = vadd.f32 %v4704_v43, %v5766_v9  ;;  %v4114_v43 = vld [vmem:[%s6303_s5 + $0xe0] sm:$0xff] }
 0x1da   :  { %v1300_v48 = vpop.f32.mrf.mxu1  ;;  %4870 = vmatprep.subr.mxu1 %v4090_v42 }
 0x1db   :  { %v1301_v49 = vadd.f32 %v5766_v9, %v1300_v48  ;;  %4839 = vmatprep.mubr.msk.f32.mxu1 %vm1600_vm5, %v1545_v44  ;;  %4871 = vmatpush3.msra.mxu1 %v4090_v42  ;;  %v1548_v53 = vmax.f32 %v1306_v47, 0.0 }
 0x1dc   :  { %v4707_v51 = vpop.f32.mrf.mxu1  ;;  %4840 = vmatmul.mubr.msk.f32.gmra.mxu1 %vm1600_vm5, %v1546_v46  ;;  %4872 = vmatprep.subr.mxu1 %v4089_v45 }
 0x1dd   :  { %v1547_v30 = vmax.f32 %v1301_v49, 0.0  ;;  %4873 = vmatpush3.msra.mxu1 %v4089_v45  ;;  %v1316_v54 = vadd.f32 %v4707_v51, %v5766_v9 }
 0x1de   :  { %v1310_v55 = vpop.f32.mrf.mxu1  ;;  %4874 = vmatprep.subr.mxu1 %v4088_v50 }
 0x1df   :  { %v1311_v56 = vadd.f32 %v5766_v9, %v1310_v55  ;;  %4842 = vmatprep.mubr.msk.f32.mxu1 %vm1600_vm5, %v1547_v30  ;;  %4875 = vmatpush3.msra.mxu1 %v4088_v50  ;;  %v1550_v58 = vmax.f32 %v1316_v54, 0.0 }
 0x1e0   :  { %v4710_v57 = vpop.f32.mrf.mxu1  ;;  %4843 = vmatmul.mubr.msk.f32.gmra.mxu1 %vm1600_vm5, %v1548_v53  ;;  %4908 = vmatprep.subr.msk.mxu1 %vm1625_vm3, %v5890_v52 }
 0x1e1   :  { %v1549_v7 = vmax.f32 %v1311_v56, 0.0  ;;  %v1326_v59 = vadd.f32 %v4710_v57, %v5766_v9 }
 0x1e2   :  { %v1320_v60 = vpop.f32.mrf.mxu1 }
 0x1e3   :  { %v1321_v61 = vadd.f32 %v5766_v9, %v1320_v60  ;;  %4845 = vmatprep.mubr.msk.f32.mxu1 %vm1600_vm5, %v1549_v7  ;;  %v1552_v0 = vmax.f32 %v1326_v59, 0.0  ;;  %v4129_v60 = vld [vmem:[%s6303_s5 + $0x110] sm:$0xff] }
 0x1e4   :  { %v4713_v62 = vpop.f32.mrf.mxu1  ;;  %4846 = vmatmul.mubr.msk.f32.gmra.mxu1 %vm1600_vm5, %v1550_v58 }
 0x1e5   :  { %v1551_v63 = vmax.f32 %v1321_v61, 0.0  ;;  %v1336_v1 = vadd.f32 %v4713_v62, %v5766_v9 }
 0x1e6   :  { %v1330_v2 = vpop.f32.mrf.mxu1 }
 0x1e7   :  { %v1331_v3 = vadd.f32 %v5766_v9, %v1330_v2  ;;  %4856 = vmatprep.mubr.msk.f32.mxu0 %vm1600_vm5, %v1551_v63  ;;  %v1554_v10 = vmax.f32 %v1336_v1, 0.0  ;;  %v4128_v63 = vld [vmem:[%s6303_s5 + $0x108] sm:$0xff] }
 0x1e8   :  { %v4716_v5 = vpop.f32.mrf.mxu1  ;;  %4857 = vmatmul.mubr.msk.f32.vlgmr.msra.gmra.mxu0 %vm1600_vm5, %v1552_v0 }
 0x1e9   :  { %v1553_v6 = vmax.f32 %v1331_v3, 0.0  ;;  %4889 = vmatpush3.msk.msra.mxu0 %vm1625_vm3, %v5856_v23  ;;  %v1346_v11 = vadd.f32 %v4716_v5, %v5766_v9 }
 0x1ea   :  { %v1340_v12 = vpop.f32.mrf.mxu1  ;;  %4890 = vmatprep.subr.mxu0 %v4103_v4 }
 0x1eb   :  { %v1341_v34 = vadd.f32 %v5766_v9, %v1340_v12  ;;  %4859 = vmatprep.mubr.msk.f32.mxu0 %vm1600_vm5, %v1553_v6  ;;  %4891 = vmatpush3.msra.mxu0 %v4103_v4  ;;  %v1556_v17 = vmax.f32 %v1346_v11, 0.0  ;;  %v4127_v4 = vld [vmem:[%s6303_s5 + $0x100] sm:$0xff] }
 0x1ec   :  { %v4719_v14 = vpop.f32.mrf.mxu1  ;;  %4860 = vmatmul.mubr.msk.f32.gmra.mxu0 %vm1600_vm5, %v1554_v10  ;;  %4892 = vmatprep.subr.mxu0 %v4102_v8 }
 0x1ed   :  { %v1555_v15 = vmax.f32 %v1341_v34, 0.0  ;;  %4893 = vmatpush3.msra.mxu0 %v4102_v8  ;;  %v1356_v18 = vadd.f32 %v4719_v14, %v5766_v9 }
 0x1ee   :  { %v1350_v19 = vpop.f32.mrf.mxu1  ;;  %4894 = vmatprep.subr.mxu0 %v4101_v13 }
 0x1ef   :  { %v1351_v20 = vadd.f32 %v5766_v9, %v1350_v19  ;;  %4862 = vmatprep.mubr.msk.f32.mxu0 %vm1600_vm5, %v1555_v15  ;;  %4895 = vmatpush3.msra.mxu0 %v4101_v13  ;;  %v1558_v23 = vmax.f32 %v1356_v18, 0.0 }
 0x1f0   :  { %v4722_v21 = vpop.f32.mrf.mxu1  ;;  %4863 = vmatmul.mubr.msk.f32.gmra.mxu0 %vm1600_vm5, %v1556_v17  ;;  %4928 = vmatprep.subr.msk.mxu0 %vm1625_vm3, %v5924_v16 }
 0x1f1   :  { %v1557_v22 = vmax.f32 %v1351_v20, 0.0  ;;  %v1366_v24 = vadd.f32 %v4722_v21, %v5766_v9 }
 0x1f2   :  { %v1360_v25 = vpop.f32.mrf.mxu1 }
 0x1f3   :  { %v1361_v26 = vadd.f32 %v5766_v9, %v1360_v25  ;;  %4865 = vmatprep.mubr.msk.f32.mxu0 %vm1600_vm5, %v1557_v22  ;;  %v1560_v29 = vmax.f32 %v1366_v24, 0.0 }
 0x1f4   :  { %v4725_v27 = vpop.f32.mrf.mxu1  ;;  %4866 = vmatmul.mubr.msk.f32.gmra.mxu0 %vm1600_vm5, %v1558_v23 }
 0x1f5   :  { %v1559_v28 = vmax.f32 %v1361_v26, 0.0  ;;  %v1376_v31 = vadd.f32 %v4725_v27, %v5766_v9 }
 0x1f6   :  { %v1370_v32 = vpop.f32.mrf.mxu1 }
 0x1f7   :  { %v1371_v33 = vadd.f32 %v5766_v9, %v1370_v32  ;;  %4876 = vmatprep.mubr.msk.f32.mxu1 %vm1600_vm5, %v1559_v28  ;;  %v1562_v39 = vmax.f32 %v1376_v31, 0.0 }
 0x1f8   :  { %v4728_v36 = vpop.f32.mrf.mxu1  ;;  %4877 = vmatmul.mubr.msk.f32.vlgmr.msra.gmra.mxu1 %vm1600_vm5, %v1560_v29 }
 0x1f9   :  { %v1561_v37 = vmax.f32 %v1371_v33, 0.0  ;;  %4909 = vmatpush3.msk.msra.mxu1 %vm1625_vm3, %v5890_v52  ;;  %v1386_v40 = vadd.f32 %v4728_v36, %v5766_v9 }
 0x1fa   :  { %v1380_v41 = vpop.f32.mrf.mxu1  ;;  %4910 = vmatprep.subr.mxu1 %v4116_v35 }
 0x1fb   :  { %v1381_v42 = vadd.f32 %v5766_v9, %v1380_v41  ;;  %4879 = vmatprep.mubr.msk.f32.mxu1 %vm1600_vm5, %v1561_v37  ;;  %4911 = vmatpush3.msra.mxu1 %v4116_v35  ;;  %v1564_v46 = vmax.f32 %v1386_v40, 0.0 }
 0x1fc   :  { %v4731_v44 = vpop.f32.mrf.mxu1  ;;  %4880 = vmatmul.mubr.msk.f32.gmra.mxu1 %vm1600_vm5, %v1562_v39  ;;  %4912 = vmatprep.subr.mxu1 %v4115_v38 }
 0x1fd   :  { %v1563_v45 = vmax.f32 %v1381_v42, 0.0  ;;  %4913 = vmatpush3.msra.mxu1 %v4115_v38  ;;  %v1396_v47 = vadd.f32 %v4731_v44, %v5766_v9 }
 0x1fe   :  { %v1390_v48 = vpop.f32.mrf.mxu1  ;;  %4914 = vmatprep.subr.mxu1 %v4114_v43 }
 0x1ff   :  { %v1391_v49 = vadd.f32 %v5766_v9, %v1390_v48  ;;  %4882 = vmatprep.mubr.msk.f32.mxu1 %vm1600_vm5, %v1563_v45  ;;  %4915 = vmatpush3.msra.mxu1 %v4114_v43  ;;  %v1566_v30 = vmax.f32 %v1396_v47, 0.0 }
 0x200   :  { %v4734_v50 = vpop.f32.mrf.mxu1  ;;  %4883 = vmatmul.mubr.msk.f32.gmra.mxu1 %vm1600_vm5, %v1564_v46 }
 0x201   :  { %v1565_v51 = vmax.f32 %v1391_v49, 0.0  ;;  %v1406_v52 = vadd.f32 %v4734_v50, %v5766_v9 }
 0x202   :  { %v1400_v53 = vpop.f32.mrf.mxu1 }
 0x203   :  { %v1401_v54 = vadd.f32 %v5766_v9, %v1400_v53  ;;  %4885 = vmatprep.mubr.msk.f32.mxu1 %vm1600_vm5, %v1565_v51  ;;  %v1568_v57 = vmax.f32 %v1406_v52, 0.0 }
 0x204   :  { %v4737_v55 = vpop.f32.mrf.mxu1  ;;  %4886 = vmatmul.mubr.msk.f32.gmra.mxu1 %vm1600_vm5, %v1566_v30 }
 0x205   :  { %v1567_v56 = vmax.f32 %v1401_v54, 0.0  ;;  %v1416_v7 = vadd.f32 %v4737_v55, %v5766_v9 }
 0x206   :  { %v1410_v58 = vpop.f32.mrf.mxu1 }
 0x207   :  { %v1411_v59 = vadd.f32 %v5766_v9, %v1410_v58  ;;  %4896 = vmatprep.mubr.msk.f32.mxu0 %vm1600_vm5, %v1567_v56  ;;  %v1570_v0 = vmax.f32 %v1416_v7, 0.0 }
 0x208   :  { %v4740_v61 = vpop.f32.mrf.mxu1  ;;  %4897 = vmatmul.mubr.msk.f32.vlgmr.msra.gmra.mxu0 %vm1600_vm5, %v1568_v57 }
 0x209   :  { %v1569_v62 = vmax.f32 %v1411_v59, 0.0  ;;  %4929 = vmatpush3.msk.msra.mxu0 %vm1625_vm3, %v5924_v16  ;;  %v1426_v1 = vadd.f32 %v4740_v61, %v5766_v9 }
 0x20a   :  { %v1420_v2 = vpop.f32.mrf.mxu1  ;;  %4930 = vmatprep.subr.mxu0 %v4129_v60 }
 0x20b   :  { %v1421_v3 = vadd.f32 %v5766_v9, %v1420_v2  ;;  %4899 = vmatprep.mubr.msk.f32.mxu0 %vm1600_vm5, %v1569_v62  ;;  %4931 = vmatpush3.msra.mxu0 %v4129_v60  ;;  %v1572_v8 = vmax.f32 %v1426_v1, 0.0  ;;  %v2910_v62 = vld [vmem:[%s6305_s7 + $0x30] sm:$0xf]  ;;  %v6033_v1 = vld [vmem:[%s6306_s8 + $0x18] sm:$0xff] }
 0x20c   :  { %v4743_v5 = vpop.f32.mrf.mxu1  ;;  %4900 = vmatmul.mubr.msk.f32.gmra.mxu0 %vm1600_vm5, %v1570_v0  ;;  %4932 = vmatprep.subr.mxu0 %v4128_v63  ;;  %v2908_v0 = vld [vmem:[%s6305_s7 + $0x20] sm:$0xff]  ;;  %6323 = vst [vmem:[#allocation2_spill] sm:$0xff] %v6033_v1  ;;  %v2907_v2 = vld [vmem:[%s6305_s7 + $0x18] sm:$0xff] }
 0x20d   :  { %v1571_v6 = vmax.f32 %v1421_v3, 0.0  ;;  %4933 = vmatpush3.msra.mxu0 %v4128_v63  ;;  %v1436_v10 = vadd.f32 %v4743_v5, %v5766_v9  ;;  %4948 = vmatprep.subr.msk.mxu1 %vm2943_vm6, %v2910_v62  ;;  %v6313_v63 = vmov 0.0   ;;  %v2906_v3 = vld [vmem:[%s6305_s7 + $0x10] sm:$0xff] }
 0x20e   :  { %v1430_v11 = vpop.f32.mrf.mxu1  ;;  %4934 = vmatprep.subr.mxu0 %v4127_v4  ;;  %v6049_v5 = vld [vmem:[%s6306_s8 + $0x10] sm:$0xff] }
 0x20f   :  { %v1431_v12 = vadd.f32 %v5766_v9, %v1430_v11  ;;  %4902 = vmatprep.mubr.msk.f32.mxu0 %vm1600_vm5, %v1571_v6  ;;  %4935 = vmatpush3.msra.mxu0 %v4127_v4  ;;  %v1574_v14 = vmax.f32 %v1436_v10, 0.0  ;;  %v2905_v4 = vld [vmem:[%s6305_s7 + $0x8] sm:$0xff]  ;;  %6324 = vst [vmem:[#allocation3_spill] sm:$0xff] %v6049_v5  ;;  %v2904_v6 = vld [vmem:[%s6305_s7] sm:$0xff] }
 0x210   :  { %v4746_v34 = vpop.f32.mrf.mxu1  ;;  %4903 = vmatmul.mubr.msk.f32.gmra.mxu0 %vm1600_vm5, %v1572_v8  ;;  %4974 = vmatprep.subr.mxu0 %v6313_v63  ;;  %v6059_v8 = vld [vmem:[%s6306_s8 + $0x8] sm:$0xff]  ;;  %v6066_v10 = vld [vmem:[%s6306_s8] sm:$0xff] }
 0x211   :  { %v1573_v13 = vmax.f32 %v1431_v12, 0.0  ;;  %v1446_v15 = vadd.f32 %v4746_v34, %v5766_v9  ;;  %6325 = vst [vmem:[#allocation4_spill] sm:$0xff] %v6059_v8  ;;  %6326 = vst [vmem:[#allocation5_spill] sm:$0xff] %v6066_v10  ;;  %v3052_v11 = vld [vmem:[%s6307_s10] sm:$0xff] }
 0x212   :  { %v1440_v16 = vpop.f32.mrf.mxu1 }
 0x213   :  { %v1441_v17 = vadd.f32 %v5766_v9, %v1440_v16  ;;  %4905 = vmatprep.mubr.msk.f32.mxu0 %vm1600_vm5, %v1573_v13  ;;  %v1576_v20 = vmax.f32 %v1446_v15, 0.0 }
 0x214   :  { %v4749_v18 = vpop.f32.mrf.mxu1  ;;  %4906 = vmatmul.mubr.msk.f32.gmra.mxu0 %vm1600_vm5, %v1574_v14 }
 0x215   :  { %v1575_v19 = vmax.f32 %v1441_v17, 0.0  ;;  %v1456_v21 = vadd.f32 %v4749_v18, %v5766_v9 }
 0x216   :  { %v1450_v22 = vpop.f32.mrf.mxu1 }
 0x217   :  { %v1451_v23 = vadd.f32 %v5766_v9, %v1450_v22  ;;  %4916 = vmatprep.mubr.msk.f32.mxu1 %vm1600_vm5, %v1575_v19  ;;  %v1578_v26 = vmax.f32 %v1456_v21, 0.0 }
 0x218   :  { %v4752_v24 = vpop.f32.mrf.mxu1  ;;  %4917 = vmatmul.mubr.msk.f32.vlgmr.msra.gmra.mxu1 %vm1600_vm5, %v1576_v20 }
 0x219   :  { %v1577_v25 = vmax.f32 %v1451_v23, 0.0  ;;  %v1466_v27 = vadd.f32 %v4752_v24, %v5766_v9  ;;  %4949 = vmatpush3.msk.msra.mxu1 %vm2943_vm6, %v2910_v62 }
 0x21a   :  { %v1460_v28 = vpop.f32.mrf.mxu1 }
 0x21b   :  { %v1461_v29 = vadd.f32 %v5766_v9, %v1460_v28  ;;  %4919 = vmatprep.mubr.msk.f32.mxu1 %vm1600_vm5, %v1577_v25  ;;  %v1580_v33 = vmax.f32 %v1466_v27, 0.0 }
 0x21c   :  { %v4755_v31 = vpop.f32.mrf.mxu1  ;;  %4920 = vmatmul.mubr.msk.f32.gmra.mxu1 %vm1600_vm5, %v1578_v26 }
 0x21d   :  { %v1579_v32 = vmax.f32 %v1461_v29, 0.0  ;;  %v1476_v35 = vadd.f32 %v4755_v31, %v5766_v9 }
 0x21e   :  { %v1470_v36 = vpop.f32.mrf.mxu1 }
 0x21f   :  { %v1471_v37 = vadd.f32 %v5766_v9, %v1470_v36  ;;  %4922 = vmatprep.mubr.msk.f32.mxu1 %vm1600_vm5, %v1579_v32  ;;  %v1582_v40 = vmax.f32 %v1476_v35, 0.0 }
 0x220   :  { %v4758_v38 = vpop.f32.mrf.mxu1  ;;  %4923 = vmatmul.mubr.msk.f32.gmra.mxu1 %vm1600_vm5, %v1580_v33 }
 0x221   :  { %v1581_v39 = vmax.f32 %v1471_v37, 0.0  ;;  %v1486_v41 = vadd.f32 %v4758_v38, %v5766_v9 }
 0x222   :  { %v1480_v42 = vpop.f32.mrf.mxu1 }
 0x223   :  { %v1481_v43 = vadd.f32 %v5766_v9, %v1480_v42  ;;  %4925 = vmatprep.mubr.msk.f32.mxu1 %vm1600_vm5, %v1581_v39  ;;  %v1584_v47 = vmax.f32 %v1486_v41, 0.0 }
 0x224   :  { %v4761_v44 = vpop.f32.mrf.mxu1  ;;  %4926 = vmatmul.mubr.msk.f32.gmra.mxu1 %vm1600_vm5, %v1582_v40 }
 0x225   :  { %v1583_v45 = vmax.f32 %v1481_v43, 0.0  ;;  %v1496_v46 = vadd.f32 %v4761_v44, %v5766_v9 }
 0x226   :  { %v1490_v48 = vpop.f32.mrf.mxu1 }
 0x227   :  { %v1491_v49 = vadd.f32 %v5766_v9, %v1490_v48  ;;  %4936 = vmatprep.mubr.msk.f32.mxu0 %vm1600_vm5, %v1583_v45  ;;  %v1586_v50 = vmax.f32 %v1496_v46, 0.0 }
 0x228   :  { %v4764_v51 = vpop.f32.mrf.mxu1  ;;  %4937 = vmatmul.mubr.msk.f32.vlgmr.msra.gmra.mxu0 %vm1600_vm5, %v1584_v47 }
 0x229   :  { %v1585_v30 = vmax.f32 %v1491_v49, 0.0  ;;  %v1506_v52 = vadd.f32 %v4764_v51, %v5766_v9  ;;  %4975 = vmatpush3.msra.mxu0 %v6033_v1 }
 0x22a   :  { %v1500_v53 = vpop.f32.mrf.mxu1  ;;  %4976 = vmatprep.subr.mxu0 %v6313_v63 }
 0x22b   :  { %v1501_v54 = vadd.f32 %v5766_v9, %v1500_v53  ;;  %4939 = vmatprep.mubr.msk.f32.mxu0 %vm1600_vm5, %v1585_v30  ;;  %v1588_v55 = vmax.f32 %v1506_v52, 0.0  ;;  %4977 = vmatpush3.msra.mxu0 %v6049_v5 }
 0x22c   :  { %v4767_v56 = vpop.f32.mrf.mxu1  ;;  %4940 = vmatmul.mubr.msk.f32.gmra.mxu0 %vm1600_vm5, %v1586_v50  ;;  %4978 = vmatprep.subr.mxu0 %v6313_v63 }
 0x22d   :  { %v1587_v57 = vmax.f32 %v1501_v54, 0.0  ;;  %v1516_v7 = vadd.f32 %v4767_v56, %v5766_v9  ;;  %4979 = vmatpush3.msra.mxu0 %v6059_v8 }
 0x22e   :  { %v1510_v58 = vpop.f32.mrf.mxu1  ;;  %4980 = vmatprep.subr.mxu0 %v6313_v63 }
 0x22f   :  { %v1511_v59 = vadd.f32 %v5766_v9, %v1510_v58  ;;  %4942 = vmatprep.mubr.msk.f32.mxu0 %vm1600_vm5, %v1587_v57  ;;  %v1590_v60 = vmax.f32 %v1516_v7, 0.0  ;;  %v2909_v9 = vld [vmem:[%s6305_s7 + $0x28] sm:$0xff]  ;;  %4981 = vmatpush3.msra.mxu0 %v6066_v10 }
 0x230   :  { %4943 = vmatmul.mubr.msk.f32.gmra.mxu0 %vm1600_vm5, %v1588_v55  ;;  %4950 = vmatprep.subr.mxu1 %v2909_v9 }
 0x231   :  { %v1589_v61 = vmax.f32 %v1511_v59, 0.0  ;;  %4951 = vmatpush3.msra.mxu1 %v2909_v9  ;;  %4985 = vmatprep.subr.mxu0 %v6313_v63 }
 0x232   :  { %4952 = vmatprep.subr.mxu1 %v2908_v0 }
 0x233   :  { %4945 = vmatprep.mubr.msk.f32.mxu0 %vm1600_vm5, %v1589_v61  ;;  %4953 = vmatpush3.msra.mxu1 %v2908_v0 }
 0x234   :  { %4946 = vmatmul.mubr.msk.f32.gmra.mxu0 %vm1600_vm5, %v1590_v60  ;;  %4954 = vmatprep.subr.mxu1 %v2907_v2 }
 0x235   :  { %4955 = vmatpush3.msra.mxu1 %v2907_v2  ;;  %4982 = vmatprep.mubr.msk.f32.mxu0 %vm5132_vm7, %v6313_v63 }
 0x236   :  { %4956 = vmatprep.subr.mxu1 %v2906_v3 }
 0x237   :  { %4957 = vmatpush3.msra.mxu1 %v2906_v3 }
 0x238   :  { %4958 = vmatprep.subr.mxu1 %v2905_v4  ;;  %4983 = vmatmul.mubr.msk.f32.vlgmr.msra.gmra.mxu0 %vm3058_vm8, %v3052_v11 }
 0x239   :  { %4959 = vmatpush3.msra.mxu1 %v2905_v4  ;;  %4986 = vmatpush3.msra.mxu0 %v6033_v1 }
 0x23a   :  { %4960 = vmatprep.subr.mxu1 %v2904_v6  ;;  %4993 = vmatprep.mubr.msk.f32.mxu0 %vm5132_vm7, %v6313_v63 }
 0x23b   :  { %4961 = vmatpush3.msra.mxu1 %v2904_v6  ;;  %4987 = vmatprep.subr.mxu0 %v6313_v63 }
 0x23c   :  { %4996 = vmatprep.subr.mxu1 %v6313_v63  ;;  %4988 = vmatpush3.msra.mxu0 %v6049_v5 }
 0x23d   :  { %4989 = vmatprep.subr.mxu0 %v6313_v63 }
 0x23e   :  { %4990 = vmatpush3.msra.mxu0 %v6059_v8 }
 0x23f   :  { %4991 = vmatprep.subr.mxu0 %v6313_v63 }
 0x240   :  { %4992 = vmatpush3.msra.mxu0 %v6066_v10 }
 0x241   :  { %5007 = vmatprep.subr.mxu0 %v6313_v63 }
 0x268   :  { %v4798_v14 = vpop.f32.mrf.mxu1 }
 0x26a   :  { %v1827_v17 = vpop.f32.mrf.mxu1 }
 0x26c   :  { %v4801_v19 = vpop.f32.mrf.mxu1 }
 0x26e   :  { %v1837_v21 = vpop.f32.mrf.mxu1 }
 0x270   :  { %v4804_v23 = vpop.f32.mrf.mxu1 }
 0x272   :  { %v1847_v25 = vpop.f32.mrf.mxu1 }
 0x274   :  { %v6093_v27 = vpop.f32.mrf.mxu1 }
 0x276   :  { %v6095_v29 = vpop.f32.mrf.mxu1 }
 0x278   :  { %v4778_v12 = vpop.f32.mrf.mxu0 }
 0x279   :  { %v1833_v3 = vadd.f32 %v4798_v14, %v4778_v12 }
 0x27a   :  { %v1695_v34 = vpop.f32.mrf.mxu0 }
 0x27b   :  { %v1828_v4 = vadd.f32 %v1827_v17, %v1695_v34 }
 0x27c   :  { %v4781_v13 = vpop.f32.mrf.mxu0 }
 0x27d   :  { %v1843_v10 = vadd.f32 %v4801_v19, %v4781_v13 }
 0x27e   :  { %v1705_v15 = vpop.f32.mrf.mxu0 }
 0x27f   :  { %v1838_v1 = vadd.f32 %v1837_v21, %v1705_v15 }
 0x280   :  { %v4784_v16 = vpop.f32.mrf.mxu0 }
 0x282   :  { %v6087_v18 = vpop.f32.mrf.mxu0 }
 0x283   :  { %v1848_v34 = vadd.f32 %v1847_v25, %v6087_v18 }
 0x284   :  { %v6089_v20 = vpop.f32.mrf.mxu0 }
 0x286   :  { %v6091_v22 = vpop.f32.mrf.mxu0 }
 0x288   :  { %v4818_v24 = vpop.f32.mrf.mxu0 }
 0x289   :  { %v2004_v6 = vadd.f32 %v4818_v24, %v1833_v3 }
 0x28a   :  { %v1964_v26 = vpop.f32.mrf.mxu0 }
 0x28b   :  { %v2003_v8 = vadd.f32 %v1964_v26, %v1828_v4 }
 0x28c   :  { %v4821_v28 = vpop.f32.mrf.mxu0 }
 0x28e   :  { %v1974_v31 = vpop.f32.mrf.mxu0 }
 0x290   :  { %v4824_v33 = vpop.f32.mrf.mxu0 }
 0x292   :  { %v1984_v36 = vpop.f32.mrf.mxu0 }
 0x294   :  { %v6097_v38 = vpop.f32.mrf.mxu0 }
 0x296   :  { %v6099_v40 = vpop.f32.mrf.mxu0 }
 0x297   :  { %6327 = vst [vmem:[#allocation6_spill] sm:$0xff] %v6099_v40 }
 0x298   :  { %v4838_v32 = vpop.f32.mrf.mxu1 }
 0x299   :  { %v2149_v5 = vadd.f32 %v4838_v32, %v2004_v6 }
 0x29a   :  { %v2109_v35 = vpop.f32.mrf.mxu1 }
 0x29c   :  { %v4841_v37 = vpop.f32.mrf.mxu1 }
 0x29e   :  { %v2119_v39 = vpop.f32.mrf.mxu1 }
 0x2a0   :  { %v4844_v41 = vpop.f32.mrf.mxu1 }
 0x2a2   :  { %v2129_v43 = vpop.f32.mrf.mxu1 }
 0x2a4   :  { %v6101_v45 = vpop.f32.mrf.mxu1 }
 0x2a5   :  { %6328 = vst [vmem:[#allocation7_spill] sm:$0xff] %v6101_v45 }
 0x2a6   :  { %v6103_v47 = vpop.f32.mrf.mxu1 }
 0x2a7   :  { %6329 = vst [vmem:[#allocation8_spill] sm:$0xff] %v6103_v47 }
 0x2a8   :  { %v4858_v42 = vpop.f32.mrf.mxu0 }
 0x2aa   :  { %v2254_v44 = vpop.f32.mrf.mxu0 }
 0x2ac   :  { %v4861_v46 = vpop.f32.mrf.mxu0 }
 0x2ae   :  { %v2264_v48 = vpop.f32.mrf.mxu0 }
 0x2b0   :  { %v4864_v50 = vpop.f32.mrf.mxu0 }
 0x2b2   :  { %v6105_v30 = vpop.f32.mrf.mxu0 }
 0x2b3   :  { %6330 = vst [vmem:[#allocation9_spill] sm:$0xff] %v6105_v30  ;;  %v2005_v30 = vadd.f32 %v1974_v31, %v1838_v1 }
 0x2b4   :  { %v6107_v53 = vpop.f32.mrf.mxu0 }
 0x2b5   :  { %6331 = vst [vmem:[#allocation10_spill] sm:$0xff] %v6107_v53  ;;  %v1853_v53 = vadd.f32 %v4804_v23, %v4784_v16  ;;  %v2150_v17 = vadd.f32 %v2119_v39, %v2005_v30 }
 0x2b6   :  { %v6109_v55 = vpop.f32.mrf.mxu0 }
 0x2b7   :  { %6332 = vst [vmem:[#allocation11_spill] sm:$0xff] %v6109_v55  ;;  %v2006_v55 = vadd.f32 %v4821_v28, %v1843_v10  ;;  %v2008_v14 = vadd.f32 %v4824_v33, %v1853_v53  ;;  %v1863_v10 = vadd.f32 %v6093_v27, %v6089_v20  ;;  %v2295_v21 = vadd.f32 %v2264_v48, %v2150_v17  ;;  %v6130_v27 = vld [vmem:[%s6308_s6] ss:$0 sm:$0xff]  ;;  %v6339_v48 = vld [vmem:[#allocation8_spill] sm:$0xff] }
 0x2b8   :  { %v4878_v49 = vpop.f32.mrf.mxu1  ;;  %v1858_v28 = vadd.f32 %v6095_v29, %v6091_v22 }
 0x2b9   :  { %v2151_v45 = vadd.f32 %v4841_v37, %v2006_v55  ;;  %v2010_v18 = vadd.f32 %v6097_v38, %v1863_v10 }
 0x2ba   :  { %v2399_v51 = vpop.f32.mrf.mxu1 }
 0x2bb   :  { %v2296_v24 = vadd.f32 %v4861_v46, %v2151_v45 }
 0x2bc   :  { %v4881_v52 = vpop.f32.mrf.mxu1 }
 0x2bd   :  { %v2441_v23 = vadd.f32 %v4881_v52, %v2296_v24 }
 0x2be   :  { %v2409_v54 = vpop.f32.mrf.mxu1 }
 0x2bf   :  { %v2440_v33 = vadd.f32 %v2409_v54, %v2295_v21 }
 0x2c0   :  { %v4884_v56 = vpop.f32.mrf.mxu1 }
 0x2c2   :  { %v6111_v7 = vpop.f32.mrf.mxu1 }
 0x2c3   :  { %6333 = vst [vmem:[#allocation12_spill] sm:$0xff] %v6111_v7  ;;  %v2148_v7 = vadd.f32 %v2109_v35, %v2003_v8  ;;  %v2007_v8 = vadd.f32 %v1984_v36, %v1848_v34  ;;  %v6336_v36 = vld [vmem:[#allocation6_spill] sm:$0xff] }
 0x2c4   :  { %v6113_v59 = vpop.f32.mrf.mxu1  ;;  %v2009_v39 = vadd.f32 %v6336_v36, %v1858_v28  ;;  %v6346_v28 = vmov 0.0  }
 0x2c5   :  { %6334 = vst [vmem:[#allocation13_spill] sm:$0xff] %v6113_v59  ;;  %v2294_v59 = vadd.f32 %v4858_v42, %v2149_v5  ;;  %v2293_v40 = vadd.f32 %v2254_v44, %v2148_v7  ;;  %v2153_v5 = vadd.f32 %v4844_v41, %v2008_v14  ;;  %v2152_v25 = vadd.f32 %v2129_v43, %v2007_v8  ;;  %v6338_v42 = vld [vmem:[#allocation9_spill] sm:$0xff] }
 0x2c6   :  { %v6115_v61 = vpop.f32.mrf.mxu1 }
 0x2c7   :  { %6335 = vst [vmem:[#allocation14_spill] sm:$0xff] %v6115_v61  ;;  %v2439_v12 = vadd.f32 %v4878_v49, %v2294_v59  ;;  %v2438_v13 = vadd.f32 %v2399_v51, %v2293_v40  ;;  %v2298_v31 = vadd.f32 %v4864_v50, %v2153_v5  ;;  %v6337_v40 = vld [vmem:[#allocation7_spill] sm:$0xff]  ;;  %v2297_v22 = vadd.f32 %v6338_v42, %v2152_v25  ;;  %v6340_v50 = vld [vmem:[#allocation10_spill] sm:$0xff] }
 0x2c8   :  { %v4898_v57 = vpop.f32.mrf.mxu0  ;;  %v2155_v41 = vadd.f32 %v6337_v40, %v2010_v18  ;;  %v2154_v49 = vadd.f32 %v6339_v48, %v2009_v39  ;;  %v6342_v59 = vld [vmem:[#allocation11_spill] sm:$0xff]  ;;  %v6349_v40 = vld [vmem:[#allocation5_spill] sm:$0xff] }
 0x2c9   :  { %v2584_v19 = vadd.f32 %v4898_v57, %v2439_v12  ;;  %v2443_v43 = vadd.f32 %v4884_v56, %v2298_v31 }
 0x2ca   :  { %v2544_v58 = vpop.f32.mrf.mxu0  ;;  %v2300_v51 = vadd.f32 %v6340_v50, %v2155_v41  ;;  %v6341_v30 = vld [vmem:[#allocation12_spill] sm:$0xff] }
 0x2cb   :  { %v2583_v1 = vadd.f32 %v2544_v58, %v2438_v13  ;;  %v2442_v52 = vadd.f32 %v6341_v30, %v2297_v22 }
 0x2cc   :  { %v4901_v60 = vpop.f32.mrf.mxu0  ;;  %v6343_v56 = vld [vmem:[#allocation13_spill] sm:$0xff] }
 0x2cd   :  { %v2586_v35 = vadd.f32 %v4901_v60, %v2441_v23  ;;  %v2299_v60 = vadd.f32 %v6342_v59, %v2154_v49  ;;  %v6345_v23 = vld [vmem:[#allocation2_spill] sm:$0xff] }
 0x2ce   :  { %v2554_v62 = vpop.f32.mrf.mxu0  ;;  %v6344_v12 = vld [vmem:[#allocation14_spill] sm:$0xff] }
 0x2cf   :  { %v2585_v44 = vadd.f32 %v2554_v62, %v2440_v33  ;;  %v2445_v62 = vadd.f32 %v6343_v56, %v2300_v51  ;;  %v2444_v34 = vadd.f32 %v6344_v12, %v2299_v60 }
 0x2d0   :  { %v4904_v0 = vpop.f32.mrf.mxu0 }
 0x2d1   :  { %v2588_v55 = vadd.f32 %v4904_v0, %v2443_v43 }
 0x2d2   :  { %v6117_v11 = vpop.f32.mrf.mxu0 }
 0x2d4   :  { %v6119_v47 = vpop.f32.mrf.mxu0 }
 0x2d5   :  { %v2590_v17 = vadd.f32 %v6119_v47, %v2445_v62 }
 0x2d6   :  { %v2574_v15 = vpop.f32.mrf.mxu0 }
 0x2d8   :  { %v4918_v9 = vpop.f32.mrf.mxu1 }
 0x2d9   :  { %v2729_v26 = vadd.f32 %v4918_v9, %v2584_v19 }
 0x2da   :  { %v2689_v2 = vpop.f32.mrf.mxu1 }
 0x2db   :  { %v2728_v37 = vadd.f32 %v2689_v2, %v2583_v1  ;;  %v2587_v2 = vadd.f32 %v6117_v11, %v2442_v52  ;;  %v2589_v11 = vadd.f32 %v2574_v15, %v2444_v34 }
 0x2dc   :  { %v4921_v63 = vpop.f32.mrf.mxu1 }
 0x2dd   :  { %v2731_v45 = vadd.f32 %v4921_v63, %v2586_v35 }
 0x2de   :  { %v2699_v61 = vpop.f32.mrf.mxu1 }
 0x2df   :  { %v2730_v57 = vadd.f32 %v2699_v61, %v2585_v44 }
 0x2e0   :  { %v4924_v16 = vpop.f32.mrf.mxu1 }
 0x2e1   :  { %v2733_v3 = vadd.f32 %v4924_v16, %v2588_v55 }
 0x2e2   :  { %v2709_v29 = vpop.f32.mrf.mxu1 }
 0x2e3   :  { %v2732_v24 = vadd.f32 %v2709_v29, %v2587_v2 }
 0x2e4   :  { %v4927_v63 = vpop.f32.mrf.mxu1 }
 0x2e5   :  { %v2735_v5 = vadd.f32 %v4927_v63, %v2590_v17 }
 0x2e6   :  { %v2719_v10 = vpop.f32.mrf.mxu1 }
 0x2e7   :  { %v2734_v18 = vadd.f32 %v2719_v10, %v2589_v11 }
 0x2e8   :  { %v4938_v32 = vpop.f32.mrf.mxu0 }
 0x2e9   :  { %v2874_v20 = vadd.f32 %v4938_v32, %v2729_v26  ;;  %v6347_v32 = vld [vmem:[#allocation3_spill] sm:$0xff] }
 0x2ea   :  { %v2834_v38 = vpop.f32.mrf.mxu0 }
 0x2eb   :  { %v2873_v46 = vadd.f32 %v2834_v38, %v2728_v37  ;;  %v2889_v53 = vadd.f32 %v6130_v27, %v2874_v20  ;;  %v6348_v37 = vld [vmem:[#allocation4_spill] sm:$0xff] }
 0x2ec   :  { %v4941_v54 = vpop.f32.mrf.mxu0 }
 0x2ed   :  { %v2888_v7 = vadd.f32 %v6130_v27, %v2873_v46  ;;  %v2876_v58 = vadd.f32 %v4941_v54, %v2731_v45  ;;  %v2897_v14 = vmax.f32 %v2889_v53, 0.0 }
 0x2ee   :  { %v2844_v9 = vpop.f32.mrf.mxu0 }
 0x2ef   :  { %v2896_v4 = vmax.f32 %v2888_v7, 0.0  ;;  %v2875_v6 = vadd.f32 %v2844_v9, %v2730_v57  ;;  %v2891_v61 = vadd.f32 %v6130_v27, %v2876_v58  ;;  %v3053_v7 = vld [vmem:[%s6310_s11] sm:$0xff]  ;;  %s5135_s11 = smov 96  }
 0x2f0   :  { %v4944_v0 = vpop.f32.mrf.mxu0 }
 0x2f1   :  { %v2890_v13 = vadd.f32 %v6130_v27, %v2875_v6  ;;  %v2878_v19 = vadd.f32 %v4944_v0, %v2733_v3  ;;  %4962 = vmatprep.mubr.msk.f32.mxu1 %vm2918_vm9, %v2896_v4  ;;  %v2899_v1 = vmax.f32 %v2891_v61, 0.0 }
 0x2f2   :  { %v2854_v8 = vpop.f32.mrf.mxu0  ;;  %4963 = vmatmul.mubr.msk.f32.vlgmr.msra.gmra.mxu1 %vm2918_vm9, %v2897_v14 }
 0x2f3   :  { %v2898_v16 = vmax.f32 %v2890_v13, 0.0  ;;  %v2877_v21 = vadd.f32 %v2854_v8, %v2732_v24  ;;  %4997 = vmatpush3.msra.mxu1 %v6345_v23  ;;  %v2893_v26 = vadd.f32 %v6130_v27, %v2878_v19 }
 0x2f4   :  { %v4947_v47 = vpop.f32.mrf.mxu0  ;;  %4998 = vmatprep.subr.mxu1 %v6346_v28 }
 0x2f5   :  { %v2892_v25 = vadd.f32 %v6130_v27, %v2877_v21  ;;  %v2880_v31 = vadd.f32 %v4947_v47, %v2735_v5  ;;  %4965 = vmatprep.mubr.msk.f32.mxu1 %vm2918_vm9, %v2898_v16  ;;  %4999 = vmatpush3.msra.mxu1 %v6347_v32  ;;  %v2901_v20 = vmax.f32 %v2893_v26, 0.0 }
 0x2f6   :  { %v2864_v15 = vpop.f32.mrf.mxu0  ;;  %4966 = vmatmul.mubr.msk.f32.gmra.mxu1 %vm2918_vm9, %v2899_v1  ;;  %5000 = vmatprep.subr.mxu1 %v6346_v28 }
 0x2f7   :  { %v2900_v33 = vmax.f32 %v2892_v25, 0.0  ;;  %v2879_v35 = vadd.f32 %v2864_v15, %v2734_v18  ;;  %5001 = vmatpush3.msra.mxu1 %v6348_v37  ;;  %v2895_v36 = vadd.f32 %v6130_v27, %v2880_v31 }
 0x2f8   :  { %5002 = vmatprep.subr.mxu1 %v6346_v28  ;;  %v3128_v22 = vpop.f32.mrf.mxu0 }
 0x2f9   :  { %v2894_v39 = vadd.f32 %v6130_v27, %v2879_v35  ;;  %4968 = vmatprep.mubr.msk.f32.mxu1 %vm2918_vm9, %v2900_v33  ;;  %5003 = vmatpush3.msra.mxu1 %v6349_v40  ;;  %v2903_v42 = vmax.f32 %v2895_v36, 0.0  ;;  %v6172_v27 = vld [vmem:[%s6309_s9] ss:$0 sm:$0xff]  ;;  %s5133_s9 = smov 64  }
 0x2fa   :  { %4969 = vmatmul.mubr.msk.f32.gmra.mxu1 %vm2918_vm9, %v2901_v20  ;;  %5018 = vmatprep.subr.mxu1 %v6346_v28  ;;  %v4984_v29 = vpop.f32.mrf.mxu0 }
 0x2fb   :  { %v2902_v41 = vmax.f32 %v2894_v39, 0.0 }
 0x2fd   :  { %4971 = vmatprep.mubr.msk.f32.mxu1 %vm2918_vm9, %v2902_v41 }
 0x2fe   :  { %4972 = vmatmul.mubr.msk.f32.gmra.mxu1 %vm2918_vm9, %v2903_v42 }
 0x2ff   :  { %5004 = vmatprep.mubr.msk.f32.mxu1 %vm5132_vm7, %v6346_v28 }
 0x3b2   :  { %v4964_v38 = vpop.f32.mrf.mxu1 }
 0x3b3   :  { %v3019_v43 = vadd.f32 %v4964_v38, %v6172_v27 }
 0x3b4   :  { %v3013_v44 = vpop.f32.mrf.mxu1 }
 0x3b5   :  { %v3014_v45 = vadd.f32 %v6172_v27, %v3013_v44 }
 0x3b6   :  { %v4967_v46 = vpop.f32.mrf.mxu1 }
 0x3b7   :  { %v3132_v48 = vadd.f32 %v3128_v22, %v3014_v45  ;;  %v6177_v49 = vadd.f32 %v4967_v46, %v6172_v27 }
 0x3b8   :  { %v6179_v50 = vpop.f32.mrf.mxu1 }
 0x3b9   :  { %5067 = vtanh.f32 %v3132_v48  ;;  %v4152_v58 = vmul.f32 -1.442695, %v3132_v48  ;;  %v3024_v15 = vadd.f32 %v6172_v27, %v6179_v50 }
 0x3ba   :  { %v4970_v51 = vpop.f32.mrf.mxu1 }
 0x3bb   :  { %v6182_v30 = vadd.f32 %v4970_v51, %v6172_v27  ;;  %5069 = vpow2.f32 %v4152_v58 }
 0x3bc   :  { %v3033_v52 = vpop.f32.mrf.mxu1 }
 0x3bd   :  { %v6185_v53 = vadd.f32 %v6172_v27, %v3033_v52 }
 0x3be   :  { %v4973_v54 = vpop.f32.mrf.mxu1 }
 0x3bf   :  { %v6188_v55 = vadd.f32 %v4973_v54, %v6172_v27 }
 0x3c0   :  { %v6224_v31 = vpop.f32.mrf.mxu1 }
 0x3c6   :  { %v5068_v57 = vpop.eup %5067 }
 0x3c7   :  { %3146 = vrot.lane.b32.xlu0 %v5068_v57, %s5133_s9 }
 0x3c8   :  { %v5070_v59 = vpop.eup %5069 }
 0x3c9   :  { %v3136_v60 = vadd.f32 1.0, %v5070_v59 }
 0x3cb   :  { %3141 = vrot.lane.b32.xlu0 %v3053_v7, %s5134_s30  ;;  %5071 = vrcp.f32 %v3136_v60 }
 0x3d8   :  { %v5072_v56 = vpop.eup %5071 }
 0x439   :  { %v3147_v62 = vpop.permute.xlu0 %3146 }
 0x43a   :  { %v3149_v63 = vmul.f32 %v5072_v56, %v3147_v62 }
 0x43c   :  { %3151 = vrot.lane.b32.xlu1 %v3149_v63, %s5134_s30 }
 0x43d   :  { %v3142_v9 = vpop.permute.xlu0 %3141 }
 0x43e   :  { %v3144_v2 = vmul.f32 %v5072_v56, %v3142_v9 }
 0x4ae   :  { %v3152_v3 = vpop.permute.xlu1 %3151 }
 0x4af   :  { %v3154_v4 = vadd.f32 %v3152_v3, %v3144_v2 }
 0x4b1   :  { %5073 = vtanh.f32 %v3154_v4 }
 0x4be   :  { %v5074_v6 = vpop.eup %5073 }
 0x4bf   :  { %3157 = vrot.lane.b32.xlu1 %v5074_v6, %s5133_s9 }
 0x531   :  { %v3158_v12 = vpop.permute.xlu1 %3157 }
 0x532   :  { %v3160_v34 = vmul.f32 %v5072_v56, %v3158_v12 }
 0x534   :  { %3162 = vrot.lane.b32.xlu0 %v3160_v34, %s5134_s30 }
 0x5a6   :  { %v3163_v14 = vpop.permute.xlu0 %3162 }
 0x5a7   :  { %4994 = vmatmul.mubr.msk.f32.vlgmr.msra.gmra.mxu0 %vm3058_vm8, %v3163_v14 }
 0x5a8   :  { %5008 = vmatpush3.msra.mxu0 %v6345_v23  ;;  %5015 = vmatprep.mubr.msk.f32.mxu0 %vm5132_vm7, %v6346_v28 }
 0x5a9   :  { %5009 = vmatprep.subr.mxu0 %v6346_v28 }
 0x5aa   :  { %5010 = vmatpush3.msra.mxu0 %v6347_v32 }
 0x5ab   :  { %5011 = vmatprep.subr.mxu0 %v6346_v28 }
 0x5ac   :  { %5012 = vmatpush3.msra.mxu0 %v6348_v37 }
 0x5ad   :  { %5013 = vmatprep.subr.mxu0 %v6346_v28 }
 0x5ae   :  { %5014 = vmatpush3.msra.mxu0 %v6349_v40 }
 0x5af   :  { %5029 = vmatprep.subr.mxu0 %v6346_v28 }
 0x667   :  { %v3232_v61 = vpop.f32.mrf.mxu0 }
 0x668   :  { %v3236_v0 = vadd.f32 %v3232_v61, %v3019_v43 }
 0x669   :  { %v4995_v17 = vpop.f32.mrf.mxu0 }
 0x66a   :  { %5075 = vtanh.f32 %v3236_v0  ;;  %v4154_v13 = vmul.f32 -1.442695, %v3236_v0 }
 0x66c   :  { %5077 = vpow2.f32 %v4154_v13 }
 0x677   :  { %v5076_v24 = vpop.eup %5075 }
 0x678   :  { %3246 = vrot.lane.b32.xlu1 %v5076_v24, %s5133_s9 }
 0x679   :  { %v5078_v19 = vpop.eup %5077 }
 0x67a   :  { %v3240_v10 = vadd.f32 1.0, %v5078_v19 }
 0x67c   :  { %5079 = vrcp.f32 %v3240_v10 }
 0x689   :  { %v5080_v8 = vpop.eup %5079 }
 0x68a   :  { %v3244_v16 = vmul.f32 %v5080_v8, %v3154_v4 }
 0x6ea   :  { %v3247_v11 = vpop.permute.xlu1 %3246 }
 0x6eb   :  { %v3249_v5 = vmul.f32 %v5080_v8, %v3247_v11 }
 0x6ed   :  { %3251 = vrot.lane.b32.xlu0 %v3249_v5, %s5134_s30 }
 0x75f   :  { %v3252_v21 = vpop.permute.xlu0 %3251 }
 0x760   :  { %v3254_v1 = vadd.f32 %v3252_v21, %v3244_v16 }
 0x762   :  { %5081 = vtanh.f32 %v3254_v1 }
 0x76f   :  { %v5082_v26 = vpop.eup %5081 }
 0x770   :  { %3257 = vrot.lane.b32.xlu1 %v5082_v26, %s5133_s9 }
 0x7e2   :  { %v3258_v47 = vpop.permute.xlu1 %3257 }
 0x7e3   :  { %v3260_v18 = vmul.f32 %v5080_v8, %v3258_v47 }
 0x7e5   :  { %3262 = vrot.lane.b32.xlu0 %v3260_v18, %s5134_s30 }
 0x857   :  { %v3263_v25 = vpop.permute.xlu0 %3262 }
 0x858   :  { %5005 = vmatmul.mubr.msk.f32.vlgmr.msra.gmra.mxu1 %vm3058_vm8, %v3263_v25 }
 0x859   :  { %5019 = vmatpush3.msra.mxu1 %v6345_v23  ;;  %5026 = vmatprep.mubr.msk.f32.mxu1 %vm5132_vm7, %v6346_v28 }
 0x85a   :  { %5020 = vmatprep.subr.mxu1 %v6346_v28 }
 0x85b   :  { %5021 = vmatpush3.msra.mxu1 %v6347_v32 }
 0x85c   :  { %5022 = vmatprep.subr.mxu1 %v6346_v28 }
 0x85d   :  { %5023 = vmatpush3.msra.mxu1 %v6348_v37 }
 0x85e   :  { %5024 = vmatprep.subr.mxu1 %v6346_v28 }
 0x85f   :  { %5025 = vmatpush3.msra.mxu1 %v6349_v40 }
 0x860   :  { %5040 = vmatprep.subr.mxu1 %v6346_v28 }
 0x918   :  { %v3332_v33 = vpop.f32.mrf.mxu1 }
 0x919   :  { %v3336_v35 = vadd.f32 %v3332_v33, %v3024_v15 }
 0x91a   :  { %v5006_v20 = vpop.f32.mrf.mxu1 }
 0x91b   :  { %5083 = vtanh.f32 %v3336_v35  ;;  %v4156_v39 = vmul.f32 -1.442695, %v3336_v35 }
 0x91d   :  { %5085 = vpow2.f32 %v4156_v39 }
 0x928   :  { %v5084_v36 = vpop.eup %5083 }
 0x929   :  { %3346 = vrot.lane.b32.xlu1 %v5084_v36, %s5133_s9 }
 0x92a   :  { %v5086_v41 = vpop.eup %5085 }
 0x92b   :  { %v3340_v42 = vadd.f32 1.0, %v5086_v41 }
 0x92d   :  { %5087 = vrcp.f32 %v3340_v42 }
 0x93a   :  { %v5088_v22 = vpop.eup %5087 }
 0x93b   :  { %v3344_v43 = vmul.f32 %v5088_v22, %v3254_v1 }
 0x99b   :  { %v3347_v29 = vpop.permute.xlu1 %3346 }
 0x99c   :  { %v3349_v38 = vmul.f32 %v5088_v22, %v3347_v29 }
 0x99e   :  { %3351 = vrot.lane.b32.xlu0 %v3349_v38, %s5134_s30 }
 0xa10   :  { %v3352_v44 = vpop.permute.xlu0 %3351 }
 0xa11   :  { %v3354_v45 = vadd.f32 %v3352_v44, %v3344_v43 }
 0xa13   :  { %5089 = vtanh.f32 %v3354_v45 }
 0xa20   :  { %v5090_v46 = vpop.eup %5089 }
 0xa21   :  { %3357 = vrot.lane.b32.xlu1 %v5090_v46, %s5133_s9 }
 0xa93   :  { %v3358_v48 = vpop.permute.xlu1 %3357 }
 0xa94   :  { %v3360_v50 = vmul.f32 %v5088_v22, %v3358_v48  ;;  %v3044_v22 = vadd.f32 %v6172_v27, %v6224_v31 }
 0xa96   :  { %3362 = vrot.lane.b32.xlu0 %v3360_v50, %s5134_s30 }
 0xb08   :  { %v3363_v51 = vpop.permute.xlu0 %3362 }
 0xb09   :  { %5016 = vmatmul.mubr.msk.f32.vlgmr.msra.gmra.mxu0 %vm3058_vm8, %v3363_v51 }
 0xb0a   :  { %5030 = vmatpush3.msra.mxu0 %v6345_v23  ;;  %5037 = vmatprep.mubr.msk.f32.mxu0 %vm5132_vm7, %v6346_v28 }
 0xb0b   :  { %5031 = vmatprep.subr.mxu0 %v6346_v28 }
 0xb0c   :  { %5032 = vmatpush3.msra.mxu0 %v6347_v32 }
 0xb0d   :  { %5033 = vmatprep.subr.mxu0 %v6346_v28 }
 0xb0e   :  { %5034 = vmatpush3.msra.mxu0 %v6348_v37 }
 0xb0f   :  { %5035 = vmatprep.subr.mxu0 %v6346_v28 }
 0xb10   :  { %5036 = vmatpush3.msra.mxu0 %v6349_v40 }
 0xb11   :  { %5051 = vmatprep.subr.mxu0 %v6346_v28 }
 0xbc9   :  { %v3432_v52 = vpop.f32.mrf.mxu0 }
 0xbca   :  { %v3436_v54 = vadd.f32 %v3432_v52, %v6177_v49 }
 0xbcb   :  { %v5017_v57 = vpop.f32.mrf.mxu0 }
 0xbcc   :  { %5091 = vtanh.f32 %v3436_v54  ;;  %v4158_v58 = vmul.f32 -1.442695, %v3436_v54 }
 0xbce   :  { %5093 = vpow2.f32 %v4158_v58 }
 0xbd9   :  { %v5092_v7 = vpop.eup %5091 }
 0xbda   :  { %3446 = vrot.lane.b32.xlu1 %v5092_v7, %s5133_s9 }
 0xbdb   :  { %v5094_v59 = vpop.eup %5093 }
 0xbdc   :  { %v3440_v60 = vadd.f32 1.0, %v5094_v59 }
 0xbde   :  { %5095 = vrcp.f32 %v3440_v60 }
 0xbeb   :  { %v5096_v56 = vpop.eup %5095 }
 0xbec   :  { %v3444_v9 = vmul.f32 %v5096_v56, %v3354_v45 }
 0xc4c   :  { %v3447_v62 = vpop.permute.xlu1 %3446 }
 0xc4d   :  { %v3449_v63 = vmul.f32 %v5096_v56, %v3447_v62 }
 0xc4f   :  { %3451 = vrot.lane.b32.xlu0 %v3449_v63, %s5134_s30 }
 0xcc1   :  { %v3452_v2 = vpop.permute.xlu0 %3451 }
 0xcc2   :  { %v3454_v3 = vadd.f32 %v3452_v2, %v3444_v9 }
 0xcc4   :  { %5097 = vtanh.f32 %v3454_v3 }
 0xcd1   :  { %v5098_v49 = vpop.eup %5097 }
 0xcd2   :  { %3457 = vrot.lane.b32.xlu1 %v5098_v49, %s5133_s9 }
 0xd44   :  { %v3458_v4 = vpop.permute.xlu1 %3457 }
 0xd45   :  { %v3460_v6 = vmul.f32 %v5096_v56, %v3458_v4 }
 0xd47   :  { %3462 = vrot.lane.b32.xlu0 %v3460_v6, %s5134_s30 }
 0xdb9   :  { %v3463_v12 = vpop.permute.xlu0 %3462 }
 0xdba   :  { %5027 = vmatmul.mubr.msk.f32.vlgmr.msra.gmra.mxu1 %vm3058_vm8, %v3463_v12 }
 0xdbb   :  { %5041 = vmatpush3.msra.mxu1 %v6345_v23  ;;  %5048 = vmatprep.mubr.msk.f32.mxu1 %vm5132_vm7, %v6346_v28 }
 0xdbc   :  { %5042 = vmatprep.subr.mxu1 %v6346_v28 }
 0xdbd   :  { %5043 = vmatpush3.msra.mxu1 %v6347_v32 }
 0xdbe   :  { %5044 = vmatprep.subr.mxu1 %v6346_v28 }
 0xdbf   :  { %5045 = vmatpush3.msra.mxu1 %v6348_v37 }
 0xdc0   :  { %5046 = vmatprep.subr.mxu1 %v6346_v28 }
 0xdc1   :  { %5047 = vmatpush3.msra.mxu1 %v6349_v40 }
 0xe7a   :  { %v3532_v34 = vpop.f32.mrf.mxu1 }
 0xe7b   :  { %v3536_v14 = vadd.f32 %v3532_v34, %v6185_v53 }
 0xe7c   :  { %v5028_v61 = vpop.f32.mrf.mxu1 }
 0xe7d   :  { %5099 = vtanh.f32 %v3536_v14  ;;  %v4160_v17 = vmul.f32 -1.442695, %v3536_v14 }
 0xe7f   :  { %5101 = vpow2.f32 %v4160_v17 }
 0xe8a   :  { %v5100_v0 = vpop.eup %5099 }
 0xe8b   :  { %3546 = vrot.lane.b32.xlu1 %v5100_v0, %s5133_s9 }
 0xe8c   :  { %v5102_v24 = vpop.eup %5101 }
 0xe8d   :  { %v3540_v13 = vadd.f32 1.0, %v5102_v24 }
 0xe8f   :  { %5103 = vrcp.f32 %v3540_v13 }
 0xe9c   :  { %v5104_v19 = vpop.eup %5103 }
 0xe9d   :  { %v3544_v11 = vmul.f32 %v5104_v19, %v3454_v3 }
 0xefd   :  { %v3547_v10 = vpop.permute.xlu1 %3546 }
 0xefe   :  { %v3549_v8 = vmul.f32 %v5104_v19, %v3547_v10 }
 0xf00   :  { %3551 = vrot.lane.b32.xlu0 %v3549_v8, %s5134_s30 }
 0xf72   :  { %v3552_v5 = vpop.permute.xlu0 %3551 }
 0xf73   :  { %v3554_v16 = vadd.f32 %v3552_v5, %v3544_v11 }
 0xf75   :  { %5105 = vtanh.f32 %v3554_v16 }
 0xf82   :  { %v5106_v53 = vpop.eup %5105 }
 0xf83   :  { %3557 = vrot.lane.b32.xlu1 %v5106_v53, %s5133_s9 }
 0xff5   :  { %v3558_v21 = vpop.permute.xlu1 %3557 }
 0xff6   :  { %v3560_v1 = vmul.f32 %v5104_v19, %v3558_v21 }
 0xff8   :  { %3562 = vrot.lane.b32.xlu0 %v3560_v1, %s5134_s30 }
0x106a   :  { %v3563_v26 = vpop.permute.xlu0 %3562 }
0x106b   :  { %5038 = vmatmul.mubr.msk.f32.vlgmr.msra.gmra.mxu0 %vm3058_vm8, %v3563_v26 }
0x106c   :  { %5052 = vmatpush3.msra.mxu0 %v6345_v23  ;;  %5059 = vmatprep.mubr.msk.f32.mxu0 %vm5132_vm7, %v6346_v28 }
0x106d   :  { %5053 = vmatprep.subr.mxu0 %v6346_v28 }
0x106e   :  { %5054 = vmatpush3.msra.mxu0 %v6347_v32 }
0x106f   :  { %5055 = vmatprep.subr.mxu0 %v6346_v28 }
0x1070   :  { %5056 = vmatpush3.msra.mxu0 %v6348_v37 }
0x1071   :  { %5057 = vmatprep.subr.mxu0 %v6346_v28 }
0x1072   :  { %5058 = vmatpush3.msra.mxu0 %v6349_v40 }
0x112b   :  { %v3632_v47 = vpop.f32.mrf.mxu0 }
0x112c   :  { %v3636_v18 = vadd.f32 %v3632_v47, %v6182_v30 }
0x112d   :  { %v5039_v25 = vpop.f32.mrf.mxu0 }
0x112e   :  { %5107 = vtanh.f32 %v3636_v18  ;;  %v4162_v15 = vmul.f32 -1.442695, %v3636_v18 }
0x1130   :  { %5109 = vpow2.f32 %v4162_v15 }
0x113b   :  { %v5108_v23 = vpop.eup %5107 }
0x113c   :  { %3646 = vrot.lane.b32.xlu1 %v5108_v23, %s5133_s9 }
0x113d   :  { %v5110_v33 = vpop.eup %5109 }
0x113e   :  { %v3640_v32 = vadd.f32 1.0, %v5110_v33 }
0x1140   :  { %5111 = vrcp.f32 %v3640_v32 }
0x114d   :  { %v5112_v35 = vpop.eup %5111 }
0x114e   :  { %v3644_v28 = vmul.f32 %v5112_v35, %v3554_v16 }
0x11ae   :  { %v3647_v20 = vpop.permute.xlu1 %3646 }
0x11af   :  { %v3649_v37 = vmul.f32 %v5112_v35, %v3647_v20 }
0x11b1   :  { %3651 = vrot.lane.b32.xlu0 %v3649_v37, %s5134_s30 }
0x1223   :  { %v3652_v40 = vpop.permute.xlu0 %3651 }
0x1224   :  { %v3654_v36 = vadd.f32 %v3652_v40, %v3644_v28 }
0x1226   :  { %5113 = vtanh.f32 %v3654_v36 }
0x1233   :  { %v5114_v30 = vpop.eup %5113 }
0x1234   :  { %3657 = vrot.lane.b32.xlu1 %v5114_v30, %s5133_s9 }
0x12a6   :  { %v3658_v39 = vpop.permute.xlu1 %3657 }
0x12a7   :  { %v3660_v41 = vmul.f32 %v5112_v35, %v3658_v39 }
0x12a9   :  { %3662 = vrot.lane.b32.xlu0 %v3660_v41, %s5134_s30 }
0x131b   :  { %v3663_v42 = vpop.permute.xlu0 %3662 }
0x131c   :  { %5049 = vmatmul.mubr.msk.f32.vlgmr.msra.gmra.mxu1 %vm3058_vm8, %v3663_v42 }
0x13dc   :  { %v3732_v29 = vpop.f32.mrf.mxu1 }
0x13dd   :  { %v3736_v38 = vadd.f32 %v3732_v29, %v3044_v22 }
0x13de   :  { %v5050_v43 = vpop.f32.mrf.mxu1 }
0x13df   :  { %5115 = vtanh.f32 %v3736_v38  ;;  %v4164_v45 = vmul.f32 -1.442695, %v3736_v38 }
0x13e1   :  { %5117 = vpow2.f32 %v4164_v45 }
0x13ec   :  { %v5116_v44 = vpop.eup %5115 }
0x13ed   :  { %3746 = vrot.lane.b32.xlu1 %v5116_v44, %s5133_s9 }
0x13ee   :  { %v5118_v46 = vpop.eup %5117 }
0x13ef   :  { %v3740_v48 = vadd.f32 1.0, %v5118_v46 }
0x13f1   :  { %5119 = vrcp.f32 %v3740_v48 }
0x13fe   :  { %v5120_v50 = vpop.eup %5119 }
0x13ff   :  { %v3744_v54 = vmul.f32 %v5120_v50, %v3654_v36 }
0x145f   :  { %v3747_v51 = vpop.permute.xlu1 %3746 }
0x1460   :  { %v3749_v52 = vmul.f32 %v5120_v50, %v3747_v51 }
0x1462   :  { %3751 = vrot.lane.b32.xlu0 %v3749_v52, %s5134_s30 }
0x14d4   :  { %v3752_v57 = vpop.permute.xlu0 %3751 }
0x14d5   :  { %v3754_v27 = vadd.f32 %v3752_v57, %v3744_v54 }
0x14d7   :  { %5121 = vtanh.f32 %v3754_v27 }
0x14e4   :  { %v5122_v31 = vpop.eup %5121 }
0x14e5   :  { %3757 = vrot.lane.b32.xlu1 %v5122_v31, %s5133_s9 }
0x1557   :  { %v3758_v7 = vpop.permute.xlu1 %3757 }
0x1558   :  { %v3760_v58 = vmul.f32 %v5120_v50, %v3758_v7 }
0x155a   :  { %3762 = vrot.lane.b32.xlu0 %v3760_v58, %s5134_s30 }
0x15cc   :  { %v3763_v59 = vpop.permute.xlu0 %3762 }
0x15cd   :  { %5060 = vmatmul.mubr.msk.f32.vlgmr.msra.gmra.mxu0 %vm3058_vm8, %v3763_v59 }
0x168d   :  { %v3832_v60 = vpop.f32.mrf.mxu0 }
0x168e   :  { %v3836_v56 = vadd.f32 %v3832_v60, %v6188_v55 }
0x168f   :  { %v5061_v62 = vpop.f32.mrf.mxu0 }
0x1690   :  { %5123 = vtanh.f32 %v3836_v56  ;;  %v4166_v9 = vmul.f32 -1.442695, %v3836_v56 }
0x1692   :  { %5125 = vpow2.f32 %v4166_v9 }
0x169d   :  { %v5124_v63 = vpop.eup %5123 }
0x169e   :  { %3846 = vrot.lane.b32.xlu1 %v5124_v63, %s5133_s9 }
0x169f   :  { %v5126_v2 = vpop.eup %5125 }
0x16a0   :  { %v3840_v3 = vadd.f32 1.0, %v5126_v2 }
0x16a2   :  { %5127 = vrcp.f32 %v3840_v3 }
0x16af   :  { %v5128_v49 = vpop.eup %5127 }
0x16b0   :  { %v3844_v12 = vmul.f32 %v5128_v49, %v3754_v27 }
0x1710   :  { %v3847_v4 = vpop.permute.xlu1 %3846 }
0x1711   :  { %v3849_v6 = vmul.f32 %v5128_v49, %v3847_v4 }
0x1713   :  { %3851 = vrot.lane.b32.xlu0 %v3849_v6, %s5134_s30 }
0x1785   :  { %v3852_v34 = vpop.permute.xlu0 %3851 }
0x1786   :  { %v3854_v14 = vadd.f32 %v3852_v34, %v3844_v12 }
0x1788   :  { %5129 = vtanh.f32 %v3854_v14 }
0x1795   :  { %v5130_v55 = vpop.eup %5129 }
0x1796   :  { %3857 = vrot.lane.b32.xlu1 %v5130_v55, %s5133_s9 }
0x179a   :  { %3867 = vrot.lane.b32.xlu1 %v3854_v14, %s5135_s11 }
0x1808   :  { %v3858_v61 = vpop.permute.xlu1 %3857 }
0x1809   :  { %v3860_v0 = vmul.f32 %v5128_v49, %v3858_v61 }
0x180b   :  { %3862 = vrot.lane.b32.xlu0 %v3860_v0, %s5134_s30 }
0x180c   :  { %v3868_v17 = vpop.permute.xlu1 %3867 }
0x180d   :  { %3870 = vst.msk [vmem:[%s6311_s13] sm:$0xff] %vm3058_vm8, %v3868_v17 }
0x187d   :  { %v3863_v24 = vpop.permute.xlu0 %3862 }
0x187e   :  { %3865 = vst.msk [vmem:[%s6312_s12] sm:$0xff] %vm3058_vm8, %v3863_v24 }

</bundles_post_ra>
